<compile_context>
chip_gen: v7x
topology: tpu7x:2x2x1
jax: 0.10.0
libtpu: 0.0.40
codegen_flags: <defaults>
</compile_context>

<pallas_src>
import functools
import math

import jax
import jax.numpy as jnp
import numpy as np
from jax.experimental import pallas as pl
from jax.experimental.pallas import tpu as pltpu

CIN_PAD = 8  # all conv input-channel counts padded to this (sublane aligned)


# ---------------------------------------------------------------------------
# Static helper (numpy, trace-time): per-tap 0/1 gather matrices that fold
# replication-pad / stride-2 / nearest-upsample into a column selection.
# Columns are ordered n = h*W + w (single batch element).
# ---------------------------------------------------------------------------
def make_sel_matrices(H, W, kind):
    """Returns (9, H*W, Ho*Wo) float32 one-hot gather matrices.

    kind == "down": ReplicationPad2d(1) -> Conv2d(3x3, stride=2)
    kind == "up"  : UpsamplingNearest2d(2) -> ReplicationPad2d(1) -> Conv2d(3x3, stride=1)
    """
    if kind == "down":
        Ho, Wo = H // 2, W // 2
    else:
        Ho, Wo = 2 * H, 2 * W
    hw_in, hw_out = H * W, Ho * Wo
    ho = np.arange(Ho)[:, None]
    wo = np.arange(Wo)[None, :]
    sel = np.zeros((9, hw_in, hw_out), np.float32)
    cols = np.arange(hw_out)
    k = 0
    for kh in range(3):
        for kw in range(3):
            if kind == "down":
                hs = np.clip(2 * ho + kh - 1, 0, H - 1)
                ws = np.clip(2 * wo + kw - 1, 0, W - 1)
            else:
                hs = np.clip(ho + kh - 1, 0, 2 * H - 1) // 2
                ws = np.clip(wo + kw - 1, 0, 2 * W - 1) // 2
            src = (hs * W + ws).reshape(-1)          # (hw_out,)
            sel[k, src, cols] = 1.0
            k += 1
    return sel


# ---------------------------------------------------------------------------
# The fused Pallas kernel: whole forward for ONE batch element per grid step.
# Per layer: 9 gather matmuls into an im2col VMEM scratch, one weight matmul,
# bias add (conv bias + folded embedding projection), LeakyReLU, PE add.
# ---------------------------------------------------------------------------
def fused_image_filter_kernel(*refs, layer_cfgs):
    col_ref = refs[-1]          # (9*CIN_PAD, max_hw) f32 im2col scratch
    out_ref = refs[-2]          # (1, 3, hw0)
    in_refs = refs[:-2]

    A = in_refs[0][0]           # (CIN_PAD, hw0)  lane-dense activation
    idx = 1
    for cfg in layer_cfgs:
        sel_ref = in_refs[idx]          # (9, hw_in, hw_out) 0/1 gather matrices
        w_ref = in_refs[idx + 1]        # (cout, 9*CIN_PAD)  tap-major weights
        b_ref = in_refs[idx + 2]        # (1, cout, 1)       bias + folded proj
        idx += 3
        pe_ref = None
        if cfg["has_pe"]:
            pe_ref = in_refs[idx]       # (cout, hw_out) positional encoding
            idx += 1

        cp = cfg["cin_pad"]
        hw_out = cfg["hw_out"]

        # generic channel padding (dead code for this config: channels == cp)
        if A.shape[0] < cp:
            A = jnp.concatenate(
                [A, jnp.zeros((cp - A.shape[0], A.shape[1]), A.dtype)], axis=0)

        # ---- 9 gather matmuls -> im2col scratch (sublane-aligned writes) ----
        for k in range(9):
            col_ref[k * cp:(k + 1) * cp, 0:hw_out] = jnp.dot(
                A, sel_ref[k], preferred_element_type=jnp.float32)

        # ---- single weight matmul over the whole im2col block ----
        acc = jnp.dot(w_ref[...], col_ref[0:9 * cp, 0:hw_out],
                      preferred_element_type=jnp.float32)     # (cout, hw_out)
        acc = acc + b_ref[0]                                  # (cout,1) broadcast

        if cfg["relu"]:
            acc = jnp.where(acc >= 0.0, acc, 0.2 * acc)       # LeakyReLU(0.2)

        if pe_ref is not None:
            acc = acc + pe_ref[...]                           # plain VPU add

        A = acc

    out_ref[0] = A                                            # (3, hw0)


# ---------------------------------------------------------------------------
# Wrapper: builds the static per-layer operands and calls the fused kernel.
# ---------------------------------------------------------------------------
def image_filter_forward_pallas(params, img, att_map, embedding):
    B, _, H, W = img.shape

    # dropout(0.3) is identity in eval mode
    feats = jnp.concatenate([img, att_map], axis=1)           # (B, 4, H, W)
    a0 = feats.reshape(B, 4, H * W)
    a0 = jnp.concatenate(
        [a0, jnp.zeros((B, CIN_PAD - 4, H * W), a0.dtype)], axis=1)  # pad cin->8

    kernel_inputs = [a0]
    in_specs = [pl.BlockSpec((1, CIN_PAD, H * W), lambda b: (b, 0, 0))]
    layer_cfgs = []
    flops = 0
    cur_h, cur_w = H, W

    def add_layer(p, kind, use_relu, pe):
        nonlocal cur_h, cur_w, flops
        cout, cin = p["conv_w"].shape[0], p["conv_w"].shape[1]
        if kind == "down":
            ho, wo = cur_h // 2, cur_w // 2
        else:
            ho, wo = 2 * cur_h, 2 * cur_w
        hw_in, hw_out = cur_h * cur_w, ho * wo

        # static 0/1 gather matrices (pad / stride / upsample folded in)
        sel = jnp.asarray(make_sel_matrices(cur_h, cur_w, kind))     # (9,hw_in,hw_out)

        # tap-major weights, input channels zero-padded to CIN_PAD, flattened
        w9 = p["conv_w"].transpose(2, 3, 0, 1).reshape(9, cout, cin)
        w9 = jnp.pad(w9, ((0, 0), (0, 0), (0, CIN_PAD - cin)))
        w_flat = jnp.transpose(w9, (1, 0, 2)).reshape(cout, 9 * CIN_PAD)

        # bias = conv bias + embedding projection folded to the output side:
        # conv(A + proj) == conv(A) + (sum_k W_k) @ proj   (exact, linearity)
        proj = embedding @ p["proj_w"].T                      # (B, cin)
        w_sum = p["conv_w"].sum(axis=(2, 3))                  # (cout, cin)
        proj_out = proj @ w_sum.T                             # (B, cout)
        bias = (p["conv_b"][None, :] + proj_out)[:, :, None]  # (B, cout, 1)

        kernel_inputs.extend([sel, w_flat, bias])
        in_specs.extend([
            pl.BlockSpec((9, hw_in, hw_out), lambda b: (0, 0, 0)),
            pl.BlockSpec((cout, 9 * CIN_PAD), lambda b: (0, 0)),
            pl.BlockSpec((1, cout, 1), lambda b: (b, 0, 0)),
        ])
        if pe is not None:
            pe_flat = pe.reshape(cout, hw_out)
            kernel_inputs.append(pe_flat)
            in_specs.append(pl.BlockSpec((cout, hw_out), lambda b: (0, 0)))

        layer_cfgs.append(dict(cin_pad=CIN_PAD, hw_out=hw_out,
                               relu=use_relu, has_pe=pe is not None))
        flops += 2 * B * (9 * CIN_PAD * hw_in * hw_out          # gather matmuls
                          + cout * 9 * CIN_PAD * hw_out)        # weight matmul
        cur_h, cur_w = ho, wo

    for p in params["down"]:
        add_layer(p, "down", True, p["pe"])
    for p in params["up"]:
        add_layer(p, "up", p["use_relu"], None)

    c_final = params["up"][-1]["conv_w"].shape[0]
    n_final = cur_h * cur_w
    max_hw = max(cfg["hw_out"] for cfg in layer_cfgs)

    bytes_accessed = sum(int(np.prod(x.shape)) * 4 for x in kernel_inputs)
    bytes_accessed += B * c_final * n_final * 4

    kernel = functools.partial(fused_image_filter_kernel,
                               layer_cfgs=tuple(layer_cfgs))
    out = pl.pallas_call(
        kernel,
        out_shape=jax.ShapeDtypeStruct((B, c_final, n_final), jnp.float32),
        grid=(B,),
        in_specs=in_specs,
        out_specs=pl.BlockSpec((1, c_final, n_final), lambda b: (b, 0, 0)),
        scratch_shapes=[pltpu.VMEM((9 * CIN_PAD, max_hw), jnp.float32)],
        compiler_params=pltpu.CompilerParams(
            dimension_semantics=("parallel",)),
        cost_estimate=pl.CostEstimate(flops=flops, transcendentals=0,
                                      bytes_accessed=bytes_accessed),
    )(*kernel_inputs)

    # module boundary: back to NCHW
    return out.reshape(B, c_final, cur_h, cur_w)


# ---------------------------------------------------------------------------
# Pure-JAX reference (for correctness check)
# ---------------------------------------------------------------------------
def conv_block_ref(x, w, b, stride, use_relu, pe):
    xp = jnp.pad(x, ((0, 0), (0, 0), (1, 1), (1, 1)), mode="edge")
    out = jax.lax.conv_general_dilated(
        xp, w, (stride, stride), "VALID",
        dimension_numbers=("NCHW", "OIHW", "NCHW"))
    out = out + b[None, :, None, None]
    if use_relu:
        out = jnp.where(out >= 0.0, out, 0.2 * out)
    if pe is not None:
        out = out + pe[None]
    return out


def image_filter_forward(params, img, att_map, embedding, conv_block):
    feats = jnp.concatenate([img, att_map], axis=1)            # (B, 4, H, W)
    for p in params["down"]:
        proj = embedding @ p["proj_w"].T                       # (B, Cin)
        feats = feats + proj[:, :, None, None]
        feats = conv_block(feats, p["conv_w"], p["conv_b"],
                           stride=2, use_relu=True, pe=p["pe"])
    for p in params["up"]:
        proj = embedding @ p["proj_w"].T
        feats = feats + proj[:, :, None, None]
        feats = jnp.repeat(jnp.repeat(feats, 2, axis=2), 2, axis=3)  # nearest x2
        feats = conv_block(feats, p["conv_w"], p["conv_b"],
                           stride=1, use_relu=p["use_relu"], pe=None)
    return feats


# ---------------------------------------------------------------------------
# Positional encoding (exact port of Positional.get_positional_encoding_2d)
# ---------------------------------------------------------------------------
def positional_encoding_2d(d_model, height, width):
    assert d_model % 4 == 0
    pe = np.zeros((d_model, height, width), dtype=np.float32)
    dm = d_model // 2
    div_term = np.exp(np.arange(0.0, dm, 2) * -(math.log(10000.0) / dm))
    pos_w = np.arange(0.0, width)[:, None]
    pos_h = np.arange(0.0, height)[:, None]
    pe[0:dm:2, :, :] = np.repeat(np.sin(pos_w * div_term).T[:, None, :], height, axis=1)
    pe[1:dm:2, :, :] = np.repeat(np.cos(pos_w * div_term).T[:, None, :], height, axis=1)
    pe[dm::2, :, :] = np.repeat(np.sin(pos_h * div_term).T[:, :, None], width, axis=2)
    pe[dm + 1::2, :, :] = np.repeat(np.cos(pos_h * div_term).T[:, :, None], width, axis=2)
    return jnp.asarray(pe)


# ---------------------------------------------------------------------------
# Deterministic parameter construction
# ---------------------------------------------------------------------------
def make_params(key, n_downsample, d_latent, d_embed, H, W):
    def uniform(k, shape, fan_in):
        lim = 1.0 / math.sqrt(fan_in)
        return jax.random.uniform(k, shape, jnp.float32, -lim, lim)

    params = {"down": [], "up": []}
    down_sizes = [(4, d_latent)] + [(d_latent, d_latent)] * (n_downsample - 1)
    up_sizes = [(d_latent, d_latent)] * (n_downsample - 1) + [(d_latent, 3)]

    h = H
    for cin, cout in down_sizes:
        key, k1, k2, k3 = jax.random.split(key, 4)
        h = h // 2
        params["down"].append(dict(
            proj_w=uniform(k1, (cin, d_embed), d_embed),   # Linear(d_embed, cin, bias=False)
            conv_w=uniform(k2, (cout, cin, 3, 3), cin * 9),
            conv_b=uniform(k3, (cout,), cin * 9),
            pe=positional_encoding_2d(cout, h, h),
        ))

    for i, (cin, cout) in enumerate(up_sizes):
        key, k1, k2, k3 = jax.random.split(key, 4)
        params["up"].append(dict(
            proj_w=uniform(k1, (cin, d_embed), d_embed),
            conv_w=uniform(k2, (cout, cin, 3, 3), cin * 9),
            conv_b=uniform(k3, (cout,), cin * 9),
            use_relu=(i != n_downsample - 1),              # no LeakyReLU on last layer
        ))
    return params


if __name__ == "__main__":
    B, H, W = 2, 16, 16
    n_downsample, d_latent, d_embed = 2, 8, 32

    key = jax.random.PRNGKey(0)
    key, k_img, k_att, k_emb, k_par = jax.random.split(key, 5)
    img = jax.random.normal(k_img, (B, 3, H, W), jnp.float32)
    att_map = jax.random.normal(k_att, (B, 1, H, W), jnp.float32)
    embedding = jax.random.normal(k_emb, (B, d_embed), jnp.float32)

    params = make_params(k_par, n_downsample, d_latent, d_embed, H, W)

    # fully fused single-kernel forward (params closed over -> static config)
    fused_fwd = jax.jit(functools.partial(image_filter_forward_pallas, params))
    out = jax.block_until_ready(fused_fwd(img, att_map, embedding))
    assert out.shape == (B, 3, H, W), out.shape

    # correctness check against a pure-JAX reference
    ref = jax.block_until_ready(
        image_filter_forward(params, img, att_map, embedding, conv_block_ref))
    np.testing.assert_allclose(np.asarray(out), np.asarray(ref), rtol=1e-3, atol=1e-3)

    print("KERNEL_OK")
</pallas_src>

<mosaic_0001>
module attributes {stable_mosaic.version = 11 : i64} {
  func.func @fused_image_filter_kernel(%arg0: i32, %arg1: memref<1x8x256xf32, #tpu.memory_space<vmem>>, %arg2: memref<9x256x64xf32, #tpu.memory_space<vmem>>, %arg3: memref<8x72xf32, #tpu.memory_space<vmem>>, %arg4: memref<1x8x1xf32, #tpu.memory_space<vmem>>, %arg5: memref<8x64xf32, #tpu.memory_space<vmem>>, %arg6: memref<9x64x16xf32, #tpu.memory_space<vmem>>, %arg7: memref<8x72xf32, #tpu.memory_space<vmem>>, %arg8: memref<1x8x1xf32, #tpu.memory_space<vmem>>, %arg9: memref<8x16xf32, #tpu.memory_space<vmem>>, %arg10: memref<9x16x64xf32, #tpu.memory_space<vmem>>, %arg11: memref<8x72xf32, #tpu.memory_space<vmem>>, %arg12: memref<1x8x1xf32, #tpu.memory_space<vmem>>, %arg13: memref<9x64x256xf32, #tpu.memory_space<vmem>>, %arg14: memref<3x72xf32, #tpu.memory_space<vmem>>, %arg15: memref<1x3x1xf32, #tpu.memory_space<vmem>>, %arg16: memref<1x3x256xf32, #tpu.memory_space<vmem>>, %arg17: memref<72x256xf32, #tpu.memory_space<vmem>>) attributes {dimension_semantics = [#tpu.dimension_semantics<parallel>], iteration_bounds = array<i64: 2>, scalar_prefetch = 0 : i64, scratch_operands = 1 : i64, tpu.core_type = #tpu.core_type<tc>, window_params = [{transform_indices = @transform_0, window_bounds = array<i64: 1, 8, 256>}, {pipeline_mode = #tpu.pipeline_mode<synchronous>, transform_indices = @transform_1, window_bounds = array<i64: 9, 256, 64>}, {pipeline_mode = #tpu.pipeline_mode<synchronous>, transform_indices = @transform_2, window_bounds = array<i64: 8, 72>}, {transform_indices = @transform_3, window_bounds = array<i64: 1, 8, 1>}, {pipeline_mode = #tpu.pipeline_mode<synchronous>, transform_indices = @transform_4, window_bounds = array<i64: 8, 64>}, {pipeline_mode = #tpu.pipeline_mode<synchronous>, transform_indices = @transform_5, window_bounds = array<i64: 9, 64, 16>}, {pipeline_mode = #tpu.pipeline_mode<synchronous>, transform_indices = @transform_6, window_bounds = array<i64: 8, 72>}, {transform_indices = @transform_7, window_bounds = array<i64: 1, 8, 1>}, {pipeline_mode = #tpu.pipeline_mode<synchronous>, transform_indices = @transform_8, window_bounds = array<i64: 8, 16>}, {pipeline_mode = #tpu.pipeline_mode<synchronous>, transform_indices = @transform_9, window_bounds = array<i64: 9, 16, 64>}, {pipeline_mode = #tpu.pipeline_mode<synchronous>, transform_indices = @transform_10, window_bounds = array<i64: 8, 72>}, {transform_indices = @transform_11, window_bounds = array<i64: 1, 8, 1>}, {pipeline_mode = #tpu.pipeline_mode<synchronous>, transform_indices = @transform_12, window_bounds = array<i64: 9, 64, 256>}, {pipeline_mode = #tpu.pipeline_mode<synchronous>, transform_indices = @transform_13, window_bounds = array<i64: 3, 72>}, {transform_indices = @transform_14, window_bounds = array<i64: 1, 3, 1>}, {transform_indices = @transform_15, window_bounds = array<i64: 1, 3, 256>}]} {
    %c0 = arith.constant 0 : index
    %c0_0 = arith.constant 0 : index
    %c0_1 = arith.constant 0 : index
    %0 = vector.load %arg1[%c0, %c0_0, %c0_1] : memref<1x8x256xf32, #tpu.memory_space<vmem>>, vector<1x8x256xf32>
    %1 = vector.shape_cast %0 : vector<1x8x256xf32> to vector<8x256xf32>
    %c0_2 = arith.constant 0 : index
    %c0_3 = arith.constant 0 : index
    %c0_4 = arith.constant 0 : index
    %2 = vector.load %arg2[%c0_2, %c0_3, %c0_4] : memref<9x256x64xf32, #tpu.memory_space<vmem>>, vector<1x256x64xf32>
    %3 = vector.shape_cast %2 : vector<1x256x64xf32> to vector<256x64xf32>
    %cst = arith.constant dense<0.000000e+00> : vector<8x64xf32>
    %4 = tpu.matmul %1, %3, %cst {dimension_numbers = #tpu.dot_dimension_numbers<[1], [0], [0], [1], [0, 0, 1, 1], [], []>} : vector<8x256xf32>, vector<256x64xf32>, vector<8x64xf32> -> vector<8x64xf32>
    %c0_5 = arith.constant 0 : index
    %c0_6 = arith.constant 0 : index
    %5 = vector.load %arg17[%c0_5, %c0_6] : memref<72x256xf32, #tpu.memory_space<vmem>>, vector<8x64xf32>
    tpu.vector_store %arg17[%c0_5, %c0_6], %4 {strides = array<i32>} : memref<72x256xf32, #tpu.memory_space<vmem>>, vector<8x64xf32>,
    %c1 = arith.constant 1 : index
    %c0_7 = arith.constant 0 : index
    %c0_8 = arith.constant 0 : index
    %6 = vector.load %arg2[%c1, %c0_7, %c0_8] : memref<9x256x64xf32, #tpu.memory_space<vmem>>, vector<1x256x64xf32>
    %7 = vector.shape_cast %6 : vector<1x256x64xf32> to vector<256x64xf32>
    %cst_9 = arith.constant dense<0.000000e+00> : vector<8x64xf32>
    %8 = tpu.matmul %1, %7, %cst_9 {dimension_numbers = #tpu.dot_dimension_numbers<[1], [0], [0], [1], [0, 0, 1, 1], [], []>} : vector<8x256xf32>, vector<256x64xf32>, vector<8x64xf32> -> vector<8x64xf32>
    %c8 = arith.constant 8 : index
    %c0_10 = arith.constant 0 : index
    %9 = vector.load %arg17[%c8, %c0_10] : memref<72x256xf32, #tpu.memory_space<vmem>>, vector<8x64xf32>
    tpu.vector_store %arg17[%c8, %c0_10], %8 {strides = array<i32>} : memref<72x256xf32, #tpu.memory_space<vmem>>, vector<8x64xf32>,
    %c2 = arith.constant 2 : index
    %c0_11 = arith.constant 0 : index
    %c0_12 = arith.constant 0 : index
    %10 = vector.load %arg2[%c2, %c0_11, %c0_12] : memref<9x256x64xf32, #tpu.memory_space<vmem>>, vector<1x256x64xf32>
    %11 = vector.shape_cast %10 : vector<1x256x64xf32> to vector<256x64xf32>
    %cst_13 = arith.constant dense<0.000000e+00> : vector<8x64xf32>
    %12 = tpu.matmul %1, %11, %cst_13 {dimension_numbers = #tpu.dot_dimension_numbers<[1], [0], [0], [1], [0, 0, 1, 1], [], []>} : vector<8x256xf32>, vector<256x64xf32>, vector<8x64xf32> -> vector<8x64xf32>
    %c16 = arith.constant 16 : index
    %c0_14 = arith.constant 0 : index
    %13 = vector.load %arg17[%c16, %c0_14] : memref<72x256xf32, #tpu.memory_space<vmem>>, vector<8x64xf32>
    tpu.vector_store %arg17[%c16, %c0_14], %12 {strides = array<i32>} : memref<72x256xf32, #tpu.memory_space<vmem>>, vector<8x64xf32>,
    %c3 = arith.constant 3 : index
    %c0_15 = arith.constant 0 : index
    %c0_16 = arith.constant 0 : index
    %14 = vector.load %arg2[%c3, %c0_15, %c0_16] : memref<9x256x64xf32, #tpu.memory_space<vmem>>, vector<1x256x64xf32>
    %15 = vector.shape_cast %14 : vector<1x256x64xf32> to vector<256x64xf32>
    %cst_17 = arith.constant dense<0.000000e+00> : vector<8x64xf32>
    %16 = tpu.matmul %1, %15, %cst_17 {dimension_numbers = #tpu.dot_dimension_numbers<[1], [0], [0], [1], [0, 0, 1, 1], [], []>} : vector<8x256xf32>, vector<256x64xf32>, vector<8x64xf32> -> vector<8x64xf32>
    %c24 = arith.constant 24 : index
    %c0_18 = arith.constant 0 : index
    %17 = vector.load %arg17[%c24, %c0_18] : memref<72x256xf32, #tpu.memory_space<vmem>>, vector<8x64xf32>
    tpu.vector_store %arg17[%c24, %c0_18], %16 {strides = array<i32>} : memref<72x256xf32, #tpu.memory_space<vmem>>, vector<8x64xf32>,
    %c4 = arith.constant 4 : index
    %c0_19 = arith.constant 0 : index
    %c0_20 = arith.constant 0 : index
    %18 = vector.load %arg2[%c4, %c0_19, %c0_20] : memref<9x256x64xf32, #tpu.memory_space<vmem>>, vector<1x256x64xf32>
    %19 = vector.shape_cast %18 : vector<1x256x64xf32> to vector<256x64xf32>
    %cst_21 = arith.constant dense<0.000000e+00> : vector<8x64xf32>
    %20 = tpu.matmul %1, %19, %cst_21 {dimension_numbers = #tpu.dot_dimension_numbers<[1], [0], [0], [1], [0, 0, 1, 1], [], []>} : vector<8x256xf32>, vector<256x64xf32>, vector<8x64xf32> -> vector<8x64xf32>
    %c32 = arith.constant 32 : index
    %c0_22 = arith.constant 0 : index
    %21 = vector.load %arg17[%c32, %c0_22] : memref<72x256xf32, #tpu.memory_space<vmem>>, vector<8x64xf32>
    tpu.vector_store %arg17[%c32, %c0_22], %20 {strides = array<i32>} : memref<72x256xf32, #tpu.memory_space<vmem>>, vector<8x64xf32>,
    %c5 = arith.constant 5 : index
    %c0_23 = arith.constant 0 : index
    %c0_24 = arith.constant 0 : index
    %22 = vector.load %arg2[%c5, %c0_23, %c0_24] : memref<9x256x64xf32, #tpu.memory_space<vmem>>, vector<1x256x64xf32>
    %23 = vector.shape_cast %22 : vector<1x256x64xf32> to vector<256x64xf32>
    %cst_25 = arith.constant dense<0.000000e+00> : vector<8x64xf32>
    %24 = tpu.matmul %1, %23, %cst_25 {dimension_numbers = #tpu.dot_dimension_numbers<[1], [0], [0], [1], [0, 0, 1, 1], [], []>} : vector<8x256xf32>, vector<256x64xf32>, vector<8x64xf32> -> vector<8x64xf32>
    %c40 = arith.constant 40 : index
    %c0_26 = arith.constant 0 : index
    %25 = vector.load %arg17[%c40, %c0_26] : memref<72x256xf32, #tpu.memory_space<vmem>>, vector<8x64xf32>
    tpu.vector_store %arg17[%c40, %c0_26], %24 {strides = array<i32>} : memref<72x256xf32, #tpu.memory_space<vmem>>, vector<8x64xf32>,
    %c6 = arith.constant 6 : index
    %c0_27 = arith.constant 0 : index
    %c0_28 = arith.constant 0 : index
    %26 = vector.load %arg2[%c6, %c0_27, %c0_28] : memref<9x256x64xf32, #tpu.memory_space<vmem>>, vector<1x256x64xf32>
    %27 = vector.shape_cast %26 : vector<1x256x64xf32> to vector<256x64xf32>
    %cst_29 = arith.constant dense<0.000000e+00> : vector<8x64xf32>
    %28 = tpu.matmul %1, %27, %cst_29 {dimension_numbers = #tpu.dot_dimension_numbers<[1], [0], [0], [1], [0, 0, 1, 1], [], []>} : vector<8x256xf32>, vector<256x64xf32>, vector<8x64xf32> -> vector<8x64xf32>
    %c48 = arith.constant 48 : index
    %c0_30 = arith.constant 0 : index
    %29 = vector.load %arg17[%c48, %c0_30] : memref<72x256xf32, #tpu.memory_space<vmem>>, vector<8x64xf32>
    tpu.vector_store %arg17[%c48, %c0_30], %28 {strides = array<i32>} : memref<72x256xf32, #tpu.memory_space<vmem>>, vector<8x64xf32>,
    %c7 = arith.constant 7 : index
    %c0_31 = arith.constant 0 : index
    %c0_32 = arith.constant 0 : index
    %30 = vector.load %arg2[%c7, %c0_31, %c0_32] : memref<9x256x64xf32, #tpu.memory_space<vmem>>, vector<1x256x64xf32>
    %31 = vector.shape_cast %30 : vector<1x256x64xf32> to vector<256x64xf32>
    %cst_33 = arith.constant dense<0.000000e+00> : vector<8x64xf32>
    %32 = tpu.matmul %1, %31, %cst_33 {dimension_numbers = #tpu.dot_dimension_numbers<[1], [0], [0], [1], [0, 0, 1, 1], [], []>} : vector<8x256xf32>, vector<256x64xf32>, vector<8x64xf32> -> vector<8x64xf32>
    %c56 = arith.constant 56 : index
    %c0_34 = arith.constant 0 : index
    %33 = vector.load %arg17[%c56, %c0_34] : memref<72x256xf32, #tpu.memory_space<vmem>>, vector<8x64xf32>
    tpu.vector_store %arg17[%c56, %c0_34], %32 {strides = array<i32>} : memref<72x256xf32, #tpu.memory_space<vmem>>, vector<8x64xf32>,
    %c8_35 = arith.constant 8 : index
    %c0_36 = arith.constant 0 : index
    %c0_37 = arith.constant 0 : index
    %34 = vector.load %arg2[%c8_35, %c0_36, %c0_37] : memref<9x256x64xf32, #tpu.memory_space<vmem>>, vector<1x256x64xf32>
    %35 = vector.shape_cast %34 : vector<1x256x64xf32> to vector<256x64xf32>
    %cst_38 = arith.constant dense<0.000000e+00> : vector<8x64xf32>
    %36 = tpu.matmul %1, %35, %cst_38 {dimension_numbers = #tpu.dot_dimension_numbers<[1], [0], [0], [1], [0, 0, 1, 1], [], []>} : vector<8x256xf32>, vector<256x64xf32>, vector<8x64xf32> -> vector<8x64xf32>
    %c64 = arith.constant 64 : index
    %c0_39 = arith.constant 0 : index
    %37 = vector.load %arg17[%c64, %c0_39] : memref<72x256xf32, #tpu.memory_space<vmem>>, vector<8x64xf32>
    tpu.vector_store %arg17[%c64, %c0_39], %36 {strides = array<i32>} : memref<72x256xf32, #tpu.memory_space<vmem>>, vector<8x64xf32>,
    %c0_40 = arith.constant 0 : index
    %c0_41 = arith.constant 0 : index
    %38 = vector.load %arg3[%c0_40, %c0_41] : memref<8x72xf32, #tpu.memory_space<vmem>>, vector<8x72xf32>
    %c0_42 = arith.constant 0 : index
    %c0_43 = arith.constant 0 : index
    %39 = vector.load %arg17[%c0_42, %c0_43] : memref<72x256xf32, #tpu.memory_space<vmem>>, vector<72x64xf32>
    %cst_44 = arith.constant dense<0.000000e+00> : vector<8x64xf32>
    %40 = tpu.matmul %38, %39, %cst_44 {dimension_numbers = #tpu.dot_dimension_numbers<[1], [0], [0], [1], [0, 0, 1, 1], [], []>} : vector<8x72xf32>, vector<72x64xf32>, vector<8x64xf32> -> vector<8x64xf32>
    %c0_45 = arith.constant 0 : index
    %c0_46 = arith.constant 0 : index
    %c0_47 = arith.constant 0 : index
    %41 = vector.load %arg4[%c0_45, %c0_46, %c0_47] : memref<1x8x1xf32, #tpu.memory_space<vmem>>, vector<1x8x1xf32>
    %42 = vector.shape_cast %41 : vector<1x8x1xf32> to vector<8x1xf32>
    %43 = vector.broadcast %42 : vector<8x1xf32> to vector<8x64xf32>
    %44 = arith.addf %40, %43 : vector<8x64xf32>
    %cst_48 = arith.constant 0.000000e+00 : f32
    %45 = vector.broadcast %cst_48 : f32 to vector<8x64xf32>
    %46 = arith.cmpf oge, %44, %45 : vector<8x64xf32>
    %cst_49 = arith.constant 2.000000e-01 : f32
    %47 = vector.broadcast %cst_49 : f32 to vector<8x64xf32>
    %48 = arith.mulf %47, %44 : vector<8x64xf32>
    %49 = arith.select %46, %44, %48 : vector<8x64xi1>, vector<8x64xf32>
    %c0_50 = arith.constant 0 : index
    %c0_51 = arith.constant 0 : index
    %50 = vector.load %arg5[%c0_50, %c0_51] : memref<8x64xf32, #tpu.memory_space<vmem>>, vector<8x64xf32>
    %51 = arith.addf %49, %50 : vector<8x64xf32>
    %c0_52 = arith.constant 0 : index
    %c0_53 = arith.constant 0 : index
    %c0_54 = arith.constant 0 : index
    %52 = vector.load %arg6[%c0_52, %c0_53, %c0_54] : memref<9x64x16xf32, #tpu.memory_space<vmem>>, vector<1x64x16xf32>
    %53 = vector.shape_cast %52 : vector<1x64x16xf32> to vector<64x16xf32>
    %cst_55 = arith.constant dense<0.000000e+00> : vector<8x16xf32>
    %54 = tpu.matmul %51, %53, %cst_55 {dimension_numbers = #tpu.dot_dimension_numbers<[1], [0], [0], [1], [0, 0, 1, 1], [], []>} : vector<8x64xf32>, vector<64x16xf32>, vector<8x16xf32> -> vector<8x16xf32>
    %c0_56 = arith.constant 0 : index
    %c0_57 = arith.constant 0 : index
    %55 = vector.load %arg17[%c0_56, %c0_57] : memref<72x256xf32, #tpu.memory_space<vmem>>, vector<8x16xf32>
    tpu.vector_store %arg17[%c0_56, %c0_57], %54 {strides = array<i32>} : memref<72x256xf32, #tpu.memory_space<vmem>>, vector<8x16xf32>,
    %c1_58 = arith.constant 1 : index
    %c0_59 = arith.constant 0 : index
    %c0_60 = arith.constant 0 : index
    %56 = vector.load %arg6[%c1_58, %c0_59, %c0_60] : memref<9x64x16xf32, #tpu.memory_space<vmem>>, vector<1x64x16xf32>
    %57 = vector.shape_cast %56 : vector<1x64x16xf32> to vector<64x16xf32>
    %cst_61 = arith.constant dense<0.000000e+00> : vector<8x16xf32>
    %58 = tpu.matmul %51, %57, %cst_61 {dimension_numbers = #tpu.dot_dimension_numbers<[1], [0], [0], [1], [0, 0, 1, 1], [], []>} : vector<8x64xf32>, vector<64x16xf32>, vector<8x16xf32> -> vector<8x16xf32>
    %c8_62 = arith.constant 8 : index
    %c0_63 = arith.constant 0 : index
    %59 = vector.load %arg17[%c8_62, %c0_63] : memref<72x256xf32, #tpu.memory_space<vmem>>, vector<8x16xf32>
    tpu.vector_store %arg17[%c8_62, %c0_63], %58 {strides = array<i32>} : memref<72x256xf32, #tpu.memory_space<vmem>>, vector<8x16xf32>,
    %c2_64 = arith.constant 2 : index
    %c0_65 = arith.constant 0 : index
    %c0_66 = arith.constant 0 : index
    %60 = vector.load %arg6[%c2_64, %c0_65, %c0_66] : memref<9x64x16xf32, #tpu.memory_space<vmem>>, vector<1x64x16xf32>
    %61 = vector.shape_cast %60 : vector<1x64x16xf32> to vector<64x16xf32>
    %cst_67 = arith.constant dense<0.000000e+00> : vector<8x16xf32>
    %62 = tpu.matmul %51, %61, %cst_67 {dimension_numbers = #tpu.dot_dimension_numbers<[1], [0], [0], [1], [0, 0, 1, 1], [], []>} : vector<8x64xf32>, vector<64x16xf32>, vector<8x16xf32> -> vector<8x16xf32>
    %c16_68 = arith.constant 16 : index
    %c0_69 = arith.constant 0 : index
    %63 = vector.load %arg17[%c16_68, %c0_69] : memref<72x256xf32, #tpu.memory_space<vmem>>, vector<8x16xf32>
    tpu.vector_store %arg17[%c16_68, %c0_69], %62 {strides = array<i32>} : memref<72x256xf32, #tpu.memory_space<vmem>>, vector<8x16xf32>,
    %c3_70 = arith.constant 3 : index
    %c0_71 = arith.constant 0 : index
    %c0_72 = arith.constant 0 : index
    %64 = vector.load %arg6[%c3_70, %c0_71, %c0_72] : memref<9x64x16xf32, #tpu.memory_space<vmem>>, vector<1x64x16xf32>
    %65 = vector.shape_cast %64 : vector<1x64x16xf32> to vector<64x16xf32>
    %cst_73 = arith.constant dense<0.000000e+00> : vector<8x16xf32>
    %66 = tpu.matmul %51, %65, %cst_73 {dimension_numbers = #tpu.dot_dimension_numbers<[1], [0], [0], [1], [0, 0, 1, 1], [], []>} : vector<8x64xf32>, vector<64x16xf32>, vector<8x16xf32> -> vector<8x16xf32>
    %c24_74 = arith.constant 24 : index
    %c0_75 = arith.constant 0 : index
    %67 = vector.load %arg17[%c24_74, %c0_75] : memref<72x256xf32, #tpu.memory_space<vmem>>, vector<8x16xf32>
    tpu.vector_store %arg17[%c24_74, %c0_75], %66 {strides = array<i32>} : memref<72x256xf32, #tpu.memory_space<vmem>>, vector<8x16xf32>,
    %c4_76 = arith.constant 4 : index
    %c0_77 = arith.constant 0 : index
    %c0_78 = arith.constant 0 : index
    %68 = vector.load %arg6[%c4_76, %c0_77, %c0_78] : memref<9x64x16xf32, #tpu.memory_space<vmem>>, vector<1x64x16xf32>
    %69 = vector.shape_cast %68 : vector<1x64x16xf32> to vector<64x16xf32>
    %cst_79 = arith.constant dense<0.000000e+00> : vector<8x16xf32>
    %70 = tpu.matmul %51, %69, %cst_79 {dimension_numbers = #tpu.dot_dimension_numbers<[1], [0], [0], [1], [0, 0, 1, 1], [], []>} : vector<8x64xf32>, vector<64x16xf32>, vector<8x16xf32> -> vector<8x16xf32>
    %c32_80 = arith.constant 32 : index
    %c0_81 = arith.constant 0 : index
    %71 = vector.load %arg17[%c32_80, %c0_81] : memref<72x256xf32, #tpu.memory_space<vmem>>, vector<8x16xf32>
    tpu.vector_store %arg17[%c32_80, %c0_81], %70 {strides = array<i32>} : memref<72x256xf32, #tpu.memory_space<vmem>>, vector<8x16xf32>,
    %c5_82 = arith.constant 5 : index
    %c0_83 = arith.constant 0 : index
    %c0_84 = arith.constant 0 : index
    %72 = vector.load %arg6[%c5_82, %c0_83, %c0_84] : memref<9x64x16xf32, #tpu.memory_space<vmem>>, vector<1x64x16xf32>
    %73 = vector.shape_cast %72 : vector<1x64x16xf32> to vector<64x16xf32>
    %cst_85 = arith.constant dense<0.000000e+00> : vector<8x16xf32>
    %74 = tpu.matmul %51, %73, %cst_85 {dimension_numbers = #tpu.dot_dimension_numbers<[1], [0], [0], [1], [0, 0, 1, 1], [], []>} : vector<8x64xf32>, vector<64x16xf32>, vector<8x16xf32> -> vector<8x16xf32>
    %c40_86 = arith.constant 40 : index
    %c0_87 = arith.constant 0 : index
    %75 = vector.load %arg17[%c40_86, %c0_87] : memref<72x256xf32, #tpu.memory_space<vmem>>, vector<8x16xf32>
    tpu.vector_store %arg17[%c40_86, %c0_87], %74 {strides = array<i32>} : memref<72x256xf32, #tpu.memory_space<vmem>>, vector<8x16xf32>,
    %c6_88 = arith.constant 6 : index
    %c0_89 = arith.constant 0 : index
    %c0_90 = arith.constant 0 : index
    %76 = vector.load %arg6[%c6_88, %c0_89, %c0_90] : memref<9x64x16xf32, #tpu.memory_space<vmem>>, vector<1x64x16xf32>
    %77 = vector.shape_cast %76 : vector<1x64x16xf32> to vector<64x16xf32>
    %cst_91 = arith.constant dense<0.000000e+00> : vector<8x16xf32>
    %78 = tpu.matmul %51, %77, %cst_91 {dimension_numbers = #tpu.dot_dimension_numbers<[1], [0], [0], [1], [0, 0, 1, 1], [], []>} : vector<8x64xf32>, vector<64x16xf32>, vector<8x16xf32> -> vector<8x16xf32>
    %c48_92 = arith.constant 48 : index
    %c0_93 = arith.constant 0 : index
    %79 = vector.load %arg17[%c48_92, %c0_93] : memref<72x256xf32, #tpu.memory_space<vmem>>, vector<8x16xf32>
    tpu.vector_store %arg17[%c48_92, %c0_93], %78 {strides = array<i32>} : memref<72x256xf32, #tpu.memory_space<vmem>>, vector<8x16xf32>,
    %c7_94 = arith.constant 7 : index
    %c0_95 = arith.constant 0 : index
    %c0_96 = arith.constant 0 : index
    %80 = vector.load %arg6[%c7_94, %c0_95, %c0_96] : memref<9x64x16xf32, #tpu.memory_space<vmem>>, vector<1x64x16xf32>
    %81 = vector.shape_cast %80 : vector<1x64x16xf32> to vector<64x16xf32>
    %cst_97 = arith.constant dense<0.000000e+00> : vector<8x16xf32>
    %82 = tpu.matmul %51, %81, %cst_97 {dimension_numbers = #tpu.dot_dimension_numbers<[1], [0], [0], [1], [0, 0, 1, 1], [], []>} : vector<8x64xf32>, vector<64x16xf32>, vector<8x16xf32> -> vector<8x16xf32>
    %c56_98 = arith.constant 56 : index
    %c0_99 = arith.constant 0 : index
    %83 = vector.load %arg17[%c56_98, %c0_99] : memref<72x256xf32, #tpu.memory_space<vmem>>, vector<8x16xf32>
    tpu.vector_store %arg17[%c56_98, %c0_99], %82 {strides = array<i32>} : memref<72x256xf32, #tpu.memory_space<vmem>>, vector<8x16xf32>,
    %c8_100 = arith.constant 8 : index
    %c0_101 = arith.constant 0 : index
    %c0_102 = arith.constant 0 : index
    %84 = vector.load %arg6[%c8_100, %c0_101, %c0_102] : memref<9x64x16xf32, #tpu.memory_space<vmem>>, vector<1x64x16xf32>
    %85 = vector.shape_cast %84 : vector<1x64x16xf32> to vector<64x16xf32>
    %cst_103 = arith.constant dense<0.000000e+00> : vector<8x16xf32>
    %86 = tpu.matmul %51, %85, %cst_103 {dimension_numbers = #tpu.dot_dimension_numbers<[1], [0], [0], [1], [0, 0, 1, 1], [], []>} : vector<8x64xf32>, vector<64x16xf32>, vector<8x16xf32> -> vector<8x16xf32>
    %c64_104 = arith.constant 64 : index
    %c0_105 = arith.constant 0 : index
    %87 = vector.load %arg17[%c64_104, %c0_105] : memref<72x256xf32, #tpu.memory_space<vmem>>, vector<8x16xf32>
    tpu.vector_store %arg17[%c64_104, %c0_105], %86 {strides = array<i32>} : memref<72x256xf32, #tpu.memory_space<vmem>>, vector<8x16xf32>,
    %c0_106 = arith.constant 0 : index
    %c0_107 = arith.constant 0 : index
    %88 = vector.load %arg7[%c0_106, %c0_107] : memref<8x72xf32, #tpu.memory_space<vmem>>, vector<8x72xf32>
    %c0_108 = arith.constant 0 : index
    %c0_109 = arith.constant 0 : index
    %89 = vector.load %arg17[%c0_108, %c0_109] : memref<72x256xf32, #tpu.memory_space<vmem>>, vector<72x16xf32>
    %cst_110 = arith.constant dense<0.000000e+00> : vector<8x16xf32>
    %90 = tpu.matmul %88, %89, %cst_110 {dimension_numbers = #tpu.dot_dimension_numbers<[1], [0], [0], [1], [0, 0, 1, 1], [], []>} : vector<8x72xf32>, vector<72x16xf32>, vector<8x16xf32> -> vector<8x16xf32>
    %c0_111 = arith.constant 0 : index
    %c0_112 = arith.constant 0 : index
    %c0_113 = arith.constant 0 : index
    %91 = vector.load %arg8[%c0_111, %c0_112, %c0_113] : memref<1x8x1xf32, #tpu.memory_space<vmem>>, vector<1x8x1xf32>
    %92 = vector.shape_cast %91 : vector<1x8x1xf32> to vector<8x1xf32>
    %93 = vector.broadcast %92 : vector<8x1xf32> to vector<8x16xf32>
    %94 = arith.addf %90, %93 : vector<8x16xf32>
    %cst_114 = arith.constant 0.000000e+00 : f32
    %95 = vector.broadcast %cst_114 : f32 to vector<8x16xf32>
    %96 = arith.cmpf oge, %94, %95 : vector<8x16xf32>
    %cst_115 = arith.constant 2.000000e-01 : f32
    %97 = vector.broadcast %cst_115 : f32 to vector<8x16xf32>
    %98 = arith.mulf %97, %94 : vector<8x16xf32>
    %99 = arith.select %96, %94, %98 : vector<8x16xi1>, vector<8x16xf32>
    %c0_116 = arith.constant 0 : index
    %c0_117 = arith.constant 0 : index
    %100 = vector.load %arg9[%c0_116, %c0_117] : memref<8x16xf32, #tpu.memory_space<vmem>>, vector<8x16xf32>
    %101 = arith.addf %99, %100 : vector<8x16xf32>
    %c0_118 = arith.constant 0 : index
    %c0_119 = arith.constant 0 : index
    %c0_120 = arith.constant 0 : index
    %102 = vector.load %arg10[%c0_118, %c0_119, %c0_120] : memref<9x16x64xf32, #tpu.memory_space<vmem>>, vector<1x16x64xf32>
    %103 = vector.shape_cast %102 : vector<1x16x64xf32> to vector<16x64xf32>
    %cst_121 = arith.constant dense<0.000000e+00> : vector<8x64xf32>
    %104 = tpu.matmul %101, %103, %cst_121 {dimension_numbers = #tpu.dot_dimension_numbers<[1], [0], [0], [1], [0, 0, 1, 1], [], []>} : vector<8x16xf32>, vector<16x64xf32>, vector<8x64xf32> -> vector<8x64xf32>
    %c0_122 = arith.constant 0 : index
    %c0_123 = arith.constant 0 : index
    %105 = vector.load %arg17[%c0_122, %c0_123] : memref<72x256xf32, #tpu.memory_space<vmem>>, vector<8x64xf32>
    tpu.vector_store %arg17[%c0_122, %c0_123], %104 {strides = array<i32>} : memref<72x256xf32, #tpu.memory_space<vmem>>, vector<8x64xf32>,
    %c1_124 = arith.constant 1 : index
    %c0_125 = arith.constant 0 : index
    %c0_126 = arith.constant 0 : index
    %106 = vector.load %arg10[%c1_124, %c0_125, %c0_126] : memref<9x16x64xf32, #tpu.memory_space<vmem>>, vector<1x16x64xf32>
    %107 = vector.shape_cast %106 : vector<1x16x64xf32> to vector<16x64xf32>
    %cst_127 = arith.constant dense<0.000000e+00> : vector<8x64xf32>
    %108 = tpu.matmul %101, %107, %cst_127 {dimension_numbers = #tpu.dot_dimension_numbers<[1], [0], [0], [1], [0, 0, 1, 1], [], []>} : vector<8x16xf32>, vector<16x64xf32>, vector<8x64xf32> -> vector<8x64xf32>
    %c8_128 = arith.constant 8 : index
    %c0_129 = arith.constant 0 : index
    %109 = vector.load %arg17[%c8_128, %c0_129] : memref<72x256xf32, #tpu.memory_space<vmem>>, vector<8x64xf32>
    tpu.vector_store %arg17[%c8_128, %c0_129], %108 {strides = array<i32>} : memref<72x256xf32, #tpu.memory_space<vmem>>, vector<8x64xf32>,
    %c2_130 = arith.constant 2 : index
    %c0_131 = arith.constant 0 : index
    %c0_132 = arith.constant 0 : index
    %110 = vector.load %arg10[%c2_130, %c0_131, %c0_132] : memref<9x16x64xf32, #tpu.memory_space<vmem>>, vector<1x16x64xf32>
    %111 = vector.shape_cast %110 : vector<1x16x64xf32> to vector<16x64xf32>
    %cst_133 = arith.constant dense<0.000000e+00> : vector<8x64xf32>
    %112 = tpu.matmul %101, %111, %cst_133 {dimension_numbers = #tpu.dot_dimension_numbers<[1], [0], [0], [1], [0, 0, 1, 1], [], []>} : vector<8x16xf32>, vector<16x64xf32>, vector<8x64xf32> -> vector<8x64xf32>
    %c16_134 = arith.constant 16 : index
    %c0_135 = arith.constant 0 : index
    %113 = vector.load %arg17[%c16_134, %c0_135] : memref<72x256xf32, #tpu.memory_space<vmem>>, vector<8x64xf32>
    tpu.vector_store %arg17[%c16_134, %c0_135], %112 {strides = array<i32>} : memref<72x256xf32, #tpu.memory_space<vmem>>, vector<8x64xf32>,
    %c3_136 = arith.constant 3 : index
    %c0_137 = arith.constant 0 : index
    %c0_138 = arith.constant 0 : index
    %114 = vector.load %arg10[%c3_136, %c0_137, %c0_138] : memref<9x16x64xf32, #tpu.memory_space<vmem>>, vector<1x16x64xf32>
    %115 = vector.shape_cast %114 : vector<1x16x64xf32> to vector<16x64xf32>
    %cst_139 = arith.constant dense<0.000000e+00> : vector<8x64xf32>
    %116 = tpu.matmul %101, %115, %cst_139 {dimension_numbers = #tpu.dot_dimension_numbers<[1], [0], [0], [1], [0, 0, 1, 1], [], []>} : vector<8x16xf32>, vector<16x64xf32>, vector<8x64xf32> -> vector<8x64xf32>
    %c24_140 = arith.constant 24 : index
    %c0_141 = arith.constant 0 : index
    %117 = vector.load %arg17[%c24_140, %c0_141] : memref<72x256xf32, #tpu.memory_space<vmem>>, vector<8x64xf32>
    tpu.vector_store %arg17[%c24_140, %c0_141], %116 {strides = array<i32>} : memref<72x256xf32, #tpu.memory_space<vmem>>, vector<8x64xf32>,
    %c4_142 = arith.constant 4 : index
    %c0_143 = arith.constant 0 : index
    %c0_144 = arith.constant 0 : index
    %118 = vector.load %arg10[%c4_142, %c0_143, %c0_144] : memref<9x16x64xf32, #tpu.memory_space<vmem>>, vector<1x16x64xf32>
    %119 = vector.shape_cast %118 : vector<1x16x64xf32> to vector<16x64xf32>
    %cst_145 = arith.constant dense<0.000000e+00> : vector<8x64xf32>
    %120 = tpu.matmul %101, %119, %cst_145 {dimension_numbers = #tpu.dot_dimension_numbers<[1], [0], [0], [1], [0, 0, 1, 1], [], []>} : vector<8x16xf32>, vector<16x64xf32>, vector<8x64xf32> -> vector<8x64xf32>
    %c32_146 = arith.constant 32 : index
    %c0_147 = arith.constant 0 : index
    %121 = vector.load %arg17[%c32_146, %c0_147] : memref<72x256xf32, #tpu.memory_space<vmem>>, vector<8x64xf32>
    tpu.vector_store %arg17[%c32_146, %c0_147], %120 {strides = array<i32>} : memref<72x256xf32, #tpu.memory_space<vmem>>, vector<8x64xf32>,
    %c5_148 = arith.constant 5 : index
    %c0_149 = arith.constant 0 : index
    %c0_150 = arith.constant 0 : index
    %122 = vector.load %arg10[%c5_148, %c0_149, %c0_150] : memref<9x16x64xf32, #tpu.memory_space<vmem>>, vector<1x16x64xf32>
    %123 = vector.shape_cast %122 : vector<1x16x64xf32> to vector<16x64xf32>
    %cst_151 = arith.constant dense<0.000000e+00> : vector<8x64xf32>
    %124 = tpu.matmul %101, %123, %cst_151 {dimension_numbers = #tpu.dot_dimension_numbers<[1], [0], [0], [1], [0, 0, 1, 1], [], []>} : vector<8x16xf32>, vector<16x64xf32>, vector<8x64xf32> -> vector<8x64xf32>
    %c40_152 = arith.constant 40 : index
    %c0_153 = arith.constant 0 : index
    %125 = vector.load %arg17[%c40_152, %c0_153] : memref<72x256xf32, #tpu.memory_space<vmem>>, vector<8x64xf32>
    tpu.vector_store %arg17[%c40_152, %c0_153], %124 {strides = array<i32>} : memref<72x256xf32, #tpu.memory_space<vmem>>, vector<8x64xf32>,
    %c6_154 = arith.constant 6 : index
    %c0_155 = arith.constant 0 : index
    %c0_156 = arith.constant 0 : index
    %126 = vector.load %arg10[%c6_154, %c0_155, %c0_156] : memref<9x16x64xf32, #tpu.memory_space<vmem>>, vector<1x16x64xf32>
    %127 = vector.shape_cast %126 : vector<1x16x64xf32> to vector<16x64xf32>
    %cst_157 = arith.constant dense<0.000000e+00> : vector<8x64xf32>
    %128 = tpu.matmul %101, %127, %cst_157 {dimension_numbers = #tpu.dot_dimension_numbers<[1], [0], [0], [1], [0, 0, 1, 1], [], []>} : vector<8x16xf32>, vector<16x64xf32>, vector<8x64xf32> -> vector<8x64xf32>
    %c48_158 = arith.constant 48 : index
    %c0_159 = arith.constant 0 : index
    %129 = vector.load %arg17[%c48_158, %c0_159] : memref<72x256xf32, #tpu.memory_space<vmem>>, vector<8x64xf32>
    tpu.vector_store %arg17[%c48_158, %c0_159], %128 {strides = array<i32>} : memref<72x256xf32, #tpu.memory_space<vmem>>, vector<8x64xf32>,
    %c7_160 = arith.constant 7 : index
    %c0_161 = arith.constant 0 : index
    %c0_162 = arith.constant 0 : index
    %130 = vector.load %arg10[%c7_160, %c0_161, %c0_162] : memref<9x16x64xf32, #tpu.memory_space<vmem>>, vector<1x16x64xf32>
    %131 = vector.shape_cast %130 : vector<1x16x64xf32> to vector<16x64xf32>
    %cst_163 = arith.constant dense<0.000000e+00> : vector<8x64xf32>
    %132 = tpu.matmul %101, %131, %cst_163 {dimension_numbers = #tpu.dot_dimension_numbers<[1], [0], [0], [1], [0, 0, 1, 1], [], []>} : vector<8x16xf32>, vector<16x64xf32>, vector<8x64xf32> -> vector<8x64xf32>
    %c56_164 = arith.constant 56 : index
    %c0_165 = arith.constant 0 : index
    %133 = vector.load %arg17[%c56_164, %c0_165] : memref<72x256xf32, #tpu.memory_space<vmem>>, vector<8x64xf32>
    tpu.vector_store %arg17[%c56_164, %c0_165], %132 {strides = array<i32>} : memref<72x256xf32, #tpu.memory_space<vmem>>, vector<8x64xf32>,
    %c8_166 = arith.constant 8 : index
    %c0_167 = arith.constant 0 : index
    %c0_168 = arith.constant 0 : index
    %134 = vector.load %arg10[%c8_166, %c0_167, %c0_168] : memref<9x16x64xf32, #tpu.memory_space<vmem>>, vector<1x16x64xf32>
    %135 = vector.shape_cast %134 : vector<1x16x64xf32> to vector<16x64xf32>
    %cst_169 = arith.constant dense<0.000000e+00> : vector<8x64xf32>
    %136 = tpu.matmul %101, %135, %cst_169 {dimension_numbers = #tpu.dot_dimension_numbers<[1], [0], [0], [1], [0, 0, 1, 1], [], []>} : vector<8x16xf32>, vector<16x64xf32>, vector<8x64xf32> -> vector<8x64xf32>
    %c64_170 = arith.constant 64 : index
    %c0_171 = arith.constant 0 : index
    %137 = vector.load %arg17[%c64_170, %c0_171] : memref<72x256xf32, #tpu.memory_space<vmem>>, vector<8x64xf32>
    tpu.vector_store %arg17[%c64_170, %c0_171], %136 {strides = array<i32>} : memref<72x256xf32, #tpu.memory_space<vmem>>, vector<8x64xf32>,
    %c0_172 = arith.constant 0 : index
    %c0_173 = arith.constant 0 : index
    %138 = vector.load %arg11[%c0_172, %c0_173] : memref<8x72xf32, #tpu.memory_space<vmem>>, vector<8x72xf32>
    %c0_174 = arith.constant 0 : index
    %c0_175 = arith.constant 0 : index
    %139 = vector.load %arg17[%c0_174, %c0_175] : memref<72x256xf32, #tpu.memory_space<vmem>>, vector<72x64xf32>
    %cst_176 = arith.constant dense<0.000000e+00> : vector<8x64xf32>
    %140 = tpu.matmul %138, %139, %cst_176 {dimension_numbers = #tpu.dot_dimension_numbers<[1], [0], [0], [1], [0, 0, 1, 1], [], []>} : vector<8x72xf32>, vector<72x64xf32>, vector<8x64xf32> -> vector<8x64xf32>
    %c0_177 = arith.constant 0 : index
    %c0_178 = arith.constant 0 : index
    %c0_179 = arith.constant 0 : index
    %141 = vector.load %arg12[%c0_177, %c0_178, %c0_179] : memref<1x8x1xf32, #tpu.memory_space<vmem>>, vector<1x8x1xf32>
    %142 = vector.shape_cast %141 : vector<1x8x1xf32> to vector<8x1xf32>
    %143 = vector.broadcast %142 : vector<8x1xf32> to vector<8x64xf32>
    %144 = arith.addf %140, %143 : vector<8x64xf32>
    %cst_180 = arith.constant 0.000000e+00 : f32
    %145 = vector.broadcast %cst_180 : f32 to vector<8x64xf32>
    %146 = arith.cmpf oge, %144, %145 : vector<8x64xf32>
    %cst_181 = arith.constant 2.000000e-01 : f32
    %147 = vector.broadcast %cst_181 : f32 to vector<8x64xf32>
    %148 = arith.mulf %147, %144 : vector<8x64xf32>
    %149 = arith.select %146, %144, %148 : vector<8x64xi1>, vector<8x64xf32>
    %c0_182 = arith.constant 0 : index
    %c0_183 = arith.constant 0 : index
    %c0_184 = arith.constant 0 : index
    %150 = vector.load %arg13[%c0_182, %c0_183, %c0_184] : memref<9x64x256xf32, #tpu.memory_space<vmem>>, vector<1x64x256xf32>
    %151 = vector.shape_cast %150 : vector<1x64x256xf32> to vector<64x256xf32>
    %cst_185 = arith.constant dense<0.000000e+00> : vector<8x256xf32>
    %152 = tpu.matmul %149, %151, %cst_185 {dimension_numbers = #tpu.dot_dimension_numbers<[1], [0], [0], [1], [0, 0, 1, 1], [], []>} : vector<8x64xf32>, vector<64x256xf32>, vector<8x256xf32> -> vector<8x256xf32>
    %c0_186 = arith.constant 0 : index
    %c0_187 = arith.constant 0 : index
    %153 = vector.load %arg17[%c0_186, %c0_187] : memref<72x256xf32, #tpu.memory_space<vmem>>, vector<8x256xf32>
    tpu.vector_store %arg17[%c0_186, %c0_187], %152 {strides = array<i32>} : memref<72x256xf32, #tpu.memory_space<vmem>>, vector<8x256xf32>,
    %c1_188 = arith.constant 1 : index
    %c0_189 = arith.constant 0 : index
    %c0_190 = arith.constant 0 : index
    %154 = vector.load %arg13[%c1_188, %c0_189, %c0_190] : memref<9x64x256xf32, #tpu.memory_space<vmem>>, vector<1x64x256xf32>
    %155 = vector.shape_cast %154 : vector<1x64x256xf32> to vector<64x256xf32>
    %cst_191 = arith.constant dense<0.000000e+00> : vector<8x256xf32>
    %156 = tpu.matmul %149, %155, %cst_191 {dimension_numbers = #tpu.dot_dimension_numbers<[1], [0], [0], [1], [0, 0, 1, 1], [], []>} : vector<8x64xf32>, vector<64x256xf32>, vector<8x256xf32> -> vector<8x256xf32>
    %c8_192 = arith.constant 8 : index
    %c0_193 = arith.constant 0 : index
    %157 = vector.load %arg17[%c8_192, %c0_193] : memref<72x256xf32, #tpu.memory_space<vmem>>, vector<8x256xf32>
    tpu.vector_store %arg17[%c8_192, %c0_193], %156 {strides = array<i32>} : memref<72x256xf32, #tpu.memory_space<vmem>>, vector<8x256xf32>,
    %c2_194 = arith.constant 2 : index
    %c0_195 = arith.constant 0 : index
    %c0_196 = arith.constant 0 : index
    %158 = vector.load %arg13[%c2_194, %c0_195, %c0_196] : memref<9x64x256xf32, #tpu.memory_space<vmem>>, vector<1x64x256xf32>
    %159 = vector.shape_cast %158 : vector<1x64x256xf32> to vector<64x256xf32>
    %cst_197 = arith.constant dense<0.000000e+00> : vector<8x256xf32>
    %160 = tpu.matmul %149, %159, %cst_197 {dimension_numbers = #tpu.dot_dimension_numbers<[1], [0], [0], [1], [0, 0, 1, 1], [], []>} : vector<8x64xf32>, vector<64x256xf32>, vector<8x256xf32> -> vector<8x256xf32>
    %c16_198 = arith.constant 16 : index
    %c0_199 = arith.constant 0 : index
    %161 = vector.load %arg17[%c16_198, %c0_199] : memref<72x256xf32, #tpu.memory_space<vmem>>, vector<8x256xf32>
    tpu.vector_store %arg17[%c16_198, %c0_199], %160 {strides = array<i32>} : memref<72x256xf32, #tpu.memory_space<vmem>>, vector<8x256xf32>,
    %c3_200 = arith.constant 3 : index
    %c0_201 = arith.constant 0 : index
    %c0_202 = arith.constant 0 : index
    %162 = vector.load %arg13[%c3_200, %c0_201, %c0_202] : memref<9x64x256xf32, #tpu.memory_space<vmem>>, vector<1x64x256xf32>
    %163 = vector.shape_cast %162 : vector<1x64x256xf32> to vector<64x256xf32>
    %cst_203 = arith.constant dense<0.000000e+00> : vector<8x256xf32>
    %164 = tpu.matmul %149, %163, %cst_203 {dimension_numbers = #tpu.dot_dimension_numbers<[1], [0], [0], [1], [0, 0, 1, 1], [], []>} : vector<8x64xf32>, vector<64x256xf32>, vector<8x256xf32> -> vector<8x256xf32>
    %c24_204 = arith.constant 24 : index
    %c0_205 = arith.constant 0 : index
    %165 = vector.load %arg17[%c24_204, %c0_205] : memref<72x256xf32, #tpu.memory_space<vmem>>, vector<8x256xf32>
    tpu.vector_store %arg17[%c24_204, %c0_205], %164 {strides = array<i32>} : memref<72x256xf32, #tpu.memory_space<vmem>>, vector<8x256xf32>,
    %c4_206 = arith.constant 4 : index
    %c0_207 = arith.constant 0 : index
    %c0_208 = arith.constant 0 : index
    %166 = vector.load %arg13[%c4_206, %c0_207, %c0_208] : memref<9x64x256xf32, #tpu.memory_space<vmem>>, vector<1x64x256xf32>
    %167 = vector.shape_cast %166 : vector<1x64x256xf32> to vector<64x256xf32>
    %cst_209 = arith.constant dense<0.000000e+00> : vector<8x256xf32>
    %168 = tpu.matmul %149, %167, %cst_209 {dimension_numbers = #tpu.dot_dimension_numbers<[1], [0], [0], [1], [0, 0, 1, 1], [], []>} : vector<8x64xf32>, vector<64x256xf32>, vector<8x256xf32> -> vector<8x256xf32>
    %c32_210 = arith.constant 32 : index
    %c0_211 = arith.constant 0 : index
    %169 = vector.load %arg17[%c32_210, %c0_211] : memref<72x256xf32, #tpu.memory_space<vmem>>, vector<8x256xf32>
    tpu.vector_store %arg17[%c32_210, %c0_211], %168 {strides = array<i32>} : memref<72x256xf32, #tpu.memory_space<vmem>>, vector<8x256xf32>,
    %c5_212 = arith.constant 5 : index
    %c0_213 = arith.constant 0 : index
    %c0_214 = arith.constant 0 : index
    %170 = vector.load %arg13[%c5_212, %c0_213, %c0_214] : memref<9x64x256xf32, #tpu.memory_space<vmem>>, vector<1x64x256xf32>
    %171 = vector.shape_cast %170 : vector<1x64x256xf32> to vector<64x256xf32>
    %cst_215 = arith.constant dense<0.000000e+00> : vector<8x256xf32>
    %172 = tpu.matmul %149, %171, %cst_215 {dimension_numbers = #tpu.dot_dimension_numbers<[1], [0], [0], [1], [0, 0, 1, 1], [], []>} : vector<8x64xf32>, vector<64x256xf32>, vector<8x256xf32> -> vector<8x256xf32>
    %c40_216 = arith.constant 40 : index
    %c0_217 = arith.constant 0 : index
    %173 = vector.load %arg17[%c40_216, %c0_217] : memref<72x256xf32, #tpu.memory_space<vmem>>, vector<8x256xf32>
    tpu.vector_store %arg17[%c40_216, %c0_217], %172 {strides = array<i32>} : memref<72x256xf32, #tpu.memory_space<vmem>>, vector<8x256xf32>,
    %c6_218 = arith.constant 6 : index
    %c0_219 = arith.constant 0 : index
    %c0_220 = arith.constant 0 : index
    %174 = vector.load %arg13[%c6_218, %c0_219, %c0_220] : memref<9x64x256xf32, #tpu.memory_space<vmem>>, vector<1x64x256xf32>
    %175 = vector.shape_cast %174 : vector<1x64x256xf32> to vector<64x256xf32>
    %cst_221 = arith.constant dense<0.000000e+00> : vector<8x256xf32>
    %176 = tpu.matmul %149, %175, %cst_221 {dimension_numbers = #tpu.dot_dimension_numbers<[1], [0], [0], [1], [0, 0, 1, 1], [], []>} : vector<8x64xf32>, vector<64x256xf32>, vector<8x256xf32> -> vector<8x256xf32>
    %c48_222 = arith.constant 48 : index
    %c0_223 = arith.constant 0 : index
    %177 = vector.load %arg17[%c48_222, %c0_223] : memref<72x256xf32, #tpu.memory_space<vmem>>, vector<8x256xf32>
    tpu.vector_store %arg17[%c48_222, %c0_223], %176 {strides = array<i32>} : memref<72x256xf32, #tpu.memory_space<vmem>>, vector<8x256xf32>,
    %c7_224 = arith.constant 7 : index
    %c0_225 = arith.constant 0 : index
    %c0_226 = arith.constant 0 : index
    %178 = vector.load %arg13[%c7_224, %c0_225, %c0_226] : memref<9x64x256xf32, #tpu.memory_space<vmem>>, vector<1x64x256xf32>
    %179 = vector.shape_cast %178 : vector<1x64x256xf32> to vector<64x256xf32>
    %cst_227 = arith.constant dense<0.000000e+00> : vector<8x256xf32>
    %180 = tpu.matmul %149, %179, %cst_227 {dimension_numbers = #tpu.dot_dimension_numbers<[1], [0], [0], [1], [0, 0, 1, 1], [], []>} : vector<8x64xf32>, vector<64x256xf32>, vector<8x256xf32> -> vector<8x256xf32>
    %c56_228 = arith.constant 56 : index
    %c0_229 = arith.constant 0 : index
    %181 = vector.load %arg17[%c56_228, %c0_229] : memref<72x256xf32, #tpu.memory_space<vmem>>, vector<8x256xf32>
    tpu.vector_store %arg17[%c56_228, %c0_229], %180 {strides = array<i32>} : memref<72x256xf32, #tpu.memory_space<vmem>>, vector<8x256xf32>,
    %c8_230 = arith.constant 8 : index
    %c0_231 = arith.constant 0 : index
    %c0_232 = arith.constant 0 : index
    %182 = vector.load %arg13[%c8_230, %c0_231, %c0_232] : memref<9x64x256xf32, #tpu.memory_space<vmem>>, vector<1x64x256xf32>
    %183 = vector.shape_cast %182 : vector<1x64x256xf32> to vector<64x256xf32>
    %cst_233 = arith.constant dense<0.000000e+00> : vector<8x256xf32>
    %184 = tpu.matmul %149, %183, %cst_233 {dimension_numbers = #tpu.dot_dimension_numbers<[1], [0], [0], [1], [0, 0, 1, 1], [], []>} : vector<8x64xf32>, vector<64x256xf32>, vector<8x256xf32> -> vector<8x256xf32>
    %c64_234 = arith.constant 64 : index
    %c0_235 = arith.constant 0 : index
    %185 = vector.load %arg17[%c64_234, %c0_235] : memref<72x256xf32, #tpu.memory_space<vmem>>, vector<8x256xf32>
    tpu.vector_store %arg17[%c64_234, %c0_235], %184 {strides = array<i32>} : memref<72x256xf32, #tpu.memory_space<vmem>>, vector<8x256xf32>,
    %c0_236 = arith.constant 0 : index
    %c0_237 = arith.constant 0 : index
    %186 = vector.load %arg14[%c0_236, %c0_237] : memref<3x72xf32, #tpu.memory_space<vmem>>, vector<3x72xf32>
    %c0_238 = arith.constant 0 : index
    %c0_239 = arith.constant 0 : index
    %187 = vector.load %arg17[%c0_238, %c0_239] : memref<72x256xf32, #tpu.memory_space<vmem>>, vector<72x256xf32>
    %cst_240 = arith.constant dense<0.000000e+00> : vector<3x256xf32>
    %188 = tpu.matmul %186, %187, %cst_240 {dimension_numbers = #tpu.dot_dimension_numbers<[1], [0], [0], [1], [0, 0, 1, 1], [], []>} : vector<3x72xf32>, vector<72x256xf32>, vector<3x256xf32> -> vector<3x256xf32>
    %c0_241 = arith.constant 0 : index
    %c0_242 = arith.constant 0 : index
    %c0_243 = arith.constant 0 : index
    %189 = vector.load %arg15[%c0_241, %c0_242, %c0_243] : memref<1x3x1xf32, #tpu.memory_space<vmem>>, vector<1x3x1xf32>
    %190 = vector.shape_cast %189 : vector<1x3x1xf32> to vector<3x1xf32>
    %191 = vector.broadcast %190 : vector<3x1xf32> to vector<3x256xf32>
    %192 = arith.addf %188, %191 : vector<3x256xf32>
    %c0_244 = arith.constant 0 : index
    %c0_245 = arith.constant 0 : index
    %c0_246 = arith.constant 0 : index
    %193 = vector.load %arg16[%c0_244, %c0_245, %c0_246] : memref<1x3x256xf32, #tpu.memory_space<vmem>>, vector<1x3x256xf32>
    %194 = vector.shape_cast %193 : vector<1x3x256xf32> to vector<3x256xf32>
    %195 = vector.shape_cast %192 : vector<3x256xf32> to vector<1x3x256xf32>
    tpu.vector_store %arg16[%c0_244, %c0_245, %c0_246], %195 {strides = array<i32>} : memref<1x3x256xf32, #tpu.memory_space<vmem>>, vector<1x3x256xf32>,
    return
  }
  func.func @transform_0(%arg0: i32) -> (i32, i32, i32) {
    %c0_i32 = arith.constant 0 : i32
    %c0_i32_0 = arith.constant 0 : i32
    %c0_i32_1 = arith.constant 0 : i32
    return %arg0, %c0_i32, %c0_i32_0 : i32, i32, i32
  }
  func.func @transform_1(%arg0: i32) -> (i32, i32, i32) {
    %c0_i32 = arith.constant 0 : i32
    %c0_i32_0 = arith.constant 0 : i32
    %c0_i32_1 = arith.constant 0 : i32
    %c0_i32_2 = arith.constant 0 : i32
    return %c0_i32, %c0_i32_0, %c0_i32_1 : i32, i32, i32
  }
  func.func @transform_2(%arg0: i32) -> (i32, i32) {
    %c0_i32 = arith.constant 0 : i32
    %c0_i32_0 = arith.constant 0 : i32
    %c0_i32_1 = arith.constant 0 : i32
    return %c0_i32, %c0_i32_0 : i32, i32
  }
  func.func @transform_3(%arg0: i32) -> (i32, i32, i32) {
    %c0_i32 = arith.constant 0 : i32
    %c0_i32_0 = arith.constant 0 : i32
    %c0_i32_1 = arith.constant 0 : i32
    return %arg0, %c0_i32, %c0_i32_0 : i32, i32, i32
  }
  func.func @transform_4(%arg0: i32) -> (i32, i32) {
    %c0_i32 = arith.constant 0 : i32
    %c0_i32_0 = arith.constant 0 : i32
    %c0_i32_1 = arith.constant 0 : i32
    return %c0_i32, %c0_i32_0 : i32, i32
  }
  func.func @transform_5(%arg0: i32) -> (i32, i32, i32) {
    %c0_i32 = arith.constant 0 : i32
    %c0_i32_0 = arith.constant 0 : i32
    %c0_i32_1 = arith.constant 0 : i32
    %c0_i32_2 = arith.constant 0 : i32
    return %c0_i32, %c0_i32_0, %c0_i32_1 : i32, i32, i32
  }
  func.func @transform_6(%arg0: i32) -> (i32, i32) {
    %c0_i32 = arith.constant 0 : i32
    %c0_i32_0 = arith.constant 0 : i32
    %c0_i32_1 = arith.constant 0 : i32
    return %c0_i32, %c0_i32_0 : i32, i32
  }
  func.func @transform_7(%arg0: i32) -> (i32, i32, i32) {
    %c0_i32 = arith.constant 0 : i32
    %c0_i32_0 = arith.constant 0 : i32
    %c0_i32_1 = arith.constant 0 : i32
    return %arg0, %c0_i32, %c0_i32_0 : i32, i32, i32
  }
  func.func @transform_8(%arg0: i32) -> (i32, i32) {
    %c0_i32 = arith.constant 0 : i32
    %c0_i32_0 = arith.constant 0 : i32
    %c0_i32_1 = arith.constant 0 : i32
    return %c0_i32, %c0_i32_0 : i32, i32
  }
  func.func @transform_9(%arg0: i32) -> (i32, i32, i32) {
    %c0_i32 = arith.constant 0 : i32
    %c0_i32_0 = arith.constant 0 : i32
    %c0_i32_1 = arith.constant 0 : i32
    %c0_i32_2 = arith.constant 0 : i32
    return %c0_i32, %c0_i32_0, %c0_i32_1 : i32, i32, i32
  }
  func.func @transform_10(%arg0: i32) -> (i32, i32) {
    %c0_i32 = arith.constant 0 : i32
    %c0_i32_0 = arith.constant 0 : i32
    %c0_i32_1 = arith.constant 0 : i32
    return %c0_i32, %c0_i32_0 : i32, i32
  }
  func.func @transform_11(%arg0: i32) -> (i32, i32, i32) {
    %c0_i32 = arith.constant 0 : i32
    %c0_i32_0 = arith.constant 0 : i32
    %c0_i32_1 = arith.constant 0 : i32
    return %arg0, %c0_i32, %c0_i32_0 : i32, i32, i32
  }
  func.func @transform_12(%arg0: i32) -> (i32, i32, i32) {
    %c0_i32 = arith.constant 0 : i32
    %c0_i32_0 = arith.constant 0 : i32
    %c0_i32_1 = arith.constant 0 : i32
    %c0_i32_2 = arith.constant 0 : i32
    return %c0_i32, %c0_i32_0, %c0_i32_1 : i32, i32, i32
  }
  func.func @transform_13(%arg0: i32) -> (i32, i32) {
    %c0_i32 = arith.constant 0 : i32
    %c0_i32_0 = arith.constant 0 : i32
    %c0_i32_1 = arith.constant 0 : i32
    return %c0_i32, %c0_i32_0 : i32, i32
  }
  func.func @transform_14(%arg0: i32) -> (i32, i32, i32) {
    %c0_i32 = arith.constant 0 : i32
    %c0_i32_0 = arith.constant 0 : i32
    %c0_i32_1 = arith.constant 0 : i32
    return %arg0, %c0_i32, %c0_i32_0 : i32, i32, i32
  }
  func.func @transform_15(%arg0: i32) -> (i32, i32, i32) {
    %c0_i32 = arith.constant 0 : i32
    %c0_i32_0 = arith.constant 0 : i32
    %c0_i32_1 = arith.constant 0 : i32
    return %arg0, %c0_i32, %c0_i32_0 : i32, i32, i32
  }
}

</mosaic_0001>

<bundles_post_ra>
// kernel: image_filter_forward_pallas.1
= control target key start
LH: loop header
LB: loop body
LE: loop exit
PB: predicated region body
PF: predicated region fallthrough
CT: control target
= control target key end

     0   :  { %s6912_s0 = inlined_call_operand.vmem [shape: f32[2,8,256], index: 0, kind: input, shape index: {}]   ;;  %s6913_s1 = inlined_call_operand.hbm [shape: f32[9,256,64], index: 1, kind: input, shape index: {}]   ;;  %s6914_s2 = inlined_call_operand.hbm [shape: f32[8,72], index: 2, kind: input, shape index: {}]   ;;  %s6915_s3 = inlined_call_operand.vmem [shape: f32[2,8,1], index: 3, kind: input, shape index: {}]   ;;  %s6916_s4 = inlined_call_operand.hbm [shape: f32[8,64], index: 4, kind: input, shape index: {}]   ;;  %s6917_s5 = inlined_call_operand.hbm [shape: f32[9,64,16], index: 5, kind: input, shape index: {}]   ;;  %s6918_s6 = inlined_call_operand.hbm [shape: f32[8,72], index: 6, kind: input, shape index: {}]   ;;  %s6919_s7 = inlined_call_operand.vmem [shape: f32[2,8,1], index: 7, kind: input, shape index: {}]   ;;  %s6920_s8 = inlined_call_operand.hbm [shape: f32[8,16], index: 8, kind: input, shape index: {}]   ;;  %s6921_s9 = inlined_call_operand.hbm [shape: f32[9,16,64], index: 9, kind: input, shape index: {}]   ;;  %s6922_s10 = inlined_call_operand.hbm [shape: f32[8,72], index: 10, kind: input, shape index: {}]   ;;  %s6923_s11 = inlined_call_operand.vmem [shape: f32[2,8,1], index: 11, kind: input, shape index: {}]   ;;  %s6924_s12 = inlined_call_operand.hbm [shape: f32[9,64,256], index: 12, kind: input, shape index: {}]   ;;  %s6925_s13 = inlined_call_operand.hbm [shape: f32[3,72], index: 13, kind: input, shape index: {}]   ;;  %s6926_s14 = inlined_call_operand.vmem [shape: f32[2,3,1], index: 14, kind: input, shape index: {}]   ;;  %s6927_s15 = inlined_call_operand.vmem [shape: f32[2,3,256], index: 15, kind: output, shape index: {}]  }
   0x1   :  { %6934 = sst [smem:[#allocation26_spill]] %s6914_s2 }
   0x2   :  { %6935 = sst [smem:[#allocation27_spill]] %s6926_s14 }
   0x3   :  { %6936 = sst [smem:[#allocation28_spill]] %s6927_s15 }
   0x4   :  { %20 = vsyncpa [#allocation4], 0 }
   0x5   :  { %21 = vsyncpa [#allocation6], 0 }
   0x6   :  { %22 = vsyncpa [#allocation9], 0 }
   0x7   :  { %23 = vsyncpa [#allocation12], 0 }
   0x8   :  { %24 = vsyncpa [#allocation15], 0 }
   0x9   :  { %25 = vsyncpa [#allocation18], 0  ;;  %s6390_s18 = smov 0  }
   0xa LB: > { %6937 = sst [smem:[#allocation25_spill]] %s6290_s18  ;;  %s6292_s19 = smov [#allocation5]   ;;  %s6290_s18 = sphi %s6390_s18, %s31_s18  }
   0xb   : > { %s428_s20 = sshll.u32 %s6292_s19, 4  ;;  %s6396_s21 = sadd.s32 4294967295, %s6290_s18   ;;  %s6401_s20 = int_to_ptr.vmem [resolvable:$true] %s428_s20 }
   0xc   : > { %p4426_p0 = scmp.ge.s32.totalorder %s6290_s18, 1  ;;  %p402_p1 = scmp.lt.s32.totalorder %s6290_s18, 3 }
   0xd   : > { %p6929_p2 = scmp.eq.s32.totalorder %s6396_s21, 0  ;;  %s6293_s23 = smov [#allocation8]  }
   0xe   : > { %p6403_p3 = pnand %p4426_p0, %p402_p1  ;;  %s449_s24 = sshll.u32 %s6293_s23, 4  ;;  %s6409_s24 = int_to_ptr.vmem [resolvable:$true] %s449_s24 }
   0xf   : > { %s6294_s26 = smov [#allocation11]   ;;  %s6295_s28 = smov [#allocation14]  }
  0x10   : > { %s6938_s22 = scalar_select %p6403_p3, 1, 0 }
  0x11   : > { %p5901_p4 = pneg %p6403_p3  ;;  %s474_s27 = sshll.u32 %s6294_s26, 4  ;;  %s6417_s27 = int_to_ptr.vmem [resolvable:$true] %s474_s27 }
  0x12   : > { %s6419_s29 = sshll.u32 %s6295_s28, 4  ;;  %s6940_s2 = sld [smem:[#allocation26_spill]]  ;;  %s499_s29 = int_to_ptr.vmem [resolvable:$true] %s6419_s29 }
  0x13   : > { %p6413_p5 = pnand %p6929_p2, %p5901_p4 }
  0x15   : > { %p6429_p7 = pneg %p6413_p5 }
  0x18   : > { %s5980_s17 = scalar_lea.hbm %s6940_s2, 128 }
  0x19   : > { %p5981_p6 = scmp.ne.s32.totalorder %s6940_s2, %s5980_s17  ;;  %p5987_p10 = scmp.lt.u32.totalorder %s5980_s17, %s6940_s2 }
  0x1b   : > { %p5983_p8 = pnand %p6429_p7, %p5981_p6 }
  0x1d   : > { %p5984_p9 = pneg %p5983_p8 }
  0x1f   : > { %p5989_p11 = pnand %p5987_p10, %p5984_p9 }
  0x21   : > { %5992 = shalt.err (!%p5989_p11)
}
  0x22   : > { %s5993_s30 = scalar_lea.vmem %s6401_s20, 128  ;;  %p6001_p1 = scmp.lt.s32.totalorder %s6401_s20, %s6401_s20 }
  0x23   : > { %p5994_p12 = scmp.ne.s32.totalorder %s6401_s20, %s5993_s30  ;;  %p6002_p4 = scmp.lt.s32.totalorder %s5993_s30, %s5993_s30 }
  0x25   : > { %p5996_p13 = pnand %p5994_p12, %p6429_p7  ;;  %p6003_p6 = por %p6002_p4, %p6001_p1 }
  0x27   : > { %p5997_p0 = pneg %p5996_p13 }
  0x29   : > { %p6004_p8 = pnand %p6003_p6, %p5997_p0 }
  0x2b   : > { %6007 = shalt.err (!%p6004_p8)
}
  0x2c   : > { %5907 = dma.hbm_to_vmem [thread:$0]  (!%p6413_p5), %s6940_s2, 128, %s6401_s20, [#allocation6]  }
  0x2d   : > { %s6008_s26 = scalar_lea.hbm %s6917_s5, 9216 }
  0x2e   : > { %p6009_p9 = scmp.ne.s32.totalorder %s6917_s5, %s6008_s26  ;;  %p6015_p12 = scmp.lt.u32.totalorder %s6008_s26, %s6917_s5 }
  0x30   : > { %p6011_p10 = pnand %p6009_p9, %p6429_p7 }
  0x32   : > { %p6012_p11 = pneg %p6011_p10 }
  0x34   : > { %p6017_p13 = pnand %p6015_p12, %p6012_p11 }
  0x36   : > { %6020 = shalt.err (!%p6017_p13)
}
  0x37   : > { %s6021_s20 = scalar_lea.vmem %s6409_s24, 9216  ;;  %p6029_p6 = scmp.lt.s32.totalorder %s6409_s24, %s6409_s24 }
  0x38   : > { %p6022_p0 = scmp.ne.s32.totalorder %s6409_s24, %s6021_s20  ;;  %p6030_p8 = scmp.lt.s32.totalorder %s6021_s20, %s6021_s20 }
  0x3a   : > { %p6024_p1 = pnand %p6022_p0, %p6429_p7  ;;  %p6031_p9 = por %p6030_p8, %p6029_p6 }
  0x3c   : > { %p6025_p4 = pneg %p6024_p1 }
  0x3e   : > { %p6032_p10 = pnand %p6031_p9, %p6025_p4 }
  0x40   : > { %6035 = shalt.err (!%p6032_p10)
}
  0x41   : > { %s6931_s15 = smov 128   ;;  %s6933_s14 = smov 8  }
  0x42   : > { %5913 = dma.hbm_to_vmem [thread:$0]  (!%p6413_p5), %s6917_s5, 9216, %s6409_s24, [#allocation9], %s6931_s15, %s6931_s15, %s6933_s14  }
  0x43   : > { %s6036_s26 = scalar_lea.hbm %s6920_s8, 128 }
  0x44   : > { %p6037_p11 = scmp.ne.s32.totalorder %s6920_s8, %s6036_s26  ;;  %p6043_p0 = scmp.lt.u32.totalorder %s6036_s26, %s6920_s8 }
  0x46   : > { %p6039_p12 = pnand %p6037_p11, %p6429_p7 }
  0x48   : > { %p6040_p13 = pneg %p6039_p12 }
  0x4a   : > { %p6045_p1 = pnand %p6043_p0, %p6040_p13 }
  0x4c   : > { %6048 = shalt.err (!%p6045_p1)
}
  0x4d   : > { %s6049_s24 = scalar_lea.vmem %s6417_s27, 128  ;;  %p6057_p9 = scmp.lt.s32.totalorder %s6417_s27, %s6417_s27 }
  0x4e   : > { %p6050_p4 = scmp.ne.s32.totalorder %s6417_s27, %s6049_s24  ;;  %p6058_p10 = scmp.lt.s32.totalorder %s6049_s24, %s6049_s24 }
  0x50   : > { %p6052_p6 = pnand %p6050_p4, %p6429_p7  ;;  %p6059_p11 = por %p6058_p10, %p6057_p9 }
  0x52   : > { %p6053_p8 = pneg %p6052_p6 }
  0x54   : > { %p6060_p12 = pnand %p6059_p11, %p6053_p8 }
  0x56   : > { %6063 = shalt.err (!%p6060_p12)
}
  0x57   : > { %5919 = dma.hbm_to_vmem [thread:$0]  (!%p6413_p5), %s6920_s8, 128, %s6417_s27, [#allocation12]  }
  0x58   : > { %s6064_s23 = scalar_lea.hbm %s6922_s10, 128 }
  0x59   : > { %p6065_p13 = scmp.ne.s32.totalorder %s6922_s10, %s6064_s23  ;;  %p6071_p4 = scmp.lt.u32.totalorder %s6064_s23, %s6922_s10 }
  0x5b   : > { %p6067_p0 = pnand %p6065_p13, %p6429_p7 }
  0x5d   : > { %p6068_p1 = pneg %p6067_p0 }
  0x5f   : > { %p6073_p6 = pnand %p6071_p4, %p6068_p1 }
  0x61   : > { %6076 = shalt.err (!%p6073_p6)
}
  0x62   : > { %s6077_s24 = scalar_lea.vmem %s499_s29, 128  ;;  %p6085_p11 = scmp.lt.s32.totalorder %s499_s29, %s499_s29 }
  0x63   : > { %p6078_p8 = scmp.ne.s32.totalorder %s499_s29, %s6077_s24  ;;  %p6086_p12 = scmp.lt.s32.totalorder %s6077_s24, %s6077_s24 }
  0x65   : > { %p6080_p9 = pnand %p6078_p8, %p6429_p7  ;;  %p6087_p2 = por %p6086_p12, %p6085_p11 }
  0x67   : > { %p6081_p10 = pneg %p6080_p9 }
  0x69   : > { %p6088_p3 = pnand %p6087_p2, %p6081_p10 }
  0x6b   : > { %6091 = shalt.err (!%p6088_p3)
}
  0x6c   : > { %5925 = dma.hbm_to_vmem [thread:$0]  (!%p6413_p5), %s6922_s10, 128, %s499_s29, [#allocation15]  }
  0x6d   : > { %s6298_s16 = smov [#allocation3]   ;;  %s6299_s19 = smov [#allocation7]  }
  0x6e   : > { %s414_s17 = sshll.u32 %s6298_s16, 4  ;;  %s439_s23 = sshll.u32 %s6299_s19, 4  ;;  %s415_s17 = int_to_ptr.vmem [resolvable:$true] %s414_s17  ;;  %s440_s23 = int_to_ptr.vmem [resolvable:$true] %s439_s23 }
  0x6f   : > { %s6092_s30 = scalar_lea.hbm %s6913_s1, 36864 }
  0x70   : > { %p6093_p2 = scmp.ne.s32.totalorder %s6913_s1, %s6092_s30  ;;  %p6099_p0 = scmp.lt.u32.totalorder %s6092_s30, %s6913_s1 }
  0x72   : > { %p6095_p3 = pnand %p6093_p2, %p6429_p7 }
  0x74   : > { %p6096_p13 = pneg %p6095_p3 }
  0x76   : > { %p6101_p1 = pnand %p6099_p0, %p6096_p13 }
  0x78   : > { %6104 = shalt.err (!%p6101_p1)
}
  0x79   : > { %s6105_s29 = scalar_lea.vmem %s415_s17, 36864  ;;  %p6113_p9 = scmp.lt.s32.totalorder %s415_s17, %s415_s17 }
  0x7a   : > { %p6106_p4 = scmp.ne.s32.totalorder %s415_s17, %s6105_s29  ;;  %p6114_p10 = scmp.lt.s32.totalorder %s6105_s29, %s6105_s29 }
  0x7c   : > { %p6108_p6 = pnand %p6106_p4, %p6429_p7  ;;  %p6115_p11 = por %p6114_p10, %p6113_p9 }
  0x7e   : > { %p6109_p8 = pneg %p6108_p6 }
  0x80   : > { %p6116_p12 = pnand %p6115_p11, %p6109_p8 }
  0x82   : > { %6119 = shalt.err (!%p6116_p12)
}
  0x83   : > { %s6942_s2 = smov 128   ;;  %s6120_s28 = scalar_lea.hbm %s6916_s4, 128 }
  0x84   : > { %5904 = dma.hbm_to_vmem [thread:$0]  (!%p6413_p5), %s6913_s1, 36864, %s415_s17, [#allocation4], %s6942_s2, %s6942_s2, %s6933_s14  }
  0x85   : > { %p6121_p2 = scmp.ne.s32.totalorder %s6916_s4, %s6120_s28  ;;  %p6127_p0 = scmp.lt.u32.totalorder %s6120_s28, %s6916_s4 }
  0x87   : > { %p6123_p3 = pnand %p6121_p2, %p6429_p7 }
  0x89   : > { %p6124_p13 = pneg %p6123_p3 }
  0x8b   : > { %p6129_p1 = pnand %p6127_p0, %p6124_p13 }
  0x8d   : > { %6132 = shalt.err (!%p6129_p1)
}
  0x8e   : > { %s6133_s29 = scalar_lea.vmem %s440_s23, 128  ;;  %p6141_p9 = scmp.lt.s32.totalorder %s440_s23, %s440_s23 }
  0x8f   : > { %p6134_p4 = scmp.ne.s32.totalorder %s440_s23, %s6133_s29  ;;  %p6142_p10 = scmp.lt.s32.totalorder %s6133_s29, %s6133_s29 }
  0x91   : > { %p6136_p6 = pnand %p6134_p4, %p6429_p7  ;;  %p6143_p11 = por %p6142_p10, %p6141_p9 }
  0x93   : > { %p6137_p8 = pneg %p6136_p6 }
  0x95   : > { %p6144_p12 = pnand %p6143_p11, %p6137_p8 }
  0x97   : > { %6147 = shalt.err (!%p6144_p12)
}
  0x98   : > { %5910 = dma.hbm_to_vmem [thread:$0]  (!%p6413_p5), %s6916_s4, 128, %s440_s23, [#allocation6]  }
  0x99   : > { %s6300_s16 = smov [#allocation10]   ;;  %s6301_s26 = smov [#allocation13]  }
  0x9a   : > { %s463_s19 = sshll.u32 %s6300_s16, 4  ;;  %s484_s28 = sshll.u32 %s6301_s26, 4  ;;  %s464_s19 = int_to_ptr.vmem [resolvable:$true] %s463_s19  ;;  %s485_s28 = int_to_ptr.vmem [resolvable:$true] %s484_s28 }
  0x9b   : > { %s6148_s24 = scalar_lea.hbm %s6918_s6, 128 }
  0x9c   : > { %p6149_p2 = scmp.ne.s32.totalorder %s6918_s6, %s6148_s24  ;;  %p6155_p0 = scmp.lt.u32.totalorder %s6148_s24, %s6918_s6 }
  0x9e   : > { %p6151_p3 = pnand %p6149_p2, %p6429_p7 }
  0xa0   : > { %p6152_p13 = pneg %p6151_p3 }
  0xa2   : > { %p6157_p1 = pnand %p6155_p0, %p6152_p13 }
  0xa4   : > { %6160 = shalt.err (!%p6157_p1)
}
  0xa5   : > { %s6161_s23 = scalar_lea.vmem %s464_s19, 128  ;;  %p6169_p9 = scmp.lt.s32.totalorder %s464_s19, %s464_s19 }
  0xa6   : > { %p6162_p4 = scmp.ne.s32.totalorder %s464_s19, %s6161_s23  ;;  %p6170_p10 = scmp.lt.s32.totalorder %s6161_s23, %s6161_s23 }
  0xa8   : > { %p6164_p6 = pnand %p6162_p4, %p6429_p7  ;;  %p6171_p11 = por %p6170_p10, %p6169_p9 }
  0xaa   : > { %p6165_p8 = pneg %p6164_p6 }
  0xac   : > { %p6172_p12 = pnand %p6171_p11, %p6165_p8 }
  0xae   : > { %6175 = shalt.err (!%p6172_p12)
}
  0xaf   : > { %5916 = dma.hbm_to_vmem [thread:$0]  (!%p6413_p5), %s6918_s6, 128, %s464_s19, [#allocation9]  }
  0xb0   : > { %s6176_s30 = scalar_lea.hbm %s6921_s9, 2304 }
  0xb1   : > { %p6177_p2 = scmp.ne.s32.totalorder %s6921_s9, %s6176_s30  ;;  %p6183_p0 = scmp.lt.u32.totalorder %s6176_s30, %s6921_s9 }
  0xb3   : > { %p6179_p3 = pnand %p6177_p2, %p6429_p7 }
  0xb5   : > { %p6180_p13 = pneg %p6179_p3 }
  0xb7   : > { %p6185_p1 = pnand %p6183_p0, %p6180_p13 }
  0xb9   : > { %6188 = shalt.err (!%p6185_p1)
}
  0xba   : > { %s6189_s17 = scalar_lea.vmem %s485_s28, 2304  ;;  %p6197_p9 = scmp.lt.s32.totalorder %s485_s28, %s485_s28 }
  0xbb   : > { %p6190_p4 = scmp.ne.s32.totalorder %s485_s28, %s6189_s17  ;;  %p6198_p10 = scmp.lt.s32.totalorder %s6189_s17, %s6189_s17 }
  0xbd   : > { %p6192_p6 = pnand %p6190_p4, %p6429_p7  ;;  %p6199_p11 = por %p6198_p10, %p6197_p9 }
  0xbf   : > { %p6193_p8 = pneg %p6192_p6 }
  0xc1   : > { %p6200_p12 = pnand %p6199_p11, %p6193_p8 }
  0xc3   : > { %6203 = shalt.err (!%p6200_p12)
}
  0xc4   : > { %s6943_s19 = smov 8   ;;  %s6302_s16 = smov [#allocation16]  }
  0xc5   : > { %5922 = dma.hbm_to_vmem [thread:$0]  (!%p6413_p5), %s6921_s9, 2304, %s485_s28, [#allocation12], %s6942_s2, %s6942_s2, %s6943_s19  }
  0xc6   : > { %s508_s14 = sshll.u32 %s6302_s16, 4  ;;  %s6204_s20 = scalar_lea.hbm %s6924_s12, 18432  ;;  %s509_s14 = int_to_ptr.vmem [resolvable:$true] %s508_s14 }
  0xc7   : > { %p6205_p2 = scmp.ne.s32.totalorder %s6924_s12, %s6204_s20  ;;  %p6211_p0 = scmp.lt.u32.totalorder %s6204_s20, %s6924_s12 }
  0xc9   : > { %p6207_p3 = pnand %p6205_p2, %p6429_p7 }
  0xcb   : > { %p6208_p13 = pneg %p6207_p3 }
  0xcd   : > { %p6213_p1 = pnand %p6211_p0, %p6208_p13 }
  0xcf   : > { %6216 = shalt.err (!%p6213_p1)
}
  0xd0   : > { %s6217_s2 = scalar_lea.vmem %s509_s14, 18432  ;;  %p6225_p9 = scmp.lt.s32.totalorder %s509_s14, %s509_s14 }
  0xd1   : > { %p6218_p4 = scmp.ne.s32.totalorder %s509_s14, %s6217_s2  ;;  %p6226_p10 = scmp.lt.s32.totalorder %s6217_s2, %s6217_s2 }
  0xd3   : > { %p6220_p6 = pnand %p6218_p4, %p6429_p7  ;;  %p6227_p11 = por %p6226_p10, %p6225_p9 }
  0xd5   : > { %p6221_p8 = pneg %p6220_p6 }
  0xd7   : > { %p6228_p12 = pnand %p6227_p11, %p6221_p8 }
  0xd9   : > { %6231 = shalt.err (!%p6228_p12)
}
  0xda   : > { %s6303_s28 = smov 256   ;;  %s6304_s19 = smov 16  }
  0xdb   : > { %5928 = dma.hbm_to_vmem [thread:$0]  (!%p6413_p5), %s6924_s12, 18432, %s509_s14, [#allocation15], %s6303_s28, %s6303_s28, %s6304_s19  }
  0xdc   : > { %s6305_s16 = smov [#allocation17]   ;;  %s6232_s24 = scalar_lea.hbm %s6925_s13, 64 }
  0xdd   : > { %s522_s26 = sshll.u32 %s6305_s16, 4  ;;  %p6233_p2 = scmp.ne.s32.totalorder %s6925_s13, %s6232_s24  ;;  %s523_s26 = int_to_ptr.vmem [resolvable:$true] %s522_s26 }
  0xde   : > { %p6239_p0 = scmp.lt.u32.totalorder %s6232_s24, %s6925_s13 }
  0xdf   : > { %p6235_p3 = pnand %p6233_p2, %p6429_p7 }
  0xe1   : > { %p6236_p13 = pneg %p6235_p3 }
  0xe3   : > { %p6241_p1 = pnand %p6239_p0, %p6236_p13 }
  0xe5   : > { %6244 = shalt.err (!%p6241_p1)
}
  0xe6   : > { %s6245_s14 = scalar_lea.vmem %s523_s26, 64  ;;  %p6253_p9 = scmp.lt.s32.totalorder %s523_s26, %s523_s26 }
  0xe7   : > { %p6246_p4 = scmp.ne.s32.totalorder %s523_s26, %s6245_s14  ;;  %p6254_p10 = scmp.lt.s32.totalorder %s6245_s14, %s6245_s14 }
  0xe9   : > { %p6248_p6 = pnand %p6246_p4, %p6429_p7  ;;  %p6255_p11 = por %p6254_p10, %p6253_p9 }
  0xeb   : > { %p6249_p8 = pneg %p6248_p6 }
  0xed   : > { %p6256_p12 = pnand %p6255_p11, %p6249_p8 }
  0xef   : > { %6259 = shalt.err (!%p6256_p12)
}
  0xf0   : > { %5931 = dma.hbm_to_vmem [thread:$0]  (!%p6413_p5), %s6925_s13, 64, %s523_s26, [#allocation18]  }
  0xf1   : > { %p6944_p2 = scmp.ne.s32.totalorder %s6938_s22, 0 }
  0xf2   : > { %p6945_p3 = scmp.eq.s32.totalorder (!%p6944_p2), %s6396_s21, 0 }
  0xf3   : > { %571 = sbr.rel (%p6944_p2) target bundleno = 2335 (0x91f), region = 80 }
  0xfa   : > { %6265 = dma.done.wait (%p6945_p3), [#allocation4], 36864   ;;  %p6946_p7 = pmov %p6945_p3 }
  0xfb   : > { %p6947_p13 = pmov %p6945_p3 }
  0xfc   : > { %6267 = vsyncadd (%p6946_p7), [#allocation4], 4294930432 }
  0xfd   : > { %6269 = dma.done.wait (%p6947_p13), [#allocation6], 256   ;;  %p6948_p0 = pmov %p6945_p3 }
  0xff   : > { %6271 = vsyncadd (%p6948_p0), [#allocation6], 4294967040  ;;  %p6949_p1 = pmov %p6948_p0 }
 0x100   : > { %p6950_p5 = pmov %p6948_p0 }
 0x101   : > { %6273 = dma.done.wait (%p6949_p1), [#allocation9], 9344  }
 0x102   : > { %6275 = vsyncadd (%p6950_p5), [#allocation9], 4294957952  ;;  %p6951_p4 = pmov %p6948_p0 }
 0x103   : > { %p6952_p6 = pmov %p6948_p0 }
 0x104   : > { %6277 = dma.done.wait (%p6951_p4), [#allocation12], 2432  }
 0x105   : > { %6279 = vsyncadd (%p6952_p6), [#allocation12], 4294964864  ;;  %p6953_p8 = pmov %p6948_p0 }
 0x106   : > { %p6954_p9 = pmov %p6948_p0 }
 0x107   : > { %6281 = dma.done.wait (%p6953_p8), [#allocation15], 18560  }
 0x108   : > { %6283 = vsyncadd (%p6954_p9), [#allocation15], 4294948736  ;;  %p6955_p10 = pmov %p6948_p0 }
 0x109   : > { %p6956_p11 = pmov %p6948_p0 }
 0x10a   : > { %6285 = dma.done.wait (%p6955_p10), [#allocation18], 64  }
 0x10b   : > { %6287 = vsyncadd (%p6956_p11), [#allocation18], 4294967232  ;;  %v715_v0 = vld [vmem:[#allocation3 + $0x80] sm:$0xff]  ;;  %v716_v1 = vld [vmem:[#allocation3 + $0x88] sm:$0xff]  ;;  %p671_p12 = scmp.lt.s32.totalorder %s6396_s21, 1  ;;  %vm801_vm0 = vcmask 523264  }
 0x10c   : > { %v820_v2 = vld [vmem:[#allocation3 + $0x180] sm:$0xff]  ;;  %v5242_v3 = vpack.c.bf16 %v716_v1, %v715_v0  ;;  %v821_v4 = vld [vmem:[#allocation3 + $0x188] sm:$0xff]  ;;  %v717_v11 = vld [vmem:[#allocation3 + $0x90] sm:$0xff]  ;;  %vm6307_vm1 = vmmov 0   ;;  %vm1651_vm2 = vcmask 588800   ;;  %vm1811_vm4 = vcmask 130048  }
 0x10d   : > { %v699_v5 = vld [vmem:[#allocation3] sm:$0xff]  ;;  %v700_v6 = vld [vmem:[#allocation3 + $0x8] sm:$0xff]  ;;  %v5274_v7 = vpack.c.bf16 %v821_v4, %v820_v2  ;;  %v718_v13 = vld [vmem:[#allocation3 + $0x98] sm:$0xff]  ;;  %s6961_s21 = smov (!%p671_p12, %s6396_s21), 1 }
 0x10e   : > { %v5244_v8 = vpack.c.bf16 %v700_v6, %v699_v5  ;;  %v804_v9 = vld [vmem:[#allocation3 + $0x100] sm:$0xff]  ;;  %v805_v10 = vld [vmem:[#allocation3 + $0x108] sm:$0xff]  ;;  %5243 = vmatprep.subr.bf16.mxu0 %v5242_v3  ;;  %v822_v14 = vld [vmem:[#allocation3 + $0x190] sm:$0xff]  ;;  %v5246_v16 = vpack.c.bf16 %v718_v13, %v717_v11  ;;  %s4490_s18 = sshll.u32 %s6961_s21, 4  ;;  %s6701_s15 = sshll.u32 %s6961_s21, 3 }
 0x10f   : > { %v5276_v12 = vpack.c.bf16 %v805_v10, %v804_v9  ;;  %v823_v15 = vld [vmem:[#allocation3 + $0x198] sm:$0xff]  ;;  %5275 = vmatprep.subr.bf16.mxu1 %v5274_v7  ;;  %v701_v18 = vld [vmem:[#allocation3 + $0x10] sm:$0xff]  ;;  %v719_v23 = vld [vmem:[#allocation3 + $0xa0] sm:$0xff]  ;;  %s6668_s23 = scalar_lea.vmem %s6912_s0, %s4490_s18  ;;  %s679_s30 = scalar_lea.vmem %s6915_s3, %s6701_s15 }
 0x110   : > { %5245 = vmatpush3.bf16.msra.mxu0 %v5244_v8  ;;  %v5278_v17 = vpack.c.bf16 %v823_v15, %v822_v14  ;;  %v702_v19 = vld [vmem:[#allocation3 + $0x18] sm:$0xff]  ;;  %v806_v20 = vld [vmem:[#allocation3 + $0x110] sm:$0xff]  ;;  %v720_v24 = vld [vmem:[#allocation3 + $0xa8] sm:$0xff]  ;;  %s683_s27 = scalar_lea.vmem %s6919_s7, %s6701_s15  ;;  %s687_s2 = scalar_lea.vmem %s6923_s11, %s6701_s15 }
 0x111   : > { %5277 = vmatpush3.bf16.msra.mxu1 %v5276_v12  ;;  %v5248_v21 = vpack.c.bf16 %v702_v19, %v701_v18  ;;  %v807_v22 = vld [vmem:[#allocation3 + $0x118] sm:$0xff]  ;;  %5247 = vmatprep.subr.bf16.mxu0 %v5246_v16  ;;  %v5250_v26 = vpack.c.bf16 %v720_v24, %v719_v23  ;;  %v824_v27 = vld [vmem:[#allocation3 + $0x1a0] sm:$0xff]  ;;  %v825_v28 = vld [vmem:[#allocation3 + $0x1a8] sm:$0xff]  ;;  %s4454_s14 = sshll.u32 %s6961_s21, 2  ;;  %s6957_s18 = sld [smem:[#allocation27_spill]] }
 0x112   : > { %5279 = vmatprep.subr.bf16.mxu1 %v5278_v17  ;;  %v5280_v25 = vpack.c.bf16 %v807_v22, %v806_v20  ;;  %v703_v29 = vld [vmem:[#allocation3 + $0x20] sm:$0xff]  ;;  %v5282_v30 = vpack.c.bf16 %v825_v28, %v824_v27  ;;  %v704_v31 = vld [vmem:[#allocation3 + $0x28] sm:$0xff]  ;;  %v721_v35 = vld [vmem:[#allocation3 + $0xb0] sm:$0xff] }
 0x113   : > { %v808_v32 = vld [vmem:[#allocation3 + $0x120] sm:$0xff]  ;;  %v809_v33 = vld [vmem:[#allocation3 + $0x128] sm:$0xff]  ;;  %v5252_v34 = vpack.c.bf16 %v704_v31, %v703_v29  ;;  %v722_v36 = vld [vmem:[#allocation3 + $0xb8] sm:$0xff] }
 0x114   : > { %5249 = vmatpush3.bf16.msra.mxu0 %v5248_v21  ;;  %v826_v37 = vld [vmem:[#allocation3 + $0x1b0] sm:$0xff]  ;;  %v5284_v38 = vpack.c.bf16 %v809_v33, %v808_v32  ;;  %v5254_v39 = vpack.c.bf16 %v722_v36, %v721_v35  ;;  %v827_v40 = vld [vmem:[#allocation3 + $0x1b8] sm:$0xff]  ;;  %v723_v46 = vld [vmem:[#allocation3 + $0xc0] sm:$0xff] }
 0x115   : > { %5281 = vmatpush3.bf16.msra.mxu1 %v5280_v25  ;;  %5251 = vmatprep.subr.bf16.mxu0 %v5250_v26  ;;  %v705_v41 = vld [vmem:[#allocation3 + $0x30] sm:$0xff]  ;;  %v706_v42 = vld [vmem:[#allocation3 + $0x38] sm:$0xff]  ;;  %v5286_v43 = vpack.c.bf16 %v827_v40, %v826_v37  ;;  %v724_v47 = vld [vmem:[#allocation3 + $0xc8] sm:$0xff] }
 0x116   : > { %5283 = vmatprep.subr.bf16.mxu1 %v5282_v30  ;;  %v810_v44 = vld [vmem:[#allocation3 + $0x130] sm:$0xff]  ;;  %v811_v45 = vld [vmem:[#allocation3 + $0x138] sm:$0xff]  ;;  %v828_v48 = vld [vmem:[#allocation3 + $0x1c0] sm:$0xff]  ;;  %v5256_v50 = vpack.c.bf16 %v706_v42, %v705_v41  ;;  %v5258_v52 = vpack.c.bf16 %v724_v47, %v723_v46 }
 0x117   : > { %v829_v49 = vld [vmem:[#allocation3 + $0x1c8] sm:$0xff]  ;;  %v5288_v51 = vpack.c.bf16 %v811_v45, %v810_v44  ;;  %v707_v53 = vld [vmem:[#allocation3 + $0x40] sm:$0xff]  ;;  %v725_v58 = vld [vmem:[#allocation3 + $0xd0] sm:$0xff]  ;;  %s691_s22 = scalar_lea.vmem %s6957_s18, %s4454_s14 }
 0x118   : > { %5253 = vmatpush3.bf16.msra.mxu0 %v5252_v34  ;;  %v708_v54 = vld [vmem:[#allocation3 + $0x48] sm:$0xff]  ;;  %v812_v55 = vld [vmem:[#allocation3 + $0x140] sm:$0xff]  ;;  %v5290_v56 = vpack.c.bf16 %v829_v49, %v828_v48  ;;  %v726_v59 = vld [vmem:[#allocation3 + $0xd8] sm:$0xff] }
 0x119   : > { %5285 = vmatpush3.bf16.msra.mxu1 %v5284_v38  ;;  %5255 = vmatprep.subr.bf16.mxu0 %v5254_v39  ;;  %v813_v57 = vld [vmem:[#allocation3 + $0x148] sm:$0xff]  ;;  %v830_v60 = vld [vmem:[#allocation3 + $0x1d0] sm:$0xff]  ;;  %v831_v61 = vld [vmem:[#allocation3 + $0x1d8] sm:$0xff]  ;;  %v5260_v62 = vpack.c.bf16 %v708_v54, %v707_v53  ;;  %v5262_v0 = vpack.c.bf16 %v726_v59, %v725_v58 }
 0x11a   : > { %5287 = vmatprep.subr.bf16.mxu1 %v5286_v43  ;;  %v5292_v63 = vpack.c.bf16 %v813_v57, %v812_v55  ;;  %v709_v1 = vld [vmem:[#allocation3 + $0x50] sm:$0xff]  ;;  %v710_v2 = vld [vmem:[#allocation3 + $0x58] sm:$0xff]  ;;  %v5294_v4 = vpack.c.bf16 %v831_v61, %v830_v60  ;;  %v727_v6 = vld [vmem:[#allocation3 + $0xe0] sm:$0xff] }
 0x11b   : > { %v814_v3 = vld [vmem:[#allocation3 + $0x150] sm:$0xff]  ;;  %v815_v5 = vld [vmem:[#allocation3 + $0x158] sm:$0xff]  ;;  %v728_v7 = vld [vmem:[#allocation3 + $0xe8] sm:$0xff]  ;;  %v5264_v10 = vpack.c.bf16 %v710_v2, %v709_v1 }
 0x11c   : > { %5257 = vmatpush3.bf16.msra.mxu0 %v5256_v50  ;;  %v832_v8 = vld [vmem:[#allocation3 + $0x1e0] sm:$0xff]  ;;  %v833_v9 = vld [vmem:[#allocation3 + $0x1e8] sm:$0xff]  ;;  %v5296_v12 = vpack.c.bf16 %v815_v5, %v814_v3  ;;  %v5266_v13 = vpack.c.bf16 %v728_v7, %v727_v6  ;;  %v6671_v16 = vld [vmem:[%s6668_s23 + $0x8] sm:$0xff] }
 0x11d   : > { %5289 = vmatpush3.bf16.msra.mxu1 %v5288_v51  ;;  %5259 = vmatprep.subr.bf16.mxu0 %v5258_v52  ;;  %v711_v11 = vld [vmem:[#allocation3 + $0x60] sm:$0xff]  ;;  %v712_v14 = vld [vmem:[#allocation3 + $0x68] sm:$0xff]  ;;  %v5298_v17 = vpack.c.bf16 %v833_v9, %v832_v8  ;;  %v729_v19 = vld [vmem:[#allocation3 + $0xf0] sm:$0xff] }
 0x11e   : > { %5291 = vmatprep.subr.bf16.mxu1 %v5290_v56  ;;  %v816_v15 = vld [vmem:[#allocation3 + $0x160] sm:$0xff]  ;;  %v817_v18 = vld [vmem:[#allocation3 + $0x168] sm:$0xff]  ;;  %v730_v20 = vld [vmem:[#allocation3 + $0xf8] sm:$0xff]  ;;  %795 = vmatprep.mubr.f32.mxu0 %v6671_v16  ;;  %v5268_v23 = vpack.c.bf16 %v712_v14, %v711_v11 }
 0x11f   : > { %v834_v21 = vld [vmem:[#allocation3 + $0x1f0] sm:$0xff]  ;;  %v835_v22 = vld [vmem:[#allocation3 + $0x1f8] sm:$0xff]  ;;  %900 = vmatprep.mubr.f32.mxu1 %v6671_v16  ;;  %v5300_v24 = vpack.c.bf16 %v817_v18, %v816_v15  ;;  %v5270_v25 = vpack.c.bf16 %v730_v20, %v729_v19  ;;  %v924_v31 = vld [vmem:[#allocation3 + $0x280] sm:$0xff] }
 0x120   : > { %5261 = vmatpush3.bf16.msra.mxu0 %v5260_v62  ;;  %v713_v26 = vld [vmem:[#allocation3 + $0x70] sm:$0xff]  ;;  %v714_v27 = vld [vmem:[#allocation3 + $0x78] sm:$0xff]  ;;  %v5302_v29 = vpack.c.bf16 %v835_v22, %v834_v21  ;;  %v925_v32 = vld [vmem:[#allocation3 + $0x288] sm:$0xff] }
 0x121   : > { %5293 = vmatpush3.bf16.msra.mxu1 %v5292_v63  ;;  %5263 = vmatprep.subr.bf16.mxu0 %v5262_v0  ;;  %v818_v28 = vld [vmem:[#allocation3 + $0x170] sm:$0xff]  ;;  %v819_v30 = vld [vmem:[#allocation3 + $0x178] sm:$0xff]  ;;  %v1028_v33 = vld [vmem:[#allocation3 + $0x380] sm:$0xff]  ;;  %v5272_v35 = vpack.c.bf16 %v714_v27, %v713_v26  ;;  %v5306_v37 = vpack.c.bf16 %v925_v32, %v924_v31 }
 0x122   : > { %5295 = vmatprep.subr.bf16.mxu1 %v5294_v4  ;;  %v1029_v34 = vld [vmem:[#allocation3 + $0x388] sm:$0xff]  ;;  %v5304_v36 = vpack.c.bf16 %v819_v30, %v818_v28  ;;  %v908_v38 = vld [vmem:[#allocation3 + $0x200] sm:$0xff]  ;;  %v926_v43 = vld [vmem:[#allocation3 + $0x290] sm:$0xff] }
 0x123   : > { %v909_v39 = vld [vmem:[#allocation3 + $0x208] sm:$0xff]  ;;  %v1012_v40 = vld [vmem:[#allocation3 + $0x300] sm:$0xff]  ;;  %v5338_v41 = vpack.c.bf16 %v1029_v34, %v1028_v33  ;;  %v927_v44 = vld [vmem:[#allocation3 + $0x298] sm:$0xff] }
 0x124   : > { %5265 = vmatpush3.bf16.msra.mxu0 %v5264_v10  ;;  %v1013_v42 = vld [vmem:[#allocation3 + $0x308] sm:$0xff]  ;;  %v1030_v45 = vld [vmem:[#allocation3 + $0x390] sm:$0xff]  ;;  %v1031_v46 = vld [vmem:[#allocation3 + $0x398] sm:$0xff]  ;;  %v5308_v48 = vpack.c.bf16 %v909_v39, %v908_v38  ;;  %v5310_v50 = vpack.c.bf16 %v927_v44, %v926_v43 }
 0x125   : > { %5297 = vmatpush3.bf16.msra.mxu1 %v5296_v12  ;;  %5267 = vmatprep.subr.bf16.mxu0 %v5266_v13  ;;  %v6676_v47 = vld [vmem:[%s6668_s23] sm:$0xff]  ;;  %v5340_v49 = vpack.c.bf16 %v1013_v42, %v1012_v40  ;;  %v911_v52 = vld [vmem:[#allocation3 + $0x218] sm:$0xff]  ;;  %v5342_v54 = vpack.c.bf16 %v1031_v46, %v1030_v45  ;;  %v928_v56 = vld [vmem:[#allocation3 + $0x2a0] sm:$0xff]  ;;  %s6958_s23 = sld [smem:[#allocation28_spill]] }
 0x126   : > { %5299 = vmatprep.subr.bf16.mxu1 %v5298_v17  ;;  %v910_v51 = vld [vmem:[#allocation3 + $0x210] sm:$0xff]  ;;  %v1015_v55 = vld [vmem:[#allocation3 + $0x318] sm:$0xff]  ;;  %v929_v57 = vld [vmem:[#allocation3 + $0x2a8] sm:$0xff] }
 0x127   : > { %v1014_v53 = vld [vmem:[#allocation3 + $0x310] sm:$0xff]  ;;  %v1032_v58 = vld [vmem:[#allocation3 + $0x3a0] sm:$0xff]  ;;  %v1033_v59 = vld [vmem:[#allocation3 + $0x3a8] sm:$0xff]  ;;  %v5312_v60 = vpack.c.bf16 %v911_v52, %v910_v51  ;;  %v5314_v62 = vpack.c.bf16 %v929_v57, %v928_v56 }
 0x128   : > { %5269 = vmatpush3.bf16.msra.mxu0 %v5268_v23  ;;  %v5344_v61 = vpack.c.bf16 %v1015_v55, %v1014_v53  ;;  %v912_v63 = vld [vmem:[#allocation3 + $0x220] sm:$0xff]  ;;  %v913_v0 = vld [vmem:[#allocation3 + $0x228] sm:$0xff]  ;;  %v5346_v2 = vpack.c.bf16 %v1033_v59, %v1032_v58  ;;  %v930_v4 = vld [vmem:[#allocation3 + $0x2b0] sm:$0xff] }
 0x129   : > { %5301 = vmatpush3.bf16.msra.mxu1 %v5300_v24  ;;  %5271 = vmatprep.subr.bf16.mxu0 %v5270_v25  ;;  %v1016_v1 = vld [vmem:[#allocation3 + $0x320] sm:$0xff]  ;;  %v1017_v3 = vld [vmem:[#allocation3 + $0x328] sm:$0xff]  ;;  %v931_v5 = vld [vmem:[#allocation3 + $0x2b8] sm:$0xff]  ;;  %v5316_v8 = vpack.c.bf16 %v913_v0, %v912_v63 }
 0x12a   : > { %5303 = vmatprep.subr.bf16.mxu1 %v5302_v29  ;;  %v1034_v6 = vld [vmem:[#allocation3 + $0x3b0] sm:$0xff]  ;;  %v1035_v7 = vld [vmem:[#allocation3 + $0x3b8] sm:$0xff]  ;;  %v5348_v9 = vpack.c.bf16 %v1017_v3, %v1016_v1  ;;  %v5318_v10 = vpack.c.bf16 %v931_v5, %v930_v4  ;;  %v932_v17 = vld [vmem:[#allocation3 + $0x2c0] sm:$0xff] }
 0x12b   : > { %v914_v11 = vld [vmem:[#allocation3 + $0x230] sm:$0xff]  ;;  %v915_v12 = vld [vmem:[#allocation3 + $0x238] sm:$0xff]  ;;  %v5350_v14 = vpack.c.bf16 %v1035_v7, %v1034_v6  ;;  %v933_v18 = vld [vmem:[#allocation3 + $0x2c8] sm:$0xff]  ;;  %s696_s16 = scalar_lea.vmem %s6958_s23, %s6701_s15 }
 0x12c   : > { %5273 = vmatpush3.bf16.msra.mxu0 %v5272_v35  ;;  %v1018_v13 = vld [vmem:[#allocation3 + $0x330] sm:$0xff]  ;;  %v1019_v15 = vld [vmem:[#allocation3 + $0x338] sm:$0xff]  ;;  %v1036_v19 = vld [vmem:[#allocation3 + $0x3c0] sm:$0xff]  ;;  %v5320_v21 = vpack.c.bf16 %v915_v12, %v914_v11  ;;  %v5322_v23 = vpack.c.bf16 %v933_v18, %v932_v17 }
 0x12d   : > { %5305 = vmatpush3.bf16.msra.mxu1 %v5304_v36  ;;  %5307 = vmatprep.subr.bf16.mxu0 %v5306_v37  ;;  %v1037_v20 = vld [vmem:[#allocation3 + $0x3c8] sm:$0xff]  ;;  %v5352_v22 = vpack.c.bf16 %v1019_v15, %v1018_v13  ;;  %v916_v24 = vld [vmem:[#allocation3 + $0x240] sm:$0xff]  ;;  %v934_v29 = vld [vmem:[#allocation3 + $0x2d0] sm:$0xff] }
 0x12e   : > { %5339 = vmatprep.subr.bf16.mxu1 %v5338_v41  ;;  %v917_v25 = vld [vmem:[#allocation3 + $0x248] sm:$0xff]  ;;  %v1020_v26 = vld [vmem:[#allocation3 + $0x340] sm:$0xff]  ;;  %v5354_v27 = vpack.c.bf16 %v1037_v20, %v1036_v19  ;;  %v935_v30 = vld [vmem:[#allocation3 + $0x2d8] sm:$0xff] }
 0x12f   : > { %796 = vmatmul.mubr.f32.vlgmr.msra.gmra.mrb[0].mxu0 %v6676_v47  ;;  %v1021_v28 = vld [vmem:[#allocation3 + $0x348] sm:$0xff]  ;;  %v1038_v31 = vld [vmem:[#allocation3 + $0x3d0] sm:$0xff]  ;;  %v1039_v32 = vld [vmem:[#allocation3 + $0x3d8] sm:$0xff]  ;;  %v5324_v33 = vpack.c.bf16 %v917_v25, %v916_v24  ;;  %v5326_v35 = vpack.c.bf16 %v935_v30, %v934_v29 }
 0x130   : > { %901 = vmatmul.mubr.f32.vlgmr.msra.gmra.mrb[0].mxu1 %v6676_v47  ;;  %5309 = vmatpush3.bf16.msra.mxu0 %v5308_v48  ;;  %v5356_v34 = vpack.c.bf16 %v1021_v28, %v1020_v26  ;;  %v918_v36 = vld [vmem:[#allocation3 + $0x250] sm:$0xff]  ;;  %v919_v37 = vld [vmem:[#allocation3 + $0x258] sm:$0xff]  ;;  %v5358_v39 = vpack.c.bf16 %v1039_v32, %v1038_v31  ;;  %v936_v41 = vld [vmem:[#allocation3 + $0x2e0] sm:$0xff] }
 0x131   : > { %5341 = vmatpush3.bf16.msra.mxu1 %v5340_v49  ;;  %5311 = vmatprep.subr.bf16.mxu0 %v5310_v50  ;;  %v1022_v38 = vld [vmem:[#allocation3 + $0x350] sm:$0xff]  ;;  %v1023_v40 = vld [vmem:[#allocation3 + $0x358] sm:$0xff]  ;;  %v937_v42 = vld [vmem:[#allocation3 + $0x2e8] sm:$0xff]  ;;  %v5328_v45 = vpack.c.bf16 %v919_v37, %v918_v36 }
 0x132   : > { %5343 = vmatprep.subr.bf16.mxu1 %v5342_v54  ;;  %1004 = vmatprep.mubr.f32.mxu0 %v6671_v16  ;;  %v1040_v43 = vld [vmem:[#allocation3 + $0x3e0] sm:$0xff]  ;;  %v1041_v44 = vld [vmem:[#allocation3 + $0x3e8] sm:$0xff]  ;;  %v5360_v46 = vpack.c.bf16 %v1023_v40, %v1022_v38  ;;  %v5330_v48 = vpack.c.bf16 %v937_v42, %v936_v41  ;;  %v938_v54 = vld [vmem:[#allocation3 + $0x2f0] sm:$0xff] }
 0x133   : > { %1108 = vmatprep.mubr.f32.mxu1 %v6671_v16  ;;  %v920_v49 = vld [vmem:[#allocation3 + $0x260] sm:$0xff]  ;;  %v921_v50 = vld [vmem:[#allocation3 + $0x268] sm:$0xff]  ;;  %v5362_v52 = vpack.c.bf16 %v1041_v44, %v1040_v43  ;;  %v939_v55 = vld [vmem:[#allocation3 + $0x2f8] sm:$0xff] }
 0x134   : > { %5313 = vmatpush3.bf16.msra.mxu0 %v5312_v60  ;;  %v1024_v51 = vld [vmem:[#allocation3 + $0x360] sm:$0xff]  ;;  %v1025_v53 = vld [vmem:[#allocation3 + $0x368] sm:$0xff]  ;;  %v1042_v56 = vld [vmem:[#allocation3 + $0x3f0] sm:$0xff]  ;;  %v5332_v58 = vpack.c.bf16 %v921_v50, %v920_v49  ;;  %v5334_v60 = vpack.c.bf16 %v939_v55, %v938_v54 }
 0x135   : > { %5345 = vmatpush3.bf16.msra.mxu1 %v5344_v61  ;;  %5315 = vmatprep.subr.bf16.mxu0 %v5314_v62  ;;  %v1043_v57 = vld [vmem:[#allocation3 + $0x3f8] sm:$0xff]  ;;  %v5364_v59 = vpack.c.bf16 %v1025_v53, %v1024_v51  ;;  %v922_v61 = vld [vmem:[#allocation3 + $0x270] sm:$0xff]  ;;  %v1133_v3 = vld [vmem:[#allocation3 + $0x488] sm:$0xff] }
 0x136   : > { %5347 = vmatprep.subr.bf16.mxu1 %v5346_v2  ;;  %v923_v62 = vld [vmem:[#allocation3 + $0x278] sm:$0xff]  ;;  %v1026_v63 = vld [vmem:[#allocation3 + $0x370] sm:$0xff]  ;;  %v5366_v0 = vpack.c.bf16 %v1043_v57, %v1042_v56  ;;  %v1132_v2 = vld [vmem:[#allocation3 + $0x480] sm:$0xff] }
 0x137   : > { %v1027_v1 = vld [vmem:[#allocation3 + $0x378] sm:$0xff]  ;;  %v1236_v4 = vld [vmem:[#allocation3 + $0x580] sm:$0xff]  ;;  %v1237_v5 = vld [vmem:[#allocation3 + $0x588] sm:$0xff]  ;;  %v5336_v6 = vpack.c.bf16 %v923_v62, %v922_v61 }
 0x138   : > { %5317 = vmatpush3.bf16.msra.mxu0 %v5316_v8  ;;  %v5368_v7 = vpack.c.bf16 %v1027_v1, %v1026_v63  ;;  %v5370_v8 = vpack.c.bf16 %v1133_v3, %v1132_v2  ;;  %v1220_v11 = vld [vmem:[#allocation3 + $0x500] sm:$0xff]  ;;  %v5402_v12 = vpack.c.bf16 %v1237_v5, %v1236_v4  ;;  %v1221_v13 = vld [vmem:[#allocation3 + $0x508] sm:$0xff]  ;;  %v1135_v15 = vld [vmem:[#allocation3 + $0x498] sm:$0xff] }
 0x139   : > { %5349 = vmatpush3.bf16.msra.mxu1 %v5348_v9  ;;  %5319 = vmatprep.subr.bf16.mxu0 %v5318_v10  ;;  %v1116_v9 = vld [vmem:[#allocation3 + $0x400] sm:$0xff]  ;;  %v1117_v10 = vld [vmem:[#allocation3 + $0x408] sm:$0xff]  ;;  %v1238_v17 = vld [vmem:[#allocation3 + $0x590] sm:$0xff]  ;;  %v5404_v20 = vpack.c.bf16 %v1221_v13, %v1220_v11 }
 0x13a   : > { %5351 = vmatprep.subr.bf16.mxu1 %v5350_v14  ;;  %v1134_v14 = vld [vmem:[#allocation3 + $0x490] sm:$0xff]  ;;  %v1239_v18 = vld [vmem:[#allocation3 + $0x598] sm:$0xff]  ;;  %v5372_v19 = vpack.c.bf16 %v1117_v10, %v1116_v9  ;;  %v1137_v28 = vld [vmem:[#allocation3 + $0x4a8] sm:$0xff] }
 0x13b   : > { %v1222_v24 = vld [vmem:[#allocation3 + $0x510] sm:$0xff]  ;;  %v5406_v25 = vpack.c.bf16 %v1239_v18, %v1238_v17  ;;  %v1223_v26 = vld [vmem:[#allocation3 + $0x518] sm:$0xff]  ;;  %v1240_v29 = vld [vmem:[#allocation3 + $0x5a0] sm:$0xff] }
 0x13c   : > { %5321 = vmatpush3.bf16.msra.mxu0 %v5320_v21  ;;  %v5374_v21 = vpack.c.bf16 %v1135_v15, %v1134_v14  ;;  %v1241_v30 = vld [vmem:[#allocation3 + $0x5a8] sm:$0xff]  ;;  %v5408_v32 = vpack.c.bf16 %v1223_v26, %v1222_v24  ;;  %v1224_v36 = vld [vmem:[#allocation3 + $0x520] sm:$0xff]  ;;  %v1139_v40 = vld [vmem:[#allocation3 + $0x4b8] sm:$0xff] }
 0x13d   : > { %5353 = vmatpush3.bf16.msra.mxu1 %v5352_v22  ;;  %5323 = vmatprep.subr.bf16.mxu0 %v5322_v23  ;;  %v1118_v22 = vld [vmem:[#allocation3 + $0x410] sm:$0xff]  ;;  %v1119_v23 = vld [vmem:[#allocation3 + $0x418] sm:$0xff]  ;;  %v5410_v37 = vpack.c.bf16 %v1241_v30, %v1240_v29  ;;  %v1225_v38 = vld [vmem:[#allocation3 + $0x528] sm:$0xff] }
 0x13e   : > { %5355 = vmatprep.subr.bf16.mxu1 %v5354_v27  ;;  %v1136_v27 = vld [vmem:[#allocation3 + $0x4a0] sm:$0xff]  ;;  %v5376_v31 = vpack.c.bf16 %v1119_v23, %v1118_v22  ;;  %v1242_v41 = vld [vmem:[#allocation3 + $0x5b0] sm:$0xff]  ;;  %v1243_v42 = vld [vmem:[#allocation3 + $0x5b8] sm:$0xff]  ;;  %v5412_v44 = vpack.c.bf16 %v1225_v38, %v1224_v36 }
 0x13f   : > { %v1226_v49 = vld [vmem:[#allocation3 + $0x530] sm:$0xff]  ;;  %v5414_v50 = vpack.c.bf16 %v1243_v42, %v1242_v41  ;;  %v1227_v51 = vld [vmem:[#allocation3 + $0x538] sm:$0xff]  ;;  %v1141_v53 = vld [vmem:[#allocation3 + $0x4c8] sm:$0xff] }
 0x140   : > { %5325 = vmatpush3.bf16.msra.mxu0 %v5324_v33  ;;  %v5378_v33 = vpack.c.bf16 %v1137_v28, %v1136_v27  ;;  %v1244_v54 = vld [vmem:[#allocation3 + $0x5c0] sm:$0xff]  ;;  %v1245_v55 = vld [vmem:[#allocation3 + $0x5c8] sm:$0xff]  ;;  %v5416_v57 = vpack.c.bf16 %v1227_v51, %v1226_v49  ;;  %v1143_v1 = vld [vmem:[#allocation3 + $0x4d8] sm:$0xff] }
 0x141   : > { %5357 = vmatpush3.bf16.msra.mxu1 %v5356_v34  ;;  %5327 = vmatprep.subr.bf16.mxu0 %v5326_v35  ;;  %v1120_v34 = vld [vmem:[#allocation3 + $0x420] sm:$0xff]  ;;  %v1121_v35 = vld [vmem:[#allocation3 + $0x428] sm:$0xff]  ;;  %v5418_v62 = vpack.c.bf16 %v1245_v55, %v1244_v54  ;;  %v1246_v2 = vld [vmem:[#allocation3 + $0x5d0] sm:$0xff] }
 0x142   : > { %5359 = vmatprep.subr.bf16.mxu1 %v5358_v39  ;;  %v1138_v39 = vld [vmem:[#allocation3 + $0x4b0] sm:$0xff]  ;;  %v5380_v43 = vpack.c.bf16 %v1121_v35, %v1120_v34  ;;  %v1228_v61 = vld [vmem:[#allocation3 + $0x540] sm:$0xff]  ;;  %v1229_v63 = vld [vmem:[#allocation3 + $0x548] sm:$0xff] }
 0x143   : > { %v1247_v3 = vld [vmem:[#allocation3 + $0x5d8] sm:$0xff]  ;;  %v5420_v5 = vpack.c.bf16 %v1229_v63, %v1228_v61  ;;  %v1230_v9 = vld [vmem:[#allocation3 + $0x550] sm:$0xff]  ;;  %v1145_v13 = vld [vmem:[#allocation3 + $0x4e8] sm:$0xff] }
 0x144   : > { %5329 = vmatpush3.bf16.msra.mxu0 %v5328_v45  ;;  %v5382_v45 = vpack.c.bf16 %v1139_v40, %v1138_v39  ;;  %v5422_v10 = vpack.c.bf16 %v1247_v3, %v1246_v2  ;;  %v1231_v11 = vld [vmem:[#allocation3 + $0x558] sm:$0xff]  ;;  %v1248_v14 = vld [vmem:[#allocation3 + $0x5e0] sm:$0xff]  ;;  %v1249_v15 = vld [vmem:[#allocation3 + $0x5e8] sm:$0xff] }
 0x145   : > { %5361 = vmatpush3.bf16.msra.mxu1 %v5360_v46  ;;  %5331 = vmatprep.subr.bf16.mxu0 %v5330_v48  ;;  %v1122_v46 = vld [vmem:[#allocation3 + $0x430] sm:$0xff]  ;;  %v1123_v48 = vld [vmem:[#allocation3 + $0x438] sm:$0xff]  ;;  %v5424_v18 = vpack.c.bf16 %v1231_v11, %v1230_v9  ;;  %v1232_v22 = vld [vmem:[#allocation3 + $0x560] sm:$0xff]  ;;  %v5426_v23 = vpack.c.bf16 %v1249_v15, %v1248_v14 }
 0x146   : > { %5363 = vmatprep.subr.bf16.mxu1 %v5362_v52  ;;  %v1140_v52 = vld [vmem:[#allocation3 + $0x4c0] sm:$0xff]  ;;  %v5384_v56 = vpack.c.bf16 %v1123_v48, %v1122_v46  ;;  %v1233_v24 = vld [vmem:[#allocation3 + $0x568] sm:$0xff]  ;;  %v1147_v26 = vld [vmem:[#allocation3 + $0x4f8] sm:$0xff] }
 0x147   : > { %v1250_v27 = vld [vmem:[#allocation3 + $0x5f0] sm:$0xff]  ;;  %v1251_v28 = vld [vmem:[#allocation3 + $0x5f8] sm:$0xff]  ;;  %v5428_v30 = vpack.c.bf16 %v1233_v24, %v1232_v22  ;;  %v1341_v38 = vld [vmem:[#allocation3 + $0x688] sm:$0xff] }
 0x148   : > { %5333 = vmatpush3.bf16.msra.mxu0 %v5332_v58  ;;  %v5386_v58 = vpack.c.bf16 %v1141_v53, %v1140_v52  ;;  %v1234_v34 = vld [vmem:[#allocation3 + $0x570] sm:$0xff]  ;;  %v5430_v35 = vpack.c.bf16 %v1251_v28, %v1250_v27  ;;  %v1235_v36 = vld [vmem:[#allocation3 + $0x578] sm:$0xff]  ;;  %v1444_v39 = vld [vmem:[#allocation3 + $0x780] sm:$0xff] }
 0x149   : > { %5365 = vmatpush3.bf16.msra.mxu1 %v5364_v59  ;;  %5335 = vmatprep.subr.bf16.mxu0 %v5334_v60  ;;  %v1124_v59 = vld [vmem:[#allocation3 + $0x440] sm:$0xff]  ;;  %v1125_v60 = vld [vmem:[#allocation3 + $0x448] sm:$0xff]  ;;  %v5432_v42 = vpack.c.bf16 %v1235_v36, %v1234_v34  ;;  %v1343_v51 = vld [vmem:[#allocation3 + $0x698] sm:$0xff] }
 0x14a   : > { %5367 = vmatprep.subr.bf16.mxu1 %v5366_v0  ;;  %v1142_v0 = vld [vmem:[#allocation3 + $0x4d0] sm:$0xff]  ;;  %v5388_v4 = vpack.c.bf16 %v1125_v60, %v1124_v59  ;;  %v1445_v40 = vld [vmem:[#allocation3 + $0x788] sm:$0xff]  ;;  %v1428_v46 = vld [vmem:[#allocation3 + $0x700] sm:$0xff] }
 0x14b   : > { %v5466_v48 = vpack.c.bf16 %v1445_v40, %v1444_v39  ;;  %v1429_v49 = vld [vmem:[#allocation3 + $0x708] sm:$0xff]  ;;  %v1446_v52 = vld [vmem:[#allocation3 + $0x790] sm:$0xff]  ;;  %v1447_v53 = vld [vmem:[#allocation3 + $0x798] sm:$0xff] }
 0x14c   : > { %5337 = vmatpush3.bf16.msra.mxu0 %v5336_v6  ;;  %v5390_v6 = vpack.c.bf16 %v1143_v1, %v1142_v0  ;;  %v5468_v55 = vpack.c.bf16 %v1429_v49, %v1428_v46  ;;  %v1430_v59 = vld [vmem:[#allocation3 + $0x710] sm:$0xff]  ;;  %v5470_v60 = vpack.c.bf16 %v1447_v53, %v1446_v52  ;;  %v1431_v61 = vld [vmem:[#allocation3 + $0x718] sm:$0xff]  ;;  %v1345_v63 = vld [vmem:[#allocation3 + $0x6a8] sm:$0xff] }
 0x14d   : > { %5369 = vmatpush3.bf16.msra.mxu1 %v5368_v7  ;;  %5371 = vmatprep.subr.bf16.mxu0 %v5370_v8  ;;  %v1126_v7 = vld [vmem:[#allocation3 + $0x450] sm:$0xff]  ;;  %v1127_v8 = vld [vmem:[#allocation3 + $0x458] sm:$0xff]  ;;  %v1448_v0 = vld [vmem:[#allocation3 + $0x7a0] sm:$0xff]  ;;  %v5472_v3 = vpack.c.bf16 %v1431_v61, %v1430_v59 }
 0x14e   : > { %5403 = vmatprep.subr.bf16.mxu1 %v5402_v12  ;;  %v1144_v12 = vld [vmem:[#allocation3 + $0x4e0] sm:$0xff]  ;;  %v5392_v17 = vpack.c.bf16 %v1127_v8, %v1126_v7  ;;  %v1449_v1 = vld [vmem:[#allocation3 + $0x7a8] sm:$0xff]  ;;  %v1347_v11 = vld [vmem:[#allocation3 + $0x6b8] sm:$0xff] }
 0x14f   : > { %1005 = vmatmul.mubr.f32.vlgmr.msra.gmra.mrb[2].mxu0 %v6676_v47  ;;  %v1432_v7 = vld [vmem:[#allocation3 + $0x720] sm:$0xff]  ;;  %v5474_v8 = vpack.c.bf16 %v1449_v1, %v1448_v0  ;;  %v1433_v9 = vld [vmem:[#allocation3 + $0x728] sm:$0xff]  ;;  %v1435_v22 = vld [vmem:[#allocation3 + $0x738] sm:$0xff] }
 0x150   : > { %1109 = vmatmul.mubr.f32.vlgmr.msra.gmra.mrb[2].mxu1 %v6676_v47  ;;  %5373 = vmatpush3.bf16.msra.mxu0 %v5372_v19  ;;  %v5394_v19 = vpack.c.bf16 %v1145_v13, %v1144_v12  ;;  %v1450_v12 = vld [vmem:[#allocation3 + $0x7b0] sm:$0xff]  ;;  %v1451_v13 = vld [vmem:[#allocation3 + $0x7b8] sm:$0xff]  ;;  %v5476_v15 = vpack.c.bf16 %v1433_v9, %v1432_v7  ;;  %v1349_v24 = vld [vmem:[#allocation3 + $0x6c8] sm:$0xff] }
 0x151   : > { %5405 = vmatpush3.bf16.msra.mxu1 %v5404_v20  ;;  %5375 = vmatprep.subr.bf16.mxu0 %v5374_v21  ;;  %v1128_v20 = vld [vmem:[#allocation3 + $0x460] sm:$0xff]  ;;  %v1129_v21 = vld [vmem:[#allocation3 + $0x468] sm:$0xff]  ;;  %v1351_v36 = vld [vmem:[#allocation3 + $0x6d8] sm:$0xff] }
 0x152   : > { %5407 = vmatprep.subr.bf16.mxu1 %v5406_v25  ;;  %1212 = vmatprep.mubr.f32.mxu0 %v6671_v16  ;;  %v1146_v25 = vld [vmem:[#allocation3 + $0x4f0] sm:$0xff]  ;;  %v5396_v29 = vpack.c.bf16 %v1129_v21, %v1128_v20  ;;  %v5478_v21 = vpack.c.bf16 %v1451_v13, %v1450_v12  ;;  %v1437_v34 = vld [vmem:[#allocation3 + $0x748] sm:$0xff]  ;;  %v1439_v46 = vld [vmem:[#allocation3 + $0x758] sm:$0xff] }
 0x153   : > { %1316 = vmatprep.mubr.f32.mxu1 %v6671_v16  ;;  %v1434_v20 = vld [vmem:[#allocation3 + $0x730] sm:$0xff]  ;;  %v1353_v49 = vld [vmem:[#allocation3 + $0x6e8] sm:$0xff]  ;;  %v1355_v61 = vld [vmem:[#allocation3 + $0x6f8] sm:$0xff] }
 0x154   : > { %5377 = vmatpush3.bf16.msra.mxu0 %v5376_v31  ;;  %v5398_v31 = vpack.c.bf16 %v1147_v26, %v1146_v25  ;;  %v1452_v25 = vld [vmem:[#allocation3 + $0x7c0] sm:$0xff]  ;;  %v1453_v26 = vld [vmem:[#allocation3 + $0x7c8] sm:$0xff]  ;;  %v5480_v28 = vpack.c.bf16 %v1435_v22, %v1434_v20  ;;  %v1443_v7 = vld [vmem:[#allocation3 + $0x778] sm:$0xff] }
 0x155   : > { %5409 = vmatpush3.bf16.msra.mxu1 %v5408_v32  ;;  %5379 = vmatprep.subr.bf16.mxu0 %v5378_v33  ;;  %v1130_v32 = vld [vmem:[#allocation3 + $0x470] sm:$0xff]  ;;  %v1131_v33 = vld [vmem:[#allocation3 + $0x478] sm:$0xff]  ;;  %v1441_v59 = vld [vmem:[#allocation3 + $0x768] sm:$0xff] }
 0x156   : > { %5411 = vmatprep.subr.bf16.mxu1 %v5410_v37  ;;  %v1340_v37 = vld [vmem:[#allocation3 + $0x680] sm:$0xff]  ;;  %v5400_v41 = vpack.c.bf16 %v1131_v33, %v1130_v32  ;;  %v5482_v33 = vpack.c.bf16 %v1453_v26, %v1452_v25  ;;  %v1549_v9 = vld [vmem:[#allocation3 + $0x888] sm:$0xff]  ;;  %v1534_v20 = vld [vmem:[#allocation3 + $0x810] sm:$0xff] }
 0x157   : > { %v1436_v32 = vld [vmem:[#allocation3 + $0x740] sm:$0xff] }
 0x158   : > { %5381 = vmatpush3.bf16.msra.mxu0 %v5380_v43  ;;  %v5434_v43 = vpack.c.bf16 %v1341_v38, %v1340_v37  ;;  %v1454_v37 = vld [vmem:[#allocation3 + $0x7d0] sm:$0xff]  ;;  %v1455_v38 = vld [vmem:[#allocation3 + $0x7d8] sm:$0xff]  ;;  %v5484_v40 = vpack.c.bf16 %v1437_v34, %v1436_v32  ;;  %v1532_v13 = vld [vmem:[#allocation3 + $0x800] sm:$0xff] }
 0x159   : > { %5413 = vmatpush3.bf16.msra.mxu1 %v5412_v44  ;;  %5383 = vmatprep.subr.bf16.mxu0 %v5382_v45  ;;  %v1324_v44 = vld [vmem:[#allocation3 + $0x600] sm:$0xff]  ;;  %v1325_v45 = vld [vmem:[#allocation3 + $0x608] sm:$0xff]  ;;  %v1539_v34 = vld [vmem:[#allocation3 + $0x838] sm:$0xff] }
 0x15a   : > { %5415 = vmatprep.subr.bf16.mxu1 %v5414_v50  ;;  %v1342_v50 = vld [vmem:[#allocation3 + $0x690] sm:$0xff]  ;;  %v5436_v54 = vpack.c.bf16 %v1325_v45, %v1324_v44  ;;  %v5486_v45 = vpack.c.bf16 %v1455_v38, %v1454_v37  ;;  %v1552_v22 = vld [vmem:[#allocation3 + $0x8a0] sm:$0xff] }
 0x15b   : > { %v1438_v44 = vld [vmem:[#allocation3 + $0x750] sm:$0xff] }
 0x15c   : > { %5385 = vmatpush3.bf16.msra.mxu0 %v5384_v56  ;;  %v5438_v56 = vpack.c.bf16 %v1343_v51, %v1342_v50  ;;  %v1456_v50 = vld [vmem:[#allocation3 + $0x7e0] sm:$0xff]  ;;  %v1457_v51 = vld [vmem:[#allocation3 + $0x7e8] sm:$0xff]  ;;  %v5488_v53 = vpack.c.bf16 %v1439_v46, %v1438_v44  ;;  %v1542_v44 = vld [vmem:[#allocation3 + $0x850] sm:$0xff] }
 0x15d   : > { %5417 = vmatpush3.bf16.msra.mxu1 %v5416_v57  ;;  %5387 = vmatprep.subr.bf16.mxu0 %v5386_v58  ;;  %v1326_v57 = vld [vmem:[#allocation3 + $0x610] sm:$0xff]  ;;  %v1327_v58 = vld [vmem:[#allocation3 + $0x618] sm:$0xff]  ;;  %v1560_v46 = vld [vmem:[#allocation3 + $0x8e0] sm:$0xff] }
 0x15e   : > { %5419 = vmatprep.subr.bf16.mxu1 %v5418_v62  ;;  %v1344_v62 = vld [vmem:[#allocation3 + $0x6a0] sm:$0xff]  ;;  %v5440_v2 = vpack.c.bf16 %v1327_v58, %v1326_v57  ;;  %v5490_v58 = vpack.c.bf16 %v1457_v51, %v1456_v50 }
 0x15f   : > { %v1440_v57 = vld [vmem:[#allocation3 + $0x760] sm:$0xff] }
 0x160   : > { %5389 = vmatpush3.bf16.msra.mxu0 %v5388_v4  ;;  %v5442_v4 = vpack.c.bf16 %v1345_v63, %v1344_v62  ;;  %v1458_v62 = vld [vmem:[#allocation3 + $0x7f0] sm:$0xff]  ;;  %v1459_v63 = vld [vmem:[#allocation3 + $0x7f8] sm:$0xff]  ;;  %v5492_v1 = vpack.c.bf16 %v1441_v59, %v1440_v57  ;;  %v1544_v51 = vld [vmem:[#allocation3 + $0x860] sm:$0xff] }
 0x161   : > { %5421 = vmatpush3.bf16.msra.mxu1 %v5420_v5  ;;  %5391 = vmatprep.subr.bf16.mxu0 %v5390_v6  ;;  %v1328_v5 = vld [vmem:[#allocation3 + $0x620] sm:$0xff]  ;;  %v1329_v6 = vld [vmem:[#allocation3 + $0x628] sm:$0xff]  ;;  %v1546_v57 = vld [vmem:[#allocation3 + $0x870] sm:$0xff] }
 0x162   : > { %5423 = vmatprep.subr.bf16.mxu1 %v5422_v10  ;;  %v1346_v10 = vld [vmem:[#allocation3 + $0x6b0] sm:$0xff]  ;;  %v5444_v14 = vpack.c.bf16 %v1329_v6, %v1328_v5  ;;  %v5494_v6 = vpack.c.bf16 %v1459_v63, %v1458_v62 }
 0x163   : > { %v1442_v5 = vld [vmem:[#allocation3 + $0x770] sm:$0xff] }
 0x164   : > { %5393 = vmatpush3.bf16.msra.mxu0 %v5392_v17  ;;  %v5446_v17 = vpack.c.bf16 %v1347_v11, %v1346_v10  ;;  %v5496_v11 = vpack.c.bf16 %v1443_v7, %v1442_v5  ;;  %v6308_v5 = vmov 0.0   ;;  %v1815_v7 = vld [vmem:[#allocation8 + $0x48] sm:$0xff] }
 0x165   : > { %5425 = vmatpush3.bf16.msra.mxu1 %v5424_v18  ;;  %5395 = vmatprep.subr.bf16.mxu0 %v5394_v19  ;;  %v1330_v18 = vld [vmem:[#allocation3 + $0x630] sm:$0xff]  ;;  %v1331_v19 = vld [vmem:[#allocation3 + $0x638] sm:$0xff] }
 0x166   : > { %5427 = vmatprep.subr.bf16.mxu1 %v5426_v23  ;;  %v1348_v23 = vld [vmem:[#allocation3 + $0x6c0] sm:$0xff]  ;;  %v5448_v27 = vpack.c.bf16 %v1331_v19, %v1330_v18 }
 0x168   : > { %5397 = vmatpush3.bf16.msra.mxu0 %v5396_v29  ;;  %v5450_v29 = vpack.c.bf16 %v1349_v24, %v1348_v23  ;;  %v1553_v23 = vld [vmem:[#allocation3 + $0x8a8] sm:$0xff]  ;;  %v6306_v24 = vmov 0.0|0.0  }
 0x169   : > { %5429 = vmatpush3.bf16.msra.mxu1 %v5428_v30  ;;  %5399 = vmatprep.subr.bf16.mxu0 %v5398_v31  ;;  %v1332_v30 = vld [vmem:[#allocation3 + $0x640] sm:$0xff]  ;;  %v1333_v31 = vld [vmem:[#allocation3 + $0x648] sm:$0xff]  ;;  %v5506_v26 = vpack.c.bf16 %v1553_v23, %v1552_v22 }
 0x16a   : > { %5431 = vmatprep.subr.bf16.mxu1 %v5430_v35  ;;  %v1350_v35 = vld [vmem:[#allocation3 + $0x6d0] sm:$0xff]  ;;  %v5452_v39 = vpack.c.bf16 %v1333_v31, %v1332_v30  ;;  %v1555_v30 = vld [vmem:[#allocation3 + $0x8b8] sm:$0xff] }
 0x16c   : > { %5401 = vmatpush3.bf16.msra.mxu0 %v5400_v41  ;;  %v5454_v41 = vpack.c.bf16 %v1351_v36, %v1350_v35  ;;  %v1556_v35 = vld [vmem:[#allocation3 + $0x8c0] sm:$0xff]  ;;  %v1557_v36 = vld [vmem:[#allocation3 + $0x8c8] sm:$0xff] }
 0x16d   : > { %5433 = vmatpush3.bf16.msra.mxu1 %v5432_v42  ;;  %5435 = vmatprep.subr.bf16.mxu0 %v5434_v43  ;;  %v1334_v42 = vld [vmem:[#allocation3 + $0x650] sm:$0xff]  ;;  %v1335_v43 = vld [vmem:[#allocation3 + $0x658] sm:$0xff]  ;;  %v5514_v38 = vpack.c.bf16 %v1557_v36, %v1556_v35 }
 0x16e   : > { %5467 = vmatprep.subr.bf16.mxu1 %v5466_v48  ;;  %v1352_v48 = vld [vmem:[#allocation3 + $0x6e0] sm:$0xff]  ;;  %v5456_v52 = vpack.c.bf16 %v1335_v43, %v1334_v42  ;;  %v1559_v42 = vld [vmem:[#allocation3 + $0x8d8] sm:$0xff] }
 0x16f   : > { %1213 = vmatmul.mubr.f32.vlgmr.msra.gmra.mrb[4].mxu0 %v6676_v47 }
 0x170   : > { %1317 = vmatmul.mubr.f32.vlgmr.msra.gmra.mrb[4].mxu1 %v6676_v47  ;;  %5437 = vmatpush3.bf16.msra.mxu0 %v5436_v54  ;;  %v5458_v54 = vpack.c.bf16 %v1353_v49, %v1352_v48  ;;  %v1561_v48 = vld [vmem:[#allocation3 + $0x8e8] sm:$0xff] }
 0x171   : > { %5469 = vmatpush3.bf16.msra.mxu1 %v5468_v55  ;;  %5439 = vmatprep.subr.bf16.mxu0 %v5438_v56  ;;  %v1336_v55 = vld [vmem:[#allocation3 + $0x660] sm:$0xff]  ;;  %v1337_v56 = vld [vmem:[#allocation3 + $0x668] sm:$0xff]  ;;  %v5522_v50 = vpack.c.bf16 %v1561_v48, %v1560_v46  ;;  %v1731_v46 = vld [vmem:[#allocation8 + $0x8] sm:$0xff] }
 0x172   : > { %5471 = vmatprep.subr.bf16.mxu1 %v5470_v60  ;;  %1420 = vmatprep.mubr.f32.mxu0 %v6671_v16  ;;  %v1354_v60 = vld [vmem:[#allocation3 + $0x6f0] sm:$0xff]  ;;  %v5460_v0 = vpack.c.bf16 %v1337_v56, %v1336_v55  ;;  %v1635_v48 = vld [vmem:[#allocation5] sm:$0xff] }
 0x173   : > { %1524 = vmatprep.mubr.f32.mxu1 %v6671_v16 }
 0x174   : > { %5441 = vmatpush3.bf16.msra.mxu0 %v5440_v2  ;;  %v5462_v2 = vpack.c.bf16 %v1355_v61, %v1354_v60 }
 0x175   : > { %5473 = vmatpush3.bf16.msra.mxu1 %v5472_v3  ;;  %5443 = vmatprep.subr.bf16.mxu0 %v5442_v4  ;;  %v1338_v3 = vld [vmem:[#allocation3 + $0x670] sm:$0xff]  ;;  %v1339_v4 = vld [vmem:[#allocation3 + $0x678] sm:$0xff] }
 0x176   : > { %5475 = vmatprep.subr.bf16.mxu1 %v5474_v8  ;;  %v1548_v8 = vld [vmem:[#allocation3 + $0x880] sm:$0xff]  ;;  %v5464_v10 = vpack.c.bf16 %v1339_v4, %v1338_v3 }
 0x177   : > { %v5498_v12 = vpack.c.bf16 %v1549_v9, %v1548_v8  ;;  %v1645_v8 = vld [vmem:[%s679_s30] sm:$0xff] }
 0x178   : > { %5445 = vmatpush3.bf16.msra.mxu0 %v5444_v14  ;;  %v1533_v14 = vld [vmem:[#allocation3 + $0x808] sm:$0xff] }
 0x179   : > { %5477 = vmatpush3.bf16.msra.mxu1 %v5476_v15  ;;  %5447 = vmatprep.subr.bf16.mxu0 %v5446_v17  ;;  %v1550_v15 = vld [vmem:[#allocation3 + $0x890] sm:$0xff]  ;;  %v1551_v17 = vld [vmem:[#allocation3 + $0x898] sm:$0xff]  ;;  %v5500_v18 = vpack.c.bf16 %v1533_v14, %v1532_v13 }
 0x17a   : > { %5479 = vmatprep.subr.bf16.mxu1 %v5478_v21  ;;  %v5502_v19 = vpack.c.bf16 %v1551_v17, %v1550_v15  ;;  %v1535_v21 = vld [vmem:[#allocation3 + $0x818] sm:$0xff] }
 0x17b   : > { %v5504_v25 = vpack.c.bf16 %v1535_v21, %v1534_v20 }
 0x17c   : > { %5449 = vmatpush3.bf16.msra.mxu0 %v5448_v27  ;;  %v1536_v27 = vld [vmem:[#allocation3 + $0x820] sm:$0xff] }
 0x17d   : > { %5481 = vmatpush3.bf16.msra.mxu1 %v5480_v28  ;;  %5451 = vmatprep.subr.bf16.mxu0 %v5450_v29  ;;  %v1537_v28 = vld [vmem:[#allocation3 + $0x828] sm:$0xff]  ;;  %v1554_v29 = vld [vmem:[#allocation3 + $0x8b0] sm:$0xff] }
 0x17e   : > { %5483 = vmatprep.subr.bf16.mxu1 %v5482_v33  ;;  %v5508_v31 = vpack.c.bf16 %v1537_v28, %v1536_v27  ;;  %v5510_v32 = vpack.c.bf16 %v1555_v30, %v1554_v29  ;;  %v1538_v33 = vld [vmem:[#allocation3 + $0x830] sm:$0xff] }
 0x17f   : > { %v5512_v37 = vpack.c.bf16 %v1539_v34, %v1538_v33 }
 0x180   : > { %5453 = vmatpush3.bf16.msra.mxu0 %v5452_v39  ;;  %v1540_v39 = vld [vmem:[#allocation3 + $0x840] sm:$0xff] }
 0x181   : > { %5485 = vmatpush3.bf16.msra.mxu1 %v5484_v40  ;;  %5455 = vmatprep.subr.bf16.mxu0 %v5454_v41  ;;  %v1541_v40 = vld [vmem:[#allocation3 + $0x848] sm:$0xff]  ;;  %v1558_v41 = vld [vmem:[#allocation3 + $0x8d0] sm:$0xff] }
 0x182   : > { %5487 = vmatprep.subr.bf16.mxu1 %v5486_v45  ;;  %v5518_v43 = vpack.c.bf16 %v1559_v42, %v1558_v41  ;;  %v1543_v45 = vld [vmem:[#allocation3 + $0x858] sm:$0xff] }
 0x183   : > { %v5520_v49 = vpack.c.bf16 %v1543_v45, %v1542_v44  ;;  %v1730_v45 = vld [vmem:[#allocation8] sm:$0xff] }
 0x184   : > { %5457 = vmatpush3.bf16.msra.mxu0 %v5456_v52  ;;  %v1545_v52 = vld [vmem:[#allocation3 + $0x868] sm:$0xff] }
 0x185   : > { %5489 = vmatpush3.bf16.msra.mxu1 %v5488_v53  ;;  %5459 = vmatprep.subr.bf16.mxu0 %v5458_v54  ;;  %v1562_v53 = vld [vmem:[#allocation3 + $0x8f0] sm:$0xff]  ;;  %v1563_v54 = vld [vmem:[#allocation3 + $0x8f8] sm:$0xff]  ;;  %v5524_v55 = vpack.c.bf16 %v1545_v52, %v1544_v51  ;;  %v1732_v51 = vld [vmem:[#allocation8 + $0x10] sm:$0xff] }
 0x186   : > { %5491 = vmatprep.subr.bf16.mxu1 %v5490_v58  ;;  %v5526_v56 = vpack.c.bf16 %v1563_v54, %v1562_v53  ;;  %v1547_v58 = vld [vmem:[#allocation3 + $0x878] sm:$0xff]  ;;  %v1733_v52 = vld [vmem:[#allocation8 + $0x18] sm:$0xff]  ;;  %v1734_v54 = vld [vmem:[#allocation8 + $0x20] sm:$0xff] }
 0x187   : > { %v5528_v59 = vpack.c.bf16 %v1547_v58, %v1546_v57  ;;  %v5546_v53 = vpack.c.bf16 %v1733_v52, %v1732_v51  ;;  %v1819_v58 = vld [vmem:[#allocation8 + $0x68] sm:$0xff] }
 0x188   : > { %5461 = vmatpush3.bf16.msra.mxu0 %v5460_v0  ;;  %v2139_v51 = vld [vmem:[#allocation8 + $0x168] sm:$0xff] }
 0x189   : > { %5493 = vmatpush3.bf16.msra.mxu1 %v5492_v1  ;;  %5463 = vmatprep.subr.bf16.mxu0 %v5462_v2 }
 0x18a   : > { %5495 = vmatprep.subr.bf16.mxu1 %v5494_v6  ;;  %v1814_v6 = vld [vmem:[#allocation8 + $0x40] sm:$0xff] }
 0x18b   : > { %v5555_v9 = vpack.c.bf16 %v1815_v7, %v1814_v6  ;;  %v1894_v6 = vld [vmem:[#allocation8 + $0x80] sm:$0xff]  ;;  %v1895_v7 = vld [vmem:[#allocation8 + $0x88] sm:$0xff] }
 0x18c   : > { %5465 = vmatpush3.bf16.msra.mxu0 %v5464_v10  ;;  %v2463_v10 = vld [vmem:[%s683_s27] sm:$0xff] }
 0x18d   : > { %5497 = vmatpush3.bf16.msra.mxu1 %v5496_v11  ;;  %5499 = vmatprep.subr.bf16.mxu0 %v5498_v12  ;;  %v1816_v11 = vld [vmem:[#allocation8 + $0x50] sm:$0xff]  ;;  %v1817_v12 = vld [vmem:[#allocation8 + $0x58] sm:$0xff] }
 0x18e   : > { %5530 = vmatprep.subr.bf16.mxu1 %v6306_v24  ;;  %v5558_v13 = vpack.c.bf16 %v1817_v12, %v1816_v11  ;;  %v1728_v11 = vld [vmem:[#allocation7] sm:$0xff] }
 0x18f   : > { %1421 = vmatmul.mubr.f32.vlgmr.msra.gmra.mrb[6].mxu0 %v6676_v47 }
 0x190   : > { %1525 = vmatmul.mubr.f32.vlgmr.msra.gmra.mrb[6].mxu1 %v6676_v47  ;;  %5501 = vmatpush3.bf16.msra.mxu0 %v5500_v18 }
 0x191   : > { %5503 = vmatprep.subr.bf16.mxu0 %v5502_v19  ;;  %1628 = vmatprep.mubr.f32.mxu0 %v6671_v16  ;;  %v5516_v16 = vpack.c.bf16 %v1541_v40, %v1540_v39 }
 0x192   : > { %4963 = vmatprep.mubr.msk.f32.mxu1 %vm6307_vm1, %v6308_v5 }
 0x194   : > { %5505 = vmatpush3.bf16.msra.mxu0 %v5504_v25 }
 0x195   : > { %5507 = vmatprep.subr.bf16.mxu0 %v5506_v26 }
 0x198   : > { %5509 = vmatpush3.bf16.msra.mxu0 %v5508_v31 }
 0x199   : > { %5511 = vmatprep.subr.bf16.mxu0 %v5510_v32 }
 0x19c   : > { %5513 = vmatpush3.bf16.msra.mxu0 %v5512_v37 }
 0x19d   : > { %5515 = vmatprep.subr.bf16.mxu0 %v5514_v38 }
 0x1a0   : > { %5517 = vmatpush3.bf16.msra.mxu0 %v5516_v16 }
 0x1a1   : > { %5519 = vmatprep.subr.bf16.mxu0 %v5518_v43 }
 0x1a4   : > { %5521 = vmatpush3.bf16.msra.mxu0 %v5520_v49  ;;  %v5543_v49 = vpack.c.bf16 %v1731_v46, %v1730_v45 }
 0x1a5   : > { %5523 = vmatprep.subr.bf16.mxu0 %v5522_v50 }
 0x1a8   : > { %5525 = vmatpush3.bf16.msra.mxu0 %v5524_v55  ;;  %v1735_v55 = vld [vmem:[#allocation8 + $0x28] sm:$0xff] }
 0x1a9   : > { %5527 = vmatprep.subr.bf16.mxu0 %v5526_v56  ;;  %v1818_v56 = vld [vmem:[#allocation8 + $0x60] sm:$0xff]  ;;  %v5549_v57 = vpack.c.bf16 %v1735_v55, %v1734_v54  ;;  %v2060_v54 = vld [vmem:[#allocation8 + $0x130] sm:$0xff]  ;;  %v2061_v55 = vld [vmem:[#allocation8 + $0x138] sm:$0xff] }
 0x1ac   : > { %5529 = vmatpush3.bf16.msra.mxu0 %v5528_v59  ;;  %v5561_v59 = vpack.c.bf16 %v1819_v58, %v1818_v56  ;;  %v2140_v56 = vld [vmem:[#allocation8 + $0x170] sm:$0xff]  ;;  %v5600_v58 = vpack.c.bf16 %v2061_v55, %v2060_v54 }
 0x1ad   : > { %5554 = vmatprep.subr.bf16.mxu0 %v6306_v24 }
 0x1af   : > { %1629 = vmatmul.mubr.f32.vlgmr.msra.gmra.mrb[8].mxu0 %v6676_v47  ;;  %v6309_v47 = vmov 0  }
 0x1b0   : > { %5001 = vmatprep.mubr.msk.f32.mxu0 %vm6307_vm1, %v6308_v5  ;;  %5978 = vset.pattern.permute.xlu0 %v6309_v47 }
 0x1b1   : > { %5979 = vset.pattern.permute.xlu1 %v6309_v47  ;;  %1648 = vperm.xlu0 %5978, %v1645_v8   ;;  %v1974_v8 = vld [vmem:[#allocation8 + $0xc0] sm:$0xff] }
 0x1b2   : > { %5556 = vmatpush3.bf16.msra.mxu0 %v5555_v9  ;;  %v1975_v9 = vld [vmem:[#allocation8 + $0xc8] sm:$0xff] }
 0x1b3   : > { %5557 = vmatprep.subr.bf16.mxu0 %v6306_v24 }
 0x1b5   : > { %2466 = vperm.xlu0 %5978, %v2463_v10  }
 0x1b6   : > { %5559 = vmatpush3.bf16.msra.mxu0 %v5558_v13  ;;  %v5567_v13 = vpack.c.bf16 %v1895_v7, %v1894_v6 }
 0x1b7   : > { %5560 = vmatprep.subr.bf16.mxu0 %v6306_v24 }
 0x1ba   : > { %5562 = vmatpush3.bf16.msra.mxu0 %v5561_v59 }
 0x1bb   : > { %5563 = vmatprep.subr.bf16.mxu0 %v6306_v24 }
 0x202   : > { %v4524_v60 = vpop.f32.mrb[0].mxu0 }
 0x203   : > { %v4559_v61 = vpop.f32.mrb[0].mxu1  ;;  %v4525_v62 = vpop.f32.mrb[1].mxu0 }
 0x204   : > { %v4526_v63 = vadd.f32 %v4525_v62, %v4524_v60  ;;  %v4560_v0 = vpop.f32.mrb[1].mxu1  ;;  %v1736_v60 = vld [vmem:[#allocation8 + $0x30] sm:$0xff] }
 0x205   : > { %v4561_v1 = vadd.f32 %v4560_v0, %v4559_v61  ;;  %v1737_v61 = vld [vmem:[#allocation8 + $0x38] sm:$0xff]  ;;  %v1820_v62 = vld [vmem:[#allocation8 + $0x70] sm:$0xff] }
 0x206   : > { %802 = vst.msk [vmem:[#allocation2] sm:$0xff] %vm801_vm0, %v4526_v63  ;;  %v5552_v63 = vpack.c.bf16 %v1737_v61, %v1736_v60  ;;  %v1821_v0 = vld [vmem:[#allocation8 + $0x78] sm:$0xff]  ;;  %v2214_v60 = vld [vmem:[#allocation8 + $0x180] sm:$0xff]  ;;  %v2215_v61 = vld [vmem:[#allocation8 + $0x188] sm:$0xff] }
 0x207   : > { %906 = vst.msk [vmem:[#allocation2 + $0x10] sm:$0xff] %vm801_vm0, %v4561_v1  ;;  %v5564_v1 = vpack.c.bf16 %v1821_v0, %v1820_v62  ;;  %v2294_v62 = vld [vmem:[#allocation8 + $0x1c0] sm:$0xff]  ;;  %v5615_v0 = vpack.c.bf16 %v2215_v61, %v2214_v60 }
 0x209   : > { %5565 = vmatpush3.bf16.msra.mxu0 %v5564_v1 }
 0x20a   : > { %5578 = vmatprep.subr.bf16.mxu0 %v6306_v24 }
 0x20d   : > { %v1636_v2 = vld [vmem:[#allocation2] sm:$0xff] }
 0x20e   : > { %v1637_v3 = vld [vmem:[#allocation2 + $0x10] sm:$0xff] }
 0x20f   : > { %v5531_v4 = vpack.c.bf16 %v1637_v3, %v1636_v2 }
 0x211   : > { %5532 = vmatpush3.bf16.msra.mxu1 %v5531_v4 }
 0x212   : > { %5533 = vmatprep.subr.bf16.mxu1 %v6306_v24 }
 0x222   : > { %v4594_v14 = vpop.f32.mrb[2].mxu0 }
 0x223   : > { %v4629_v15 = vpop.f32.mrb[2].mxu1  ;;  %v4595_v17 = vpop.f32.mrb[3].mxu0 }
 0x224   : > { %v4596_v18 = vadd.f32 %v4595_v17, %v4594_v14  ;;  %v4630_v19 = vpop.f32.mrb[3].mxu1  ;;  %v5579_v14 = vpack.c.bf16 %v1975_v9, %v1974_v8  ;;  %v2218_v8 = vld [vmem:[#allocation8 + $0x1a0] sm:$0xff]  ;;  %v2219_v9 = vld [vmem:[#allocation8 + $0x1a8] sm:$0xff] }
 0x225   : > { %v4631_v20 = vadd.f32 %v4630_v19, %v4629_v15  ;;  %v1896_v15 = vld [vmem:[#allocation8 + $0x90] sm:$0xff] }
 0x226   : > { %1010 = vst.msk [vmem:[#allocation2 + $0x20] sm:$0xff] %vm801_vm0, %v4596_v18  ;;  %v1897_v18 = vld [vmem:[#allocation8 + $0x98] sm:$0xff]  ;;  %v1976_v19 = vld [vmem:[#allocation8 + $0xd0] sm:$0xff] }
 0x227   : > { %1114 = vst.msk [vmem:[#allocation2 + $0x30] sm:$0xff] %vm801_vm0, %v4631_v20  ;;  %v1977_v20 = vld [vmem:[#allocation8 + $0xd8] sm:$0xff] }
 0x22d   : > { %v1638_v21 = vld [vmem:[#allocation2 + $0x20] sm:$0xff] }
 0x22e   : > { %v1639_v22 = vld [vmem:[#allocation2 + $0x30] sm:$0xff] }
 0x22f   : > { %v5534_v23 = vpack.c.bf16 %v1639_v22, %v1638_v21  ;;  %v5570_v21 = vpack.c.bf16 %v1897_v18, %v1896_v15  ;;  %v5582_v22 = vpack.c.bf16 %v1977_v20, %v1976_v19  ;;  %v2221_v15 = vld [vmem:[#allocation8 + $0x1b8] sm:$0xff]  ;;  %v2300_v18 = vld [vmem:[#allocation8 + $0x1f0] sm:$0xff] }
 0x230   : > { %v1649_v2 = vpop.permute.xlu0 %1648  ;;  %v2301_v19 = vld [vmem:[#allocation8 + $0x1f8] sm:$0xff] }
 0x231   : > { %5535 = vmatpush3.bf16.msra.mxu1 %v5534_v23  ;;  %v1898_v23 = vld [vmem:[#allocation8 + $0xa0] sm:$0xff] }
 0x232   : > { %5536 = vmatprep.subr.bf16.mxu1 %v6306_v24 }
 0x242   : > { %v4664_v25 = vpop.f32.mrb[4].mxu0 }
 0x243   : > { %v4699_v26 = vpop.f32.mrb[4].mxu1  ;;  %v4665_v27 = vpop.f32.mrb[5].mxu0 }
 0x244   : > { %v4666_v28 = vadd.f32 %v4665_v27, %v4664_v25  ;;  %v4700_v29 = vpop.f32.mrb[5].mxu1  ;;  %v1899_v25 = vld [vmem:[#allocation8 + $0xa8] sm:$0xff] }
 0x245   : > { %v4701_v30 = vadd.f32 %v4700_v29, %v4699_v26  ;;  %v1978_v26 = vld [vmem:[#allocation8 + $0xe0] sm:$0xff]  ;;  %v1979_v27 = vld [vmem:[#allocation8 + $0xe8] sm:$0xff] }
 0x246   : > { %1218 = vst.msk [vmem:[#allocation2 + $0x40] sm:$0xff] %vm801_vm0, %v4666_v28  ;;  %v5573_v28 = vpack.c.bf16 %v1899_v25, %v1898_v23  ;;  %v5585_v29 = vpack.c.bf16 %v1979_v27, %v1978_v26  ;;  %v2375_v23 = vld [vmem:[#allocation8 + $0x208] sm:$0xff]  ;;  %v2376_v26 = vld [vmem:[#allocation8 + $0x210] sm:$0xff]  ;;  %v2377_v27 = vld [vmem:[#allocation8 + $0x218] sm:$0xff] }
 0x247   : > { %1322 = vst.msk [vmem:[#allocation2 + $0x50] sm:$0xff] %vm801_vm0, %v4701_v30  ;;  %v1900_v30 = vld [vmem:[#allocation8 + $0xb0] sm:$0xff] }
 0x24d   : > { %v1640_v31 = vld [vmem:[#allocation2 + $0x40] sm:$0xff] }
 0x24e   : > { %v1641_v32 = vld [vmem:[#allocation2 + $0x50] sm:$0xff] }
 0x24f   : > { %v5537_v33 = vpack.c.bf16 %v1641_v32, %v1640_v31  ;;  %v1901_v31 = vld [vmem:[#allocation8 + $0xb8] sm:$0xff]  ;;  %v1980_v32 = vld [vmem:[#allocation8 + $0xf0] sm:$0xff] }
 0x251   : > { %5538 = vmatpush3.bf16.msra.mxu1 %v5537_v33  ;;  %v1981_v33 = vld [vmem:[#allocation8 + $0xf8] sm:$0xff] }
 0x252   : > { %5539 = vmatprep.subr.bf16.mxu1 %v6306_v24 }
 0x262   : > { %v4734_v34 = vpop.f32.mrb[6].mxu0 }
 0x263   : > { %v4769_v35 = vpop.f32.mrb[6].mxu1  ;;  %v4735_v36 = vpop.f32.mrb[7].mxu0 }
 0x264   : > { %v4736_v37 = vadd.f32 %v4735_v36, %v4734_v34  ;;  %v4770_v38 = vpop.f32.mrb[7].mxu1  ;;  %v5576_v34 = vpack.c.bf16 %v1901_v31, %v1900_v30  ;;  %v2054_v36 = vld [vmem:[#allocation8 + $0x100] sm:$0xff]  ;;  %v2379_v30 = vld [vmem:[#allocation8 + $0x228] sm:$0xff] }
 0x265   : > { %v4771_v39 = vadd.f32 %v4770_v38, %v4769_v35  ;;  %v5588_v35 = vpack.c.bf16 %v1981_v33, %v1980_v32  ;;  %v2134_v38 = vld [vmem:[#allocation8 + $0x140] sm:$0xff]  ;;  %v2380_v32 = vld [vmem:[#allocation8 + $0x230] sm:$0xff]  ;;  %v2381_v33 = vld [vmem:[#allocation8 + $0x238] sm:$0xff] }
 0x266   : > { %1426 = vst.msk [vmem:[#allocation2 + $0x60] sm:$0xff] %vm801_vm0, %v4736_v37  ;;  %v2055_v37 = vld [vmem:[#allocation8 + $0x108] sm:$0xff] }
 0x267   : > { %1530 = vst.msk [vmem:[#allocation2 + $0x70] sm:$0xff] %vm801_vm0, %v4771_v39  ;;  %v2135_v39 = vld [vmem:[#allocation8 + $0x148] sm:$0xff] }
 0x26d   : > { %v1642_v40 = vld [vmem:[#allocation2 + $0x60] sm:$0xff] }
 0x26e   : > { %v1643_v41 = vld [vmem:[#allocation2 + $0x70] sm:$0xff] }
 0x26f   : > { %v5540_v42 = vpack.c.bf16 %v1643_v41, %v1642_v40  ;;  %v5591_v40 = vpack.c.bf16 %v2055_v37, %v2054_v36  ;;  %v5603_v41 = vpack.c.bf16 %v2135_v39, %v2134_v38 }
 0x271   : > { %5541 = vmatpush3.bf16.msra.mxu1 %v5540_v42  ;;  %v2056_v42 = vld [vmem:[#allocation8 + $0x110] sm:$0xff] }
 0x272   : > { %4961 = vmatprep.subr.mxu1 %v6308_v5 }
 0x282   : > { %v4804_v16 = vpop.f32.mrb[8].mxu0 }
 0x283   : > { %v4805_v43 = vpop.f32.mrb[9].mxu0 }
 0x284   : > { %v4806_v44 = vadd.f32 %v4805_v43, %v4804_v16  ;;  %v2057_v16 = vld [vmem:[#allocation8 + $0x118] sm:$0xff]  ;;  %v2136_v43 = vld [vmem:[#allocation8 + $0x150] sm:$0xff] }
 0x285   : > { %v5594_v45 = vpack.c.bf16 %v2057_v16, %v2056_v42 }
 0x286   : > { %1634 = vst.msk [vmem:[#allocation2 + $0x80] sm:$0xff] %vm801_vm0, %v4806_v44  ;;  %v2137_v44 = vld [vmem:[#allocation8 + $0x158] sm:$0xff] }
 0x287   : > { %v5606_v46 = vpack.c.bf16 %v2137_v44, %v2136_v43 }
 0x28d   : > { %v1644_v50 = vld [vmem:[#allocation2 + $0x80] sm:$0xff] }
 0x28e   : > { %4962 = vmatpush3.msra.mxu1 %v1644_v50  ;;  %v2138_v50 = vld [vmem:[#allocation8 + $0x160] sm:$0xff] }
 0x28f   : > { %4964 = vmatmul.mubr.msk.f32.vlgmr.msra.gmra.mrb[8].mxu1 %vm1651_vm2, %v1635_v48  ;;  %5542 = vmatprep.subr.bf16.mxu1 %v6306_v24  ;;  %v2058_v48 = vld [vmem:[#allocation8 + $0x120] sm:$0xff] }
 0x290   : > { %5544 = vmatpush3.bf16.msra.mxu1 %v5543_v49  ;;  %4982 = vmatprep.mubr.msk.f32.mxu1 %vm6307_vm1, %v6308_v5  ;;  %v2059_v49 = vld [vmem:[#allocation8 + $0x128] sm:$0xff] }
 0x291   : > { %5545 = vmatprep.subr.bf16.mxu1 %v6306_v24  ;;  %v5597_v52 = vpack.c.bf16 %v2059_v49, %v2058_v48 }
 0x294   : > { %5547 = vmatpush3.bf16.msra.mxu1 %v5546_v53  ;;  %v5609_v53 = vpack.c.bf16 %v2139_v51, %v2138_v50 }
 0x295   : > { %5548 = vmatprep.subr.bf16.mxu1 %v6306_v24 }
 0x298   : > { %5550 = vmatpush3.bf16.msra.mxu1 %v5549_v57  ;;  %v2141_v57 = vld [vmem:[#allocation8 + $0x178] sm:$0xff] }
 0x299   : > { %5551 = vmatprep.subr.bf16.mxu1 %v6306_v24  ;;  %v5612_v59 = vpack.c.bf16 %v2141_v57, %v2140_v56 }
 0x29c   : > { %5553 = vmatpush3.bf16.msra.mxu1 %v5552_v63  ;;  %v2295_v63 = vld [vmem:[#allocation8 + $0x1c8] sm:$0xff] }
 0x29d   : > { %5566 = vmatprep.subr.bf16.mxu1 %v6306_v24  ;;  %v5627_v1 = vpack.c.bf16 %v2295_v63, %v2294_v62 }
 0x362   : > { %v1721_v3 = vpop.f32.mrb[8].mxu1 }
 0x363   : > { %v1722_v4 = vadd.f32 %v1721_v3, %v1649_v2  ;;  %v4965_v47 = vpop.f32.mrb[9].mxu1  ;;  %v2216_v2 = vld [vmem:[#allocation8 + $0x190] sm:$0xff]  ;;  %v2217_v3 = vld [vmem:[#allocation8 + $0x198] sm:$0xff] }
 0x364   : > { %v2297_v47 = vld [vmem:[#allocation8 + $0x1d8] sm:$0xff]  ;;  %v5618_v6 = vpack.c.bf16 %v2217_v3, %v2216_v2  ;;  %v2547_v2 = vld [vmem:[#allocation13] sm:$0xff] }
 0x365   : > { %vm1725_vm3 = vcmp.ge.f32.partialorder %v1722_v4, 0.0  ;;  %v1726_v10 = vmul.f32 0.2, %v1722_v4  ;;  %v2548_v3 = vld [vmem:[#allocation13 + $0x8] sm:$0xff] }
 0x367   : > { %v1727_v12 = vsel %vm1725_vm3, %v1722_v4, %v1726_v10  ;;  %v2296_v4 = vld [vmem:[#allocation8 + $0x1d0] sm:$0xff]  ;;  %v2298_v10 = vld [vmem:[#allocation8 + $0x1e0] sm:$0xff] }
 0x368   : > { %v6736_v17 = vadd.f32 %v1728_v11, %v1727_v12  ;;  %v5630_v7 = vpack.c.bf16 %v2297_v47, %v2296_v4  ;;  %v2299_v11 = vld [vmem:[#allocation8 + $0x1e8] sm:$0xff]  ;;  %v5621_v12 = vpack.c.bf16 %v2219_v9, %v2218_v8  ;;  %v2698_v4 = vld [vmem:[#allocation13 + $0x20] sm:$0xff]  ;;  %v5663_v47 = vpack.c.bf16 %v2548_v3, %v2547_v2  ;;  %v2467_v8 = vpop.permute.xlu0 %2466 }
 0x36a   : > { %4983 = vmatmul.mubr.msk.f32.vlgmr.msra.gmra.mrb[10].mxu1 %vm801_vm0, %v6736_v17  ;;  %5002 = vmatmul.mubr.msk.f32.vlgmr.msra.gmra.mrb[10].mxu0 %vm801_vm0, %v6736_v17 }
 0x36b   : > { %5568 = vmatpush3.bf16.msra.mxu1 %v5567_v13  ;;  %5580 = vmatpush3.bf16.msra.mxu0 %v5579_v14  ;;  %v5633_v13 = vpack.c.bf16 %v2299_v11, %v2298_v10  ;;  %v2220_v14 = vld [vmem:[#allocation8 + $0x1b0] sm:$0xff] }
 0x36c   : > { %5569 = vmatprep.subr.bf16.mxu1 %v6306_v24  ;;  %5581 = vmatprep.subr.bf16.mxu0 %v6306_v24  ;;  %v5624_v20 = vpack.c.bf16 %v2221_v15, %v2220_v14  ;;  %v2772_v14 = vld [vmem:[#allocation13 + $0x30] sm:$0xff]  ;;  %v2773_v15 = vld [vmem:[#allocation13 + $0x38] sm:$0xff] }
 0x36d   : > { %5020 = vmatprep.mubr.msk.f32.mxu1 %vm6307_vm1, %v6308_v5  ;;  %5039 = vmatprep.mubr.msk.f32.mxu0 %vm6307_vm1, %v6308_v5 }
 0x36f   : > { %5571 = vmatpush3.bf16.msra.mxu1 %v5570_v21  ;;  %5583 = vmatpush3.bf16.msra.mxu0 %v5582_v22  ;;  %v5636_v21 = vpack.c.bf16 %v2301_v19, %v2300_v18  ;;  %v2374_v22 = vld [vmem:[#allocation8 + $0x200] sm:$0xff]  ;;  %v2545_v19 = vld [vmem:[#allocation11] sm:$0xff] }
 0x370   : > { %5572 = vmatprep.subr.bf16.mxu1 %v6306_v24  ;;  %5584 = vmatprep.subr.bf16.mxu0 %v6306_v24  ;;  %v5639_v25 = vpack.c.bf16 %v2375_v23, %v2374_v22  ;;  %v5672_v22 = vpack.c.bf16 %v2773_v15, %v2772_v14  ;;  %v2846_v23 = vld [vmem:[#allocation13 + $0x40] sm:$0xff] }
 0x373   : > { %5574 = vmatpush3.bf16.msra.mxu1 %v5573_v28  ;;  %5586 = vmatpush3.bf16.msra.mxu0 %v5585_v29  ;;  %v5642_v28 = vpack.c.bf16 %v2377_v27, %v2376_v26  ;;  %v2378_v29 = vld [vmem:[#allocation8 + $0x220] sm:$0xff]  ;;  %v2847_v26 = vld [vmem:[#allocation13 + $0x48] sm:$0xff] }
 0x374   : > { %5575 = vmatprep.subr.bf16.mxu1 %v6306_v24  ;;  %5587 = vmatprep.subr.bf16.mxu0 %v6306_v24  ;;  %v5645_v31 = vpack.c.bf16 %v2379_v30, %v2378_v29  ;;  %v2920_v27 = vld [vmem:[#allocation13 + $0x50] sm:$0xff]  ;;  %v5675_v29 = vpack.c.bf16 %v2847_v26, %v2846_v23 }
 0x377   : > { %5577 = vmatpush3.bf16.msra.mxu1 %v5576_v34  ;;  %5589 = vmatpush3.bf16.msra.mxu0 %v5588_v35  ;;  %v5648_v34 = vpack.c.bf16 %v2381_v33, %v2380_v32  ;;  %v2995_v32 = vld [vmem:[#allocation13 + $0x68] sm:$0xff]  ;;  %v3068_v33 = vld [vmem:[#allocation13 + $0x70] sm:$0xff] }
 0x378   : > { %5590 = vmatprep.subr.bf16.mxu1 %v6306_v24  ;;  %5602 = vmatprep.subr.bf16.mxu0 %v6306_v24 }
 0x37a   : > { %5021 = vmatmul.mubr.msk.f32.vlgmr.msra.gmra.mrb[12].mxu1 %vm801_vm0, %v6736_v17  ;;  %5040 = vmatmul.mubr.msk.f32.vlgmr.msra.gmra.mrb[12].mxu0 %vm801_vm0, %v6736_v17 }
 0x37b   : > { %5592 = vmatpush3.bf16.msra.mxu1 %v5591_v40  ;;  %5604 = vmatpush3.bf16.msra.mxu0 %v5603_v41 }
 0x37c   : > { %5593 = vmatprep.subr.bf16.mxu1 %v6306_v24  ;;  %5605 = vmatprep.subr.bf16.mxu0 %v6306_v24 }
 0x37d   : > { %5058 = vmatprep.mubr.msk.f32.mxu1 %vm6307_vm1, %v6308_v5  ;;  %5077 = vmatprep.mubr.msk.f32.mxu0 %vm6307_vm1, %v6308_v5 }
 0x37f   : > { %5595 = vmatpush3.bf16.msra.mxu1 %v5594_v45  ;;  %5607 = vmatpush3.bf16.msra.mxu0 %v5606_v46 }
 0x380   : > { %5596 = vmatprep.subr.bf16.mxu1 %v6306_v24  ;;  %5608 = vmatprep.subr.bf16.mxu0 %v6306_v24 }
 0x383   : > { %5598 = vmatpush3.bf16.msra.mxu1 %v5597_v52  ;;  %5610 = vmatpush3.bf16.msra.mxu0 %v5609_v53 }
 0x384   : > { %5599 = vmatprep.subr.bf16.mxu1 %v6306_v24  ;;  %5611 = vmatprep.subr.bf16.mxu0 %v6306_v24 }
 0x387   : > { %5601 = vmatpush3.bf16.msra.mxu1 %v5600_v58  ;;  %5613 = vmatpush3.bf16.msra.mxu0 %v5612_v59 }
 0x388   : > { %5614 = vmatprep.subr.bf16.mxu1 %v6306_v24  ;;  %5626 = vmatprep.subr.bf16.mxu0 %v6306_v24 }
 0x38a   : > { %5059 = vmatmul.mubr.msk.f32.vlgmr.msra.gmra.mrb[14].mxu1 %vm801_vm0, %v6736_v17  ;;  %5078 = vmatmul.mubr.msk.f32.vlgmr.msra.gmra.mrb[14].mxu0 %vm801_vm0, %v6736_v17 }
 0x38b   : > { %5616 = vmatpush3.bf16.msra.mxu1 %v5615_v0  ;;  %5628 = vmatpush3.bf16.msra.mxu0 %v5627_v1  ;;  %v2453_v0 = vld [vmem:[#allocation10] sm:$0xff] }
 0x38c   : > { %5617 = vmatprep.subr.bf16.mxu1 %v6306_v24  ;;  %5629 = vmatprep.subr.bf16.mxu0 %v6306_v24 }
 0x38d   : > { %5096 = vmatprep.mubr.msk.f32.mxu1 %vm6307_vm1, %v6308_v5  ;;  %5115 = vmatprep.mubr.msk.f32.mxu0 %vm6307_vm1, %v6308_v5 }
 0x38f   : > { %5619 = vmatpush3.bf16.msra.mxu1 %v5618_v6  ;;  %5631 = vmatpush3.bf16.msra.mxu0 %v5630_v7  ;;  %v2699_v6 = vld [vmem:[#allocation13 + $0x28] sm:$0xff] }
 0x390   : > { %5620 = vmatprep.subr.bf16.mxu1 %v6306_v24  ;;  %5632 = vmatprep.subr.bf16.mxu0 %v6306_v24  ;;  %v5669_v7 = vpack.c.bf16 %v2699_v6, %v2698_v4 }
 0x393   : > { %5622 = vmatpush3.bf16.msra.mxu1 %v5621_v12  ;;  %5634 = vmatpush3.bf16.msra.mxu0 %v5633_v13  ;;  %v2624_v12 = vld [vmem:[#allocation13 + $0x10] sm:$0xff]  ;;  %v2625_v13 = vld [vmem:[#allocation13 + $0x18] sm:$0xff] }
 0x394   : > { %5623 = vmatprep.subr.bf16.mxu1 %v6306_v24  ;;  %5635 = vmatprep.subr.bf16.mxu0 %v6306_v24 }
 0x397   : > { %5625 = vmatpush3.bf16.msra.mxu1 %v5624_v20  ;;  %5637 = vmatpush3.bf16.msra.mxu0 %v5636_v21  ;;  %v5666_v21 = vpack.c.bf16 %v2625_v13, %v2624_v12 }
 0x398   : > { %5638 = vmatprep.subr.bf16.mxu1 %v6306_v24  ;;  %5650 = vmatprep.subr.bf16.mxu0 %v6306_v24 }
 0x39a   : > { %5097 = vmatmul.mubr.msk.f32.vlgmr.msra.gmra.mrb[16].mxu1 %vm801_vm0, %v6736_v17  ;;  %5116 = vmatmul.mubr.msk.f32.vlgmr.msra.gmra.mrb[16].mxu0 %vm801_vm0, %v6736_v17 }
 0x39b   : > { %5640 = vmatpush3.bf16.msra.mxu1 %v5639_v25  ;;  %5134 = vmatprep.mubr.msk.f32.mxu1 %vm6307_vm1, %v6308_v5 }
 0x39c   : > { %5641 = vmatprep.subr.bf16.mxu1 %v6306_v24  ;;  %5155 = vmatprep.mubr.msk.f32.mxu0 %vm6307_vm1, %v6308_v5 }
 0x39f   : > { %5643 = vmatpush3.bf16.msra.mxu1 %v5642_v28  ;;  %v2921_v28 = vld [vmem:[#allocation13 + $0x58] sm:$0xff] }
 0x3a0   : > { %5644 = vmatprep.subr.bf16.mxu1 %v6306_v24  ;;  %v5678_v30 = vpack.c.bf16 %v2921_v28, %v2920_v27  ;;  %v3401_v28 = vld [vmem:[#allocation16 + $0x88] sm:$0xff] }
 0x3a3   : > { %5646 = vmatpush3.bf16.msra.mxu1 %v5645_v31  ;;  %v2994_v31 = vld [vmem:[#allocation13 + $0x60] sm:$0xff] }
 0x3a4   : > { %5647 = vmatprep.subr.bf16.mxu1 %v6306_v24 }
 0x3a7   : > { %5649 = vmatpush3.bf16.msra.mxu1 %v5648_v34  ;;  %v3069_v34 = vld [vmem:[#allocation13 + $0x78] sm:$0xff] }
 0x3a8   : > { %5668 = vmatprep.subr.bf16.mxu1 %v6306_v24 }
 0x3aa   : > { %5135 = vmatmul.mubr.msk.f32.vlgmr.msra.gmra.mrb[18].mxu1 %vm801_vm0, %v6736_v17 }
 0x3ab   : > { %5176 = vmatprep.mubr.msk.f32.mxu1 %vm6307_vm1, %v6308_v5  ;;  %5670 = vmatpush3.bf16.msra.mxu1 %v5669_v7 }
 0x3ac   : > { %5671 = vmatprep.subr.bf16.mxu1 %v6306_v24 }
 0x43d   : > { %v1807_v35 = vpop.f32.mrb[10].mxu1  ;;  %v1888_v36 = vpop.f32.mrb[10].mxu0 }
 0x43e   : > { %1812 = vst.msk [vmem:[#allocation2] sm:$0xff] %vm1811_vm4, %v1807_v35  ;;  %1892 = vst.msk [vmem:[#allocation2 + $0x10] sm:$0xff] %vm1811_vm4, %v1888_v36  ;;  %v4984_v37 = vpop.f32.mrb[11].mxu1  ;;  %v5003_v38 = vpop.f32.mrb[11].mxu0  ;;  %v5681_v35 = vpack.c.bf16 %v2995_v32, %v2994_v31  ;;  %v5684_v36 = vpack.c.bf16 %v3069_v34, %v3068_v33  ;;  %v3402_v31 = vld [vmem:[#allocation16 + $0x90] sm:$0xff]  ;;  %v3405_v32 = vld [vmem:[#allocation16 + $0xa8] sm:$0xff] }
 0x43f   : > { %v3142_v37 = vld [vmem:[#allocation13 + $0x80] sm:$0xff]  ;;  %v3143_v38 = vld [vmem:[#allocation13 + $0x88] sm:$0xff]  ;;  %v3407_v33 = vld [vmem:[#allocation16 + $0xb8] sm:$0xff] }
 0x445   : > { %v2454_v39 = vld [vmem:[#allocation2] sm:$0xff]  ;;  %v2455_v40 = vld [vmem:[#allocation2 + $0x10] sm:$0xff] }
 0x446   : > { %v5651_v41 = vpack.c.bf16 %v2455_v40, %v2454_v39  ;;  %v5687_v39 = vpack.c.bf16 %v3143_v38, %v3142_v37  ;;  %v3308_v40 = vld [vmem:[#allocation16 + $0x8] sm:$0xff]  ;;  %v5721_v38 = vpack.c.bf16 %v3407_v33, %v3405_v32  ;;  %v3500_v32 = vld [vmem:[#allocation16 + $0x150] sm:$0xff] }
 0x448   : > { %5652 = vmatpush3.bf16.msra.mxu0 %v5651_v41  ;;  %v3310_v41 = vld [vmem:[#allocation16 + $0x18] sm:$0xff] }
 0x449   : > { %5653 = vmatprep.subr.bf16.mxu0 %v6306_v24 }
 0x44d   : > { %v1968_v42 = vpop.f32.mrb[12].mxu1  ;;  %v2048_v17 = vpop.f32.mrb[12].mxu0 }
 0x44e   : > { %1972 = vst.msk [vmem:[#allocation2 + $0x20] sm:$0xff] %vm1811_vm4, %v1968_v42  ;;  %2052 = vst.msk [vmem:[#allocation2 + $0x30] sm:$0xff] %vm1811_vm4, %v2048_v17  ;;  %v5022_v16 = vpop.f32.mrb[13].mxu1  ;;  %v5041_v43 = vpop.f32.mrb[13].mxu0  ;;  %v3225_v42 = vld [vmem:[%s687_s2] sm:$0xff]  ;;  %v5701_v17 = vpack.c.bf16 %v3310_v41, %v3308_v40  ;;  %v3406_v40 = vld [vmem:[#allocation16 + $0xb0] sm:$0xff] }
 0x44f   : > { %v3307_v16 = vld [vmem:[#allocation16] sm:$0xff]  ;;  %3228 = vperm.xlu1 %5979, %v3225_v42   ;;  %v3309_v43 = vld [vmem:[#allocation16 + $0x10] sm:$0xff]  ;;  %v3409_v41 = vld [vmem:[#allocation16 + $0xc8] sm:$0xff] }
 0x455   : > { %v2456_v44 = vld [vmem:[#allocation2 + $0x20] sm:$0xff]  ;;  %v2457_v45 = vld [vmem:[#allocation2 + $0x30] sm:$0xff] }
 0x456   : > { %v5654_v46 = vpack.c.bf16 %v2457_v45, %v2456_v44  ;;  %v4138_v44 = vld [vmem:[%s691_s22] sm:$0x7]  ;;  %v5703_v45 = vpack.c.bf16 %v3309_v43, %v3307_v16  ;;  %v3408_v16 = vld [vmem:[#allocation16 + $0xc0] sm:$0xff]  ;;  %v3410_v43 = vld [vmem:[#allocation16 + $0xd0] sm:$0xff] }
 0x457   : > { %4141 = vperm.xlu1 %5979, %v4138_v44   ;;  %v5727_v44 = vpack.c.bf16 %v3410_v43, %v3408_v16 }
 0x458   : > { %5655 = vmatpush3.bf16.msra.mxu0 %v5654_v46  ;;  %v3312_v46 = vld [vmem:[#allocation16 + $0x28] sm:$0xff] }
 0x459   : > { %5656 = vmatprep.subr.bf16.mxu0 %v6306_v24 }
 0x45d   : > { %v2128_v48 = vpop.f32.mrb[14].mxu1  ;;  %v2208_v49 = vpop.f32.mrb[14].mxu0 }
 0x45e   : > { %2132 = vst.msk [vmem:[#allocation2 + $0x40] sm:$0xff] %vm1811_vm4, %v2128_v48  ;;  %2212 = vst.msk [vmem:[#allocation2 + $0x50] sm:$0xff] %vm1811_vm4, %v2208_v49  ;;  %v5060_v50 = vpop.f32.mrb[15].mxu1  ;;  %v5079_v51 = vpop.f32.mrb[15].mxu0  ;;  %v3314_v48 = vld [vmem:[#allocation16 + $0x38] sm:$0xff] }
 0x45f   : > { %v5705_v49 = vpack.c.bf16 %v3314_v48, %v3312_v46  ;;  %v3311_v50 = vld [vmem:[#allocation16 + $0x20] sm:$0xff]  ;;  %v3313_v51 = vld [vmem:[#allocation16 + $0x30] sm:$0xff]  ;;  %v3322_v46 = vld [vmem:[#allocation16 + $0x78] sm:$0xff] }
 0x460   : > { %v3413_v48 = vld [vmem:[#allocation16 + $0xe8] sm:$0xff] }
 0x465   : > { %v2458_v52 = vld [vmem:[#allocation2 + $0x40] sm:$0xff]  ;;  %v2459_v53 = vld [vmem:[#allocation2 + $0x50] sm:$0xff] }
 0x466   : > { %v5657_v54 = vpack.c.bf16 %v2459_v53, %v2458_v52  ;;  %v5707_v52 = vpack.c.bf16 %v3313_v51, %v3311_v50  ;;  %v3316_v53 = vld [vmem:[#allocation16 + $0x48] sm:$0xff]  ;;  %v3415_v50 = vld [vmem:[#allocation16 + $0xf8] sm:$0xff]  ;;  %v3319_v51 = vld [vmem:[#allocation16 + $0x60] sm:$0xff] }
 0x468   : > { %5658 = vmatpush3.bf16.msra.mxu0 %v5657_v54  ;;  %v3318_v54 = vld [vmem:[#allocation16 + $0x58] sm:$0xff] }
 0x469   : > { %5659 = vmatprep.subr.bf16.mxu0 %v6306_v24 }
 0x46d   : > { %v2288_v55 = vpop.f32.mrb[16].mxu1  ;;  %v2368_v56 = vpop.f32.mrb[16].mxu0 }
 0x46e   : > { %2292 = vst.msk [vmem:[#allocation2 + $0x60] sm:$0xff] %vm1811_vm4, %v2288_v55  ;;  %2372 = vst.msk [vmem:[#allocation2 + $0x70] sm:$0xff] %vm1811_vm4, %v2368_v56  ;;  %v5098_v57 = vpop.f32.mrb[17].mxu1  ;;  %v5117_v58 = vpop.f32.mrb[17].mxu0  ;;  %v5709_v55 = vpack.c.bf16 %v3318_v54, %v3316_v53  ;;  %v3315_v56 = vld [vmem:[#allocation16 + $0x40] sm:$0xff]  ;;  %v5729_v53 = vpack.c.bf16 %v3415_v50, %v3413_v48  ;;  %v3673_v48 = vld [vmem:[#allocation16 + $0x218] sm:$0xff] }
 0x46f   : > { %v3317_v57 = vld [vmem:[#allocation16 + $0x50] sm:$0xff]  ;;  %v3763_v50 = vld [vmem:[#allocation16 + $0x298] sm:$0xff] }
 0x470   : > { %v5711_v58 = vpack.c.bf16 %v3317_v57, %v3315_v56  ;;  %v3414_v56 = vld [vmem:[#allocation16 + $0xf0] sm:$0xff] }
 0x475   : > { %v2460_v59 = vld [vmem:[#allocation2 + $0x60] sm:$0xff]  ;;  %v2461_v60 = vld [vmem:[#allocation2 + $0x70] sm:$0xff] }
 0x476   : > { %v5660_v61 = vpack.c.bf16 %v2461_v60, %v2460_v59 }
 0x478   : > { %5661 = vmatpush3.bf16.msra.mxu0 %v5660_v61 }
 0x479   : > { %5153 = vmatprep.subr.mxu0 %v6308_v5 }
 0x47d   : > { %v2448_v62 = vpop.f32.mrb[18].mxu1 }
 0x47e   : > { %2452 = vst.msk [vmem:[#allocation2 + $0x80] sm:$0xff] %vm1811_vm4, %v2448_v62  ;;  %v5136_v63 = vpop.f32.mrb[19].mxu1 }
 0x485   : > { %v2462_v1 = vld [vmem:[#allocation2 + $0x80] sm:$0xff] }
 0x486   : > { %5154 = vmatpush3.msra.mxu0 %v2462_v1 }
 0x487   : > { %5156 = vmatmul.mubr.msk.f32.vlgmr.msra.gmra.mrb[18].mxu0 %vm1651_vm2, %v2453_v0  ;;  %5662 = vmatprep.subr.bf16.mxu0 %v6306_v24 }
 0x488   : > { %5162 = vmatprep.mubr.msk.f32.mxu0 %vm6307_vm1, %v6308_v5  ;;  %5664 = vmatpush3.bf16.msra.mxu0 %v5663_v47 }
 0x489   : > { %5665 = vmatprep.subr.bf16.mxu0 %v6306_v24 }
 0x55a   : > { %v2538_v9 = vpop.f32.mrb[18].mxu0 }
 0x55b   : > { %v2539_v10 = vadd.f32 %v2538_v9, %v2467_v8  ;;  %v5157_v11 = vpop.f32.mrb[19].mxu0 }
 0x55d   : > { %vm2542_vm5 = vcmp.ge.f32.partialorder %v2539_v10, 0.0  ;;  %v2543_v18 = vmul.f32 0.2, %v2539_v10 }
 0x55f   : > { %v2544_v20 = vsel %vm2542_vm5, %v2539_v10, %v2543_v18 }
 0x560   : > { %v2546_v25 = vadd.f32 %v2545_v19, %v2544_v20 }
 0x562   : > { %5163 = vmatmul.mubr.msk.f32.vlgmr.msra.gmra.mrb[20].mxu0 %vm1811_vm4, %v2546_v25  ;;  %5177 = vmatmul.mubr.msk.f32.vlgmr.msra.gmra.mrb[20].mxu1 %vm1811_vm4, %v2546_v25 }
 0x563   : > { %5667 = vmatpush3.bf16.msra.mxu0 %v5666_v21  ;;  %5673 = vmatpush3.bf16.msra.mxu1 %v5672_v22 }
 0x564   : > { %5169 = vmatprep.mubr.msk.f32.mxu0 %vm6307_vm1, %v6308_v5  ;;  %5183 = vmatprep.mubr.msk.f32.mxu1 %vm6307_vm1, %v6308_v5 }
 0x565   : > { %5674 = vmatprep.subr.bf16.mxu0 %v6306_v24  ;;  %5677 = vmatprep.subr.bf16.mxu1 %v6306_v24 }
 0x566   : > { %5170 = vmatmul.mubr.msk.f32.vlgmr.msra.gmra.mrb[22].mxu0 %vm1811_vm4, %v2546_v25  ;;  %5184 = vmatmul.mubr.msk.f32.vlgmr.msra.gmra.mrb[22].mxu1 %vm1811_vm4, %v2546_v25 }
 0x567   : > { %5676 = vmatpush3.bf16.msra.mxu0 %v5675_v29  ;;  %5679 = vmatpush3.bf16.msra.mxu1 %v5678_v30  ;;  %v3403_v29 = vld [vmem:[#allocation16 + $0x98] sm:$0xff]  ;;  %v3400_v30 = vld [vmem:[#allocation16 + $0x80] sm:$0xff] }
 0x568   : > { %5190 = vmatprep.mubr.msk.f32.mxu0 %vm6307_vm1, %v6308_v5  ;;  %5197 = vmatprep.mubr.msk.f32.mxu1 %vm6307_vm1, %v6308_v5  ;;  %v5717_v34 = vpack.c.bf16 %v3403_v29, %v3401_v28  ;;  %v3591_v28 = vld [vmem:[#allocation16 + $0x1d8] sm:$0xff] }
 0x569   : > { %5680 = vmatprep.subr.bf16.mxu0 %v6306_v24  ;;  %5683 = vmatprep.subr.bf16.mxu1 %v6306_v24 }
 0x56a   : > { %5191 = vmatmul.mubr.msk.f32.vlgmr.msra.gmra.mrb[24].mxu0 %vm1811_vm4, %v2546_v25  ;;  %5198 = vmatmul.mubr.msk.f32.vlgmr.msra.gmra.mrb[24].mxu1 %vm1811_vm4, %v2546_v25 }
 0x56b   : > { %5682 = vmatpush3.bf16.msra.mxu0 %v5681_v35  ;;  %5685 = vmatpush3.bf16.msra.mxu1 %v5684_v36  ;;  %v3215_v35 = vld [vmem:[#allocation14] sm:$0xff]  ;;  %v5719_v36 = vpack.c.bf16 %v3402_v31, %v3400_v30  ;;  %v3498_v31 = vld [vmem:[#allocation16 + $0x140] sm:$0xff] }
 0x56c   : > { %5204 = vmatprep.mubr.msk.f32.mxu0 %vm6307_vm1, %v6308_v5  ;;  %5211 = vmatprep.mubr.msk.f32.mxu1 %vm6307_vm1, %v6308_v5 }
 0x56d   : > { %5686 = vmatprep.subr.bf16.mxu0 %v6306_v24  ;;  %5689 = vmatprep.subr.bf16.mxu1 %v6306_v24 }
 0x56e   : > { %5205 = vmatmul.mubr.msk.f32.vlgmr.msra.gmra.mrb[26].mxu0 %vm1811_vm4, %v2546_v25  ;;  %5212 = vmatmul.mubr.msk.f32.vlgmr.msra.gmra.mrb[26].mxu1 %vm1811_vm4, %v2546_v25 }
 0x56f   : > { %5688 = vmatpush3.bf16.msra.mxu0 %v5687_v39  ;;  %5218 = vmatprep.mubr.msk.f32.mxu0 %vm6307_vm1, %v6308_v5  ;;  %v3404_v39 = vld [vmem:[#allocation16 + $0xa0] sm:$0xff] }
 0x570   : > { %5239 = vmatprep.mubr.msk.f32.mxu1 %vm6307_vm1, %v6308_v5  ;;  %5702 = vmatprep.subr.bf16.mxu0 %v5701_v17  ;;  %v5723_v42 = vpack.c.bf16 %v3406_v40, %v3404_v39  ;;  %v3593_v39 = vld [vmem:[#allocation16 + $0x1e8] sm:$0xff]  ;;  %v3595_v40 = vld [vmem:[#allocation16 + $0x1f8] sm:$0xff] }
 0x571   : > { %v5761_v43 = vpack.c.bf16 %v3595_v40, %v3593_v39 }
 0x572   : > { %5219 = vmatmul.mubr.msk.f32.vlgmr.msra.gmra.mrb[28].mxu0 %vm1811_vm4, %v2546_v25 }
 0x573   : > { %3390 = vmatprep.mubr.f32.mxu0 %v6308_v5  ;;  %5704 = vmatpush1.bf16.msra.mxu0 %v5703_v45  ;;  %v3320_v45 = vld [vmem:[#allocation16 + $0x68] sm:$0xff] }
 0x574   : > { %5706 = vmatprep.subr.bf16.mxu0 %v5705_v49  ;;  %v5713_v49 = vpack.c.bf16 %v3322_v46, %v3320_v45  ;;  %v3594_v45 = vld [vmem:[#allocation16 + $0x1f0] sm:$0xff]  ;;  %v3671_v46 = vld [vmem:[#allocation16 + $0x208] sm:$0xff] }
 0x577   : > { %5708 = vmatpush1.bf16.msra.mxu0 %v5707_v52  ;;  %v3321_v52 = vld [vmem:[#allocation16 + $0x70] sm:$0xff] }
 0x578   : > { %5710 = vmatprep.subr.bf16.mxu0 %v5709_v55  ;;  %v5715_v54 = vpack.c.bf16 %v3321_v52, %v3319_v51  ;;  %v3412_v55 = vld [vmem:[#allocation16 + $0xe0] sm:$0xff] }
 0x579   : > { %v5731_v57 = vpack.c.bf16 %v3414_v56, %v3412_v55  ;;  %v5765_v55 = vpack.c.bf16 %v3673_v48, %v3671_v46  ;;  %v3945_v46 = vld [vmem:[#allocation16 + $0x3a8] sm:$0xff]  ;;  %v3947_v48 = vld [vmem:[#allocation16 + $0x3b8] sm:$0xff] }
 0x57b   : > { %5712 = vmatpush1.bf16.msra.mxu0 %v5711_v58  ;;  %v3491_v58 = vld [vmem:[#allocation16 + $0x108] sm:$0xff] }
 0x57c   : > { %5714 = vmatprep.subr.bf16.mxu0 %v5713_v49  ;;  %v3761_v49 = vld [vmem:[#allocation16 + $0x288] sm:$0xff] }
 0x57d   : > { %v5781_v56 = vpack.c.bf16 %v3763_v50, %v3761_v49 }
 0x57f   : > { %5716 = vmatpush1.bf16.msra.mxu0 %v5715_v54  ;;  %v3672_v54 = vld [vmem:[#allocation16 + $0x210] sm:$0xff] }
 0x635   : > { %v2618_v59 = vpop.f32.mrb[20].mxu0  ;;  %v2766_v60 = vpop.f32.mrb[20].mxu1 }
 0x636   : > { %2622 = vst.msk [vmem:[#allocation2] sm:$0xff] %vm801_vm0, %v2618_v59  ;;  %2770 = vst.msk [vmem:[#allocation2 + $0x20] sm:$0xff] %vm801_vm0, %v2766_v60  ;;  %v5164_v61 = vpop.f32.mrb[21].mxu0  ;;  %v5178_v62 = vpop.f32.mrb[21].mxu1  ;;  %v3493_v59 = vld [vmem:[#allocation16 + $0x118] sm:$0xff]  ;;  %v3581_v60 = vld [vmem:[#allocation16 + $0x188] sm:$0xff] }
 0x637   : > { %v5733_v61 = vpack.c.bf16 %v3493_v59, %v3491_v58  ;;  %v3583_v62 = vld [vmem:[#allocation16 + $0x198] sm:$0xff]  ;;  %v3762_v58 = vld [vmem:[#allocation16 + $0x290] sm:$0xff]  ;;  %v3675_v59 = vld [vmem:[#allocation16 + $0x228] sm:$0xff] }
 0x639   : > { %v2692_v63 = vpop.f32.mrb[22].mxu0  ;;  %v2840_v0 = vpop.f32.mrb[22].mxu1  ;;  %5734 = vmatprep.subr.bf16.mxu0 %v5733_v61  ;;  %v3765_v61 = vld [vmem:[#allocation16 + $0x2a8] sm:$0xff] }
 0x63a   : > { %2696 = vst.msk [vmem:[#allocation2 + $0x10] sm:$0xff] %vm801_vm0, %v2692_v63  ;;  %2844 = vst.msk [vmem:[#allocation2 + $0x30] sm:$0xff] %vm801_vm0, %v2840_v0  ;;  %v5171_v1 = vpop.f32.mrb[23].mxu0  ;;  %v5185_v2 = vpop.f32.mrb[23].mxu1  ;;  %v5749_v63 = vpack.c.bf16 %v3583_v62, %v3581_v60  ;;  %v3490_v0 = vld [vmem:[#allocation16 + $0x100] sm:$0xff]  ;;  %v3677_v60 = vld [vmem:[#allocation16 + $0x238] sm:$0xff] }
 0x63b   : > { %v3492_v1 = vld [vmem:[#allocation16 + $0x110] sm:$0xff]  ;;  %v3229_v2 = vpop.permute.xlu1 %3228  ;;  %v3767_v62 = vld [vmem:[#allocation16 + $0x2b8] sm:$0xff] }
 0x63d   : > { %v2914_v3 = vpop.f32.mrb[24].mxu0  ;;  %v2988_v4 = vpop.f32.mrb[24].mxu1  ;;  %v3216_v9 = vld [vmem:[#allocation2] sm:$0xff] }
 0x63e   : > { %2918 = vst.msk [vmem:[#allocation2 + $0x40] sm:$0xff] %vm801_vm0, %v2914_v3  ;;  %2992 = vst.msk [vmem:[#allocation2 + $0x50] sm:$0xff] %vm801_vm0, %v2988_v4  ;;  %v5192_v47 = vpop.f32.mrb[25].mxu0  ;;  %v5199_v6 = vpop.f32.mrb[25].mxu1  ;;  %v3218_v18 = vld [vmem:[#allocation2 + $0x20] sm:$0xff]  ;;  %v3580_v4 = vld [vmem:[#allocation16 + $0x180] sm:$0xff] }
 0x63f   : > { %v3582_v47 = vld [vmem:[#allocation16 + $0x190] sm:$0xff]  ;;  %v3495_v6 = vld [vmem:[#allocation16 + $0x128] sm:$0xff] }
 0x641   : > { %v3062_v7 = vpop.f32.mrb[26].mxu0  ;;  %v3136_v8 = vpop.f32.mrb[26].mxu1  ;;  %v3217_v10 = vld [vmem:[#allocation2 + $0x10] sm:$0xff] }
 0x642   : > { %3066 = vst.msk [vmem:[#allocation2 + $0x60] sm:$0xff] %vm801_vm0, %v3062_v7  ;;  %3140 = vst.msk [vmem:[#allocation2 + $0x70] sm:$0xff] %vm801_vm0, %v3136_v8  ;;  %v5206_v11 = vpop.f32.mrb[27].mxu0  ;;  %v5213_v12 = vpop.f32.mrb[27].mxu1  ;;  %v5690_v13 = vpack.c.bf16 %v3217_v10, %v3216_v9  ;;  %v3219_v14 = vld [vmem:[#allocation2 + $0x30] sm:$0xff]  ;;  %v3497_v9 = vld [vmem:[#allocation16 + $0x138] sm:$0xff] }
 0x643   : > { %v5693_v20 = vpack.c.bf16 %v3219_v14, %v3218_v18  ;;  %v3585_v10 = vld [vmem:[#allocation16 + $0x1a8] sm:$0xff]  ;;  %v3587_v11 = vld [vmem:[#allocation16 + $0x1b8] sm:$0xff]  ;;  %v5751_v14 = vpack.c.bf16 %v3582_v47, %v3580_v4  ;;  %v3496_v18 = vld [vmem:[#allocation16 + $0x130] sm:$0xff]  ;;  %v5785_v4 = vpack.c.bf16 %v3767_v62, %v3765_v61 }
 0x644   : > { %5691 = vmatpush3.bf16.msra.mxu1 %v5690_v13  ;;  %v5735_v13 = vpack.c.bf16 %v3492_v1, %v3490_v0  ;;  %v3674_v1 = vld [vmem:[#allocation16 + $0x220] sm:$0xff] }
 0x645   : > { %v3210_v15 = vpop.f32.mrb[28].mxu0  ;;  %5692 = vmatprep.subr.bf16.mxu1 %v6306_v24  ;;  %v3220_v21 = vld [vmem:[#allocation2 + $0x40] sm:$0xff]  ;;  %v3221_v22 = vld [vmem:[#allocation2 + $0x50] sm:$0xff]  ;;  %v3764_v47 = vld [vmem:[#allocation16 + $0x2a0] sm:$0xff] }
 0x646   : > { %3214 = vst.msk [vmem:[#allocation2 + $0x80] sm:$0xff] %vm801_vm0, %v3210_v15  ;;  %v5220_v19 = vpop.f32.mrb[29].mxu0  ;;  %v5696_v23 = vpack.c.bf16 %v3221_v22, %v3220_v21  ;;  %v3494_v15 = vld [vmem:[#allocation16 + $0x120] sm:$0xff]  ;;  %v3586_v22 = vld [vmem:[#allocation16 + $0x1b0] sm:$0xff] }
 0x647   : > { %v5737_v19 = vpack.c.bf16 %v3497_v9, %v3495_v6  ;;  %v3584_v21 = vld [vmem:[#allocation16 + $0x1a0] sm:$0xff]  ;;  %v5739_v29 = vpack.c.bf16 %v3496_v18, %v3494_v15  ;;  %v3766_v6 = vld [vmem:[#allocation16 + $0x2b0] sm:$0xff]  ;;  %v3769_v9 = vld [vmem:[#allocation16 + $0x2c8] sm:$0xff] }
 0x648   : > { %5694 = vmatpush3.bf16.msra.mxu1 %v5693_v20  ;;  %v5753_v20 = vpack.c.bf16 %v3587_v11, %v3585_v10  ;;  %v5755_v30 = vpack.c.bf16 %v3586_v22, %v3584_v21  ;;  %v3771_v10 = vld [vmem:[#allocation16 + $0x2d8] sm:$0xff]  ;;  %v3683_v21 = vld [vmem:[#allocation16 + $0x268] sm:$0xff] }
 0x649   : > { %5695 = vmatprep.subr.bf16.mxu1 %v6306_v24  ;;  %v3222_v25 = vld [vmem:[#allocation2 + $0x60] sm:$0xff]  ;;  %v3223_v26 = vld [vmem:[#allocation2 + $0x70] sm:$0xff]  ;;  %v5789_v18 = vpack.c.bf16 %v3771_v10, %v3769_v9 }
 0x64a   : > { %v5699_v27 = vpack.c.bf16 %v3223_v26, %v3222_v25  ;;  %v3501_v26 = vld [vmem:[#allocation16 + $0x158] sm:$0xff] }
 0x64b   : > { %v3685_v22 = vld [vmem:[#allocation16 + $0x278] sm:$0xff] }
 0x64c   : > { %5697 = vmatpush3.bf16.msra.mxu1 %v5696_v23  ;;  %v3499_v23 = vld [vmem:[#allocation16 + $0x148] sm:$0xff] }
 0x64d   : > { %5698 = vmatprep.subr.bf16.mxu1 %v6306_v24  ;;  %v3224_v37 = vld [vmem:[#allocation2 + $0x80] sm:$0xff]  ;;  %v5741_v33 = vpack.c.bf16 %v3501_v26, %v3499_v23  ;;  %v3773_v23 = vld [vmem:[#allocation16 + $0x2e8] sm:$0xff] }
 0x64e   : > { %v3411_v24 = vld [vmem:[#allocation16 + $0xd8] sm:$0xff] }
 0x64f   : > { %v5725_v17 = vpack.c.bf16 %v3411_v24, %v3409_v41  ;;  %v5743_v41 = vpack.c.bf16 %v3500_v32, %v3498_v31  ;;  %v3775_v26 = vld [vmem:[#allocation16 + $0x2f8] sm:$0xff]  ;;  %v5777_v31 = vpack.c.bf16 %v3685_v22, %v3683_v21 }
 0x650   : > { %5700 = vmatpush3.bf16.msra.mxu1 %v5699_v27  ;;  %v3589_v27 = vld [vmem:[#allocation16 + $0x1c8] sm:$0xff]  ;;  %v5793_v32 = vpack.c.bf16 %v3775_v26, %v3773_v23  ;;  %v4030_v26 = vld [vmem:[#allocation16 + $0x400] sm:$0xff] }
 0x651   : > { %5237 = vmatprep.subr.mxu1 %v6308_v5 }
 0x654   : > { %5238 = vmatpush3.msra.mxu1 %v3224_v37  ;;  %v3503_v37 = vld [vmem:[#allocation16 + $0x168] sm:$0xff] }
 0x655   : > { %5240 = vmatmul.mubr.msk.f32.vlgmr.msra.gmra.mrb[28].mxu1 %vm1651_vm2, %v3215_v35  ;;  %5718 = vmatprep.subr.bf16.mxu1 %v5717_v34  ;;  %v5757_v34 = vpack.c.bf16 %v3591_v28, %v3589_v27  ;;  %v3588_v35 = vld [vmem:[#allocation16 + $0x1c0] sm:$0xff] }
 0x656   : > { %5720 = vmatpush1.bf16.msra.mxu1 %v5719_v36  ;;  %3480 = vmatprep.mubr.f32.mxu1 %v6308_v5  ;;  %v3590_v36 = vld [vmem:[#allocation16 + $0x1d0] sm:$0xff] }
 0x657   : > { %5722 = vmatprep.subr.bf16.mxu1 %v5721_v38  ;;  %v3505_v38 = vld [vmem:[#allocation16 + $0x178] sm:$0xff]  ;;  %v5759_v24 = vpack.c.bf16 %v3590_v36, %v3588_v35  ;;  %v3851_v35 = vld [vmem:[#allocation16 + $0x308] sm:$0xff] }
 0x658   : > { %v5745_v16 = vpack.c.bf16 %v3505_v38, %v3503_v37  ;;  %v3853_v36 = vld [vmem:[#allocation16 + $0x318] sm:$0xff]  ;;  %v3941_v37 = vld [vmem:[#allocation16 + $0x388] sm:$0xff] }
 0x659   : > { %v3943_v38 = vld [vmem:[#allocation16 + $0x398] sm:$0xff] }
 0x65a   : > { %5724 = vmatpush1.bf16.msra.mxu1 %v5723_v42  ;;  %v3502_v42 = vld [vmem:[#allocation16 + $0x160] sm:$0xff] }
 0x65b   : > { %5726 = vmatprep.subr.bf16.mxu1 %v5725_v17  ;;  %v3504_v17 = vld [vmem:[#allocation16 + $0x170] sm:$0xff] }
 0x65c   : > { %v5747_v51 = vpack.c.bf16 %v3504_v17, %v3502_v42  ;;  %v5797_v42 = vpack.c.bf16 %v3853_v36, %v3851_v35  ;;  %v5813_v17 = vpack.c.bf16 %v3943_v38, %v3941_v37  ;;  %v4041_v35 = vld [vmem:[#allocation16 + $0x458] sm:$0xff]  ;;  %v4038_v38 = vld [vmem:[#allocation16 + $0x440] sm:$0xff] }
 0x65e   : > { %5728 = vmatpush1.bf16.msra.mxu1 %v5727_v44  ;;  %v3592_v44 = vld [vmem:[#allocation16 + $0x1e0] sm:$0xff] }
 0x65f   : > { %5730 = vmatprep.subr.bf16.mxu1 %v5729_v53  ;;  %v5763_v52 = vpack.c.bf16 %v3594_v45, %v3592_v44  ;;  %v3670_v53 = vld [vmem:[#allocation16 + $0x200] sm:$0xff]  ;;  %v3855_v44 = vld [vmem:[#allocation16 + $0x328] sm:$0xff]  ;;  %v3857_v45 = vld [vmem:[#allocation16 + $0x338] sm:$0xff] }
 0x662   : > { %5732 = vmatpush1.bf16.msra.mxu1 %v5731_v57  ;;  %v3760_v57 = vld [vmem:[#allocation16 + $0x280] sm:$0xff] }
 0x663   : > { %5750 = vmatprep.subr.bf16.mxu1 %v5749_v63  ;;  %v5767_v63 = vpack.c.bf16 %v3672_v54, %v3670_v53  ;;  %v5783_v0 = vpack.c.bf16 %v3762_v58, %v3760_v57  ;;  %v5801_v53 = vpack.c.bf16 %v3857_v45, %v3855_v44  ;;  %v5817_v54 = vpack.c.bf16 %v3947_v48, %v3945_v46  ;;  %v3859_v57 = vld [vmem:[#allocation16 + $0x348] sm:$0xff]  ;;  %v3861_v58 = vld [vmem:[#allocation16 + $0x358] sm:$0xff] }
 0x728   : > { %v3300_v3 = vpop.f32.mrb[28].mxu1 }
 0x729   : > { %v3301_v7 = vadd.f32 %v3300_v3, %v3229_v2  ;;  %v5241_v8 = vpop.f32.mrb[29].mxu1  ;;  %v3676_v2 = vld [vmem:[#allocation16 + $0x230] sm:$0xff]  ;;  %v5769_v3 = vpack.c.bf16 %v3677_v60, %v3675_v59  ;;  %v3949_v59 = vld [vmem:[#allocation16 + $0x3c8] sm:$0xff]  ;;  %v3951_v60 = vld [vmem:[#allocation16 + $0x3d8] sm:$0xff] }
 0x72a   : > { %v3681_v8 = vld [vmem:[#allocation16 + $0x258] sm:$0xff]  ;;  %v5771_v11 = vpack.c.bf16 %v3676_v2, %v3674_v1  ;;  %v5805_v1 = vpack.c.bf16 %v3861_v58, %v3859_v57  ;;  %v5821_v2 = vpack.c.bf16 %v3951_v60, %v3949_v59 }
 0x72b   : > { %vm3304_vm6 = vcmp.ge.f32.partialorder %v3301_v7, 0.0  ;;  %v3305_v12 = vmul.f32 0.2, %v3301_v7 }
 0x72d   : > { %v6876_v25 = vsel %vm3304_vm6, %v3301_v7, %v3305_v12  ;;  %v3679_v7 = vld [vmem:[#allocation16 + $0x248] sm:$0xff]  ;;  %v5787_v12 = vpack.c.bf16 %v3766_v6, %v3764_v47  ;;  %v3865_v6 = vld [vmem:[#allocation16 + $0x378] sm:$0xff] }
 0x72e   : > { %4478 = vmatmul.mubr.msk.f32.vlgmr.msra.gmra.mrb[30].mxu0 %vm801_vm0, %v6876_v25  ;;  %4479 = vmatmul.mubr.msk.f32.vlgmr.msra.gmra.mrb[30].mxu1 %vm801_vm0, %v6876_v25  ;;  %v5773_v15 = vpack.c.bf16 %v3681_v8, %v3679_v7  ;;  %v3863_v47 = vld [vmem:[#allocation16 + $0x368] sm:$0xff]  ;;  %v3955_v8 = vld [vmem:[#allocation16 + $0x3f8] sm:$0xff] }
 0x72f   : > { %5736 = vmatpush1.bf16.msra.mxu0 %v5735_v13  ;;  %5752 = vmatpush1.bf16.msra.mxu1 %v5751_v14  ;;  %v3678_v13 = vld [vmem:[#allocation16 + $0x240] sm:$0xff]  ;;  %v3680_v14 = vld [vmem:[#allocation16 + $0x250] sm:$0xff]  ;;  %v3953_v7 = vld [vmem:[#allocation16 + $0x3e8] sm:$0xff] }
 0x730   : > { %5738 = vmatprep.subr.bf16.mxu0 %v5737_v19  ;;  %5754 = vmatprep.subr.bf16.mxu1 %v5753_v20  ;;  %v3768_v19 = vld [vmem:[#allocation16 + $0x2c0] sm:$0xff]  ;;  %v3770_v20 = vld [vmem:[#allocation16 + $0x2d0] sm:$0xff]  ;;  %v5775_v27 = vpack.c.bf16 %v3680_v14, %v3678_v13  ;;  %v5825_v13 = vpack.c.bf16 %v3955_v8, %v3953_v7 }
 0x731   : > { %3570 = vmatprep.mubr.f32.mxu0 %v6308_v5  ;;  %3660 = vmatprep.mubr.f32.mxu1 %v6308_v5  ;;  %v5791_v28 = vpack.c.bf16 %v3770_v20, %v3768_v19  ;;  %v3864_v14 = vld [vmem:[#allocation16 + $0x370] sm:$0xff]  ;;  %v4031_v19 = vld [vmem:[#allocation16 + $0x408] sm:$0xff]  ;;  %v4033_v20 = vld [vmem:[#allocation16 + $0x418] sm:$0xff] }
 0x732   : > { %v5829_v23 = vpack.c.bf16 %v4033_v20, %v4031_v19 }
 0x733   : > { %5740 = vmatpush1.bf16.msra.mxu0 %v5739_v29  ;;  %5756 = vmatpush1.bf16.msra.mxu1 %v5755_v30  ;;  %v3682_v29 = vld [vmem:[#allocation16 + $0x260] sm:$0xff]  ;;  %v3684_v30 = vld [vmem:[#allocation16 + $0x270] sm:$0xff] }
 0x734   : > { %5742 = vmatprep.subr.bf16.mxu0 %v5741_v33  ;;  %5758 = vmatprep.subr.bf16.mxu1 %v5757_v34  ;;  %v3772_v33 = vld [vmem:[#allocation16 + $0x2e0] sm:$0xff]  ;;  %v3774_v34 = vld [vmem:[#allocation16 + $0x2f0] sm:$0xff]  ;;  %v5779_v39 = vpack.c.bf16 %v3684_v30, %v3682_v29  ;;  %v4037_v29 = vld [vmem:[#allocation16 + $0x438] sm:$0xff] }
 0x735   : > { %v5795_v40 = vpack.c.bf16 %v3774_v34, %v3772_v33  ;;  %v4036_v33 = vld [vmem:[#allocation16 + $0x430] sm:$0xff]  ;;  %v4039_v34 = vld [vmem:[#allocation16 + $0x448] sm:$0xff] }
 0x736   : > { %v5837_v37 = vpack.c.bf16 %v4041_v35, %v4039_v34 }
 0x737   : > { %5744 = vmatpush1.bf16.msra.mxu0 %v5743_v41  ;;  %5760 = vmatpush1.bf16.msra.mxu1 %v5759_v24  ;;  %v3850_v41 = vld [vmem:[#allocation16 + $0x300] sm:$0xff]  ;;  %v3852_v24 = vld [vmem:[#allocation16 + $0x310] sm:$0xff] }
 0x738   : > { %5746 = vmatprep.subr.bf16.mxu0 %v5745_v16  ;;  %5762 = vmatprep.subr.bf16.mxu1 %v5761_v43  ;;  %v3940_v16 = vld [vmem:[#allocation16 + $0x380] sm:$0xff]  ;;  %v3942_v43 = vld [vmem:[#allocation16 + $0x390] sm:$0xff]  ;;  %v5799_v49 = vpack.c.bf16 %v3852_v24, %v3850_v41  ;;  %v4045_v41 = vld [vmem:[#allocation16 + $0x478] sm:$0xff] }
 0x739   : > { %v5815_v50 = vpack.c.bf16 %v3942_v43, %v3940_v16  ;;  %v4044_v16 = vld [vmem:[#allocation16 + $0x470] sm:$0xff] }
 0x73b   : > { %5748 = vmatpush1.bf16.msra.mxu0 %v5747_v51  ;;  %5764 = vmatpush1.bf16.msra.mxu1 %v5763_v52  ;;  %v3854_v51 = vld [vmem:[#allocation16 + $0x320] sm:$0xff]  ;;  %v3856_v52 = vld [vmem:[#allocation16 + $0x330] sm:$0xff] }
 0x73c   : > { %5766 = vmatprep.subr.bf16.mxu0 %v5765_v55  ;;  %5782 = vmatprep.subr.bf16.mxu1 %v5781_v56  ;;  %v3944_v55 = vld [vmem:[#allocation16 + $0x3a0] sm:$0xff]  ;;  %v3946_v56 = vld [vmem:[#allocation16 + $0x3b0] sm:$0xff]  ;;  %v5803_v61 = vpack.c.bf16 %v3856_v52, %v3854_v51 }
 0x73d   : > { %v5819_v62 = vpack.c.bf16 %v3946_v56, %v3944_v55 }
 0x73e   : > { %4480 = vmatmul.mubr.msk.f32.vlgmr.msra.gmra.mrb[32].mxu0 %vm801_vm0, %v6876_v25  ;;  %4481 = vmatmul.mubr.msk.f32.vlgmr.msra.gmra.mrb[32].mxu1 %vm801_vm0, %v6876_v25 }
 0x73f   : > { %5768 = vmatpush1.bf16.msra.mxu0 %v5767_v63  ;;  %5784 = vmatpush1.bf16.msra.mxu1 %v5783_v0  ;;  %v3858_v63 = vld [vmem:[#allocation16 + $0x340] sm:$0xff]  ;;  %v3860_v0 = vld [vmem:[#allocation16 + $0x350] sm:$0xff] }
 0x740   : > { %5770 = vmatprep.subr.bf16.mxu0 %v5769_v3  ;;  %5786 = vmatprep.subr.bf16.mxu1 %v5785_v4  ;;  %v3948_v3 = vld [vmem:[#allocation16 + $0x3c0] sm:$0xff]  ;;  %v3950_v4 = vld [vmem:[#allocation16 + $0x3d0] sm:$0xff]  ;;  %v5807_v9 = vpack.c.bf16 %v3860_v0, %v3858_v63 }
 0x741   : > { %3750 = vmatprep.mubr.f32.mxu0 %v6308_v5  ;;  %3840 = vmatprep.mubr.f32.mxu1 %v6308_v5  ;;  %v5823_v10 = vpack.c.bf16 %v3950_v4, %v3948_v3 }
 0x743   : > { %5772 = vmatpush1.bf16.msra.mxu0 %v5771_v11  ;;  %5788 = vmatpush1.bf16.msra.mxu1 %v5787_v12  ;;  %v3862_v11 = vld [vmem:[#allocation16 + $0x360] sm:$0xff]  ;;  %v5809_v12 = vpack.c.bf16 %v3865_v6, %v3863_v47  ;;  %v4142_v6 = vpop.permute.xlu1 %4141 }
 0x744   : > { %5774 = vmatprep.subr.bf16.mxu0 %v5773_v15  ;;  %5790 = vmatprep.subr.bf16.mxu1 %v5789_v18  ;;  %v3952_v15 = vld [vmem:[#allocation16 + $0x3e0] sm:$0xff]  ;;  %v3954_v18 = vld [vmem:[#allocation16 + $0x3f0] sm:$0xff]  ;;  %v5811_v21 = vpack.c.bf16 %v3864_v14, %v3862_v11 }
 0x745   : > { %v5827_v22 = vpack.c.bf16 %v3954_v18, %v3952_v15  ;;  %v4119_v47 = vld [vmem:[#allocation17] sm:$0x7] }
 0x747   : > { %5776 = vmatpush1.bf16.msra.mxu0 %v5775_v27  ;;  %5792 = vmatpush1.bf16.msra.mxu1 %v5791_v28  ;;  %v4032_v27 = vld [vmem:[#allocation16 + $0x410] sm:$0xff]  ;;  %v4035_v28 = vld [vmem:[#allocation16 + $0x428] sm:$0xff] }
 0x748   : > { %5778 = vmatprep.subr.bf16.mxu0 %v5777_v31  ;;  %5794 = vmatprep.subr.bf16.mxu1 %v5793_v32  ;;  %v5831_v30 = vpack.c.bf16 %v4032_v27, %v4030_v26  ;;  %v5833_v31 = vpack.c.bf16 %v4037_v29, %v4035_v28  ;;  %v4034_v32 = vld [vmem:[#allocation16 + $0x420] sm:$0xff] }
 0x749   : > { %v5835_v36 = vpack.c.bf16 %v4036_v33, %v4034_v32 }
 0x74b   : > { %5780 = vmatpush1.bf16.msra.mxu0 %v5779_v39  ;;  %5796 = vmatpush1.bf16.msra.mxu1 %v5795_v40  ;;  %v4040_v39 = vld [vmem:[#allocation16 + $0x450] sm:$0xff]  ;;  %v4043_v40 = vld [vmem:[#allocation16 + $0x468] sm:$0xff] }
 0x74c   : > { %5798 = vmatprep.subr.bf16.mxu0 %v5797_v42  ;;  %5814 = vmatprep.subr.bf16.mxu1 %v5813_v17  ;;  %v5839_v24 = vpack.c.bf16 %v4040_v39, %v4038_v38  ;;  %v5841_v42 = vpack.c.bf16 %v4045_v41, %v4043_v40  ;;  %v4042_v17 = vld [vmem:[#allocation16 + $0x460] sm:$0xff] }
 0x74d   : > { %v5843_v43 = vpack.c.bf16 %v4044_v16, %v4042_v17 }
 0x74e   : > { %4482 = vmatmul.mubr.msk.f32.vlgmr.msra.gmra.mrb[34].mxu0 %vm801_vm0, %v6876_v25  ;;  %4483 = vmatmul.mubr.msk.f32.vlgmr.msra.gmra.mrb[34].mxu1 %vm801_vm0, %v6876_v25 }
 0x74f   : > { %5800 = vmatpush1.bf16.msra.mxu0 %v5799_v49  ;;  %5816 = vmatpush1.bf16.msra.mxu1 %v5815_v50 }
 0x750   : > { %5802 = vmatprep.subr.bf16.mxu0 %v5801_v53  ;;  %5818 = vmatprep.subr.bf16.mxu1 %v5817_v54 }
 0x751   : > { %3930 = vmatprep.mubr.f32.mxu0 %v6308_v5  ;;  %4020 = vmatprep.mubr.f32.mxu1 %v6308_v5 }
 0x753   : > { %5804 = vmatpush1.bf16.msra.mxu0 %v5803_v61  ;;  %5820 = vmatpush1.bf16.msra.mxu1 %v5819_v62 }
 0x754   : > { %5806 = vmatprep.subr.bf16.mxu0 %v5805_v1  ;;  %5822 = vmatprep.subr.bf16.mxu1 %v5821_v2 }
 0x757   : > { %5808 = vmatpush1.bf16.msra.mxu0 %v5807_v9  ;;  %5824 = vmatpush1.bf16.msra.mxu1 %v5823_v10 }
 0x758   : > { %5810 = vmatprep.subr.bf16.mxu0 %v5809_v12  ;;  %5826 = vmatprep.subr.bf16.mxu1 %v5825_v13 }
 0x75b   : > { %5812 = vmatpush1.bf16.msra.mxu0 %v5811_v21  ;;  %5828 = vmatpush1.bf16.msra.mxu1 %v5827_v22 }
 0x75c   : > { %5830 = vmatprep.subr.bf16.mxu0 %v5829_v23 }
 0x75e   : > { %4484 = vmatmul.mubr.msk.f32.vlgmr.msra.gmra.mrb[36].mxu0 %vm801_vm0, %v6876_v25  ;;  %4485 = vmatmul.mubr.msk.f32.vlgmr.msra.gmra.mrb[36].mxu1 %vm801_vm0, %v6876_v25 }
 0x75f   : > { %5832 = vmatpush1.bf16.msra.mxu0 %v5831_v30  ;;  %4110 = vmatprep.mubr.f32.mxu0 %v6308_v5 }
 0x760   : > { %5834 = vmatprep.subr.bf16.mxu0 %v5833_v31  ;;  %4211 = vmatprep.mubr.f32.mxu1 %v6308_v5 }
 0x763   : > { %5836 = vmatpush1.bf16.msra.mxu0 %v5835_v36 }
 0x764   : > { %5838 = vmatprep.subr.bf16.mxu0 %v5837_v37 }
 0x767   : > { %5840 = vmatpush1.bf16.msra.mxu0 %v5839_v24 }
 0x768   : > { %5842 = vmatprep.subr.bf16.mxu0 %v5841_v42 }
 0x76b   : > { %5844 = vmatpush1.bf16.msra.mxu0 %v5843_v43 }
 0x76e   : > { %4486 = vmatmul.mubr.msk.f32.vlgmr.msra.gmra.mrb[38].mxu0 %vm801_vm0, %v6876_v25 }
 0x801   : > { %v3392_v44 = vpop.f32.mrb[30].mxu0  ;;  %v3482_v45 = vpop.f32.mrb[30].mxu1 }
 0x802   : > { %3397 = vst [vmem:[#allocation2] sm:$0xff] %v3392_v44  ;;  %3487 = vst [vmem:[#allocation2 + $0x10] sm:$0xff] %v3482_v45  ;;  %v3394_v5 = vpop.f32.mrb[31].mxu0  ;;  %v3484_v46 = vpop.f32.mrb[31].mxu1  ;;  %v5847_v48 = vpack.c.bf16 %v3482_v45, %v3392_v44 }
 0x803   : > { %v5845_v49 = vpack.c.bf16 %v3484_v46, %v3394_v5 }
 0x805   : > { %5846 = vmatprep.subr.bf16.mxu1 %v5845_v49 }
 0x806   : > { %5848 = vmatpush1.bf16.msra.mxu1 %v5847_v48 }
 0x811   : > { %v3572_v50 = vpop.f32.mrb[32].mxu0  ;;  %v3662_v51 = vpop.f32.mrb[32].mxu1 }
 0x812   : > { %3577 = vst [vmem:[#allocation2 + $0x20] sm:$0xff] %v3572_v50  ;;  %3667 = vst [vmem:[#allocation2 + $0x30] sm:$0xff] %v3662_v51  ;;  %v3574_v52 = vpop.f32.mrb[33].mxu0  ;;  %v3664_v53 = vpop.f32.mrb[33].mxu1  ;;  %v5851_v54 = vpack.c.bf16 %v3662_v51, %v3572_v50 }
 0x813   : > { %v5849_v55 = vpack.c.bf16 %v3664_v53, %v3574_v52 }
 0x815   : > { %5850 = vmatprep.subr.bf16.mxu1 %v5849_v55 }
 0x816   : > { %5852 = vmatpush1.bf16.msra.mxu1 %v5851_v54 }
 0x821   : > { %v3752_v25 = vpop.f32.mrb[34].mxu0  ;;  %v3842_v56 = vpop.f32.mrb[34].mxu1 }
 0x822   : > { %3757 = vst [vmem:[#allocation2 + $0x40] sm:$0xff] %v3752_v25  ;;  %3847 = vst [vmem:[#allocation2 + $0x50] sm:$0xff] %v3842_v56  ;;  %v3754_v57 = vpop.f32.mrb[35].mxu0  ;;  %v3844_v58 = vpop.f32.mrb[35].mxu1  ;;  %v5855_v59 = vpack.c.bf16 %v3842_v56, %v3752_v25 }
 0x823   : > { %v5853_v60 = vpack.c.bf16 %v3844_v58, %v3754_v57 }
 0x825   : > { %5854 = vmatprep.subr.bf16.mxu1 %v5853_v60 }
 0x826   : > { %5856 = vmatpush1.bf16.msra.mxu1 %v5855_v59 }
 0x831   : > { %v3932_v61 = vpop.f32.mrb[36].mxu0  ;;  %v4022_v62 = vpop.f32.mrb[36].mxu1 }
 0x832   : > { %3937 = vst [vmem:[#allocation2 + $0x60] sm:$0xff] %v3932_v61  ;;  %4027 = vst [vmem:[#allocation2 + $0x70] sm:$0xff] %v4022_v62  ;;  %v3934_v63 = vpop.f32.mrb[37].mxu0  ;;  %v4024_v0 = vpop.f32.mrb[37].mxu1  ;;  %v5859_v1 = vpack.c.bf16 %v4022_v62, %v3932_v61 }
 0x833   : > { %v5857_v2 = vpack.c.bf16 %v4024_v0, %v3934_v63 }
 0x835   : > { %5858 = vmatprep.subr.bf16.mxu1 %v5857_v2 }
 0x836   : > { %5860 = vmatpush1.bf16.msra.mxu1 %v5859_v1 }
 0x841   : > { %v4112_v3 = vpop.f32.mrb[38].mxu0 }
 0x842   : > { %4117 = vst [vmem:[#allocation2 + $0x80] sm:$0xff] %v4112_v3  ;;  %v4114_v4 = vpop.f32.mrb[39].mxu0 }
 0x843   : > { %4163 = vmatprep.subr.mxu1 %v4114_v4 }
 0x844   : > { %4164 = vmatpush1.msra.mxu1 %v4112_v3 }
 0x845   : > { %4487 = vmatmul.mubr.msk.f32.vlgmr.msra.gmra.mrb[38].mxu1 %vm1651_vm2, %v4119_v47 }
 0x918   : > { %v4213_v7 = vpop.f32.mrb[38].mxu1 }
 0x919   : > { %v4214_v8 = vadd.f32 %v4213_v7, %v4142_v6  ;;  %v4215_v9 = vpop.f32.mrb[39].mxu1 }
 0x91a   : > { %v4216_v10 = vadd.f32 %v4215_v9, %v4142_v6 }
 0x91c   : > { %v4220_v11 = vcombine.low %v4214_v8, %v4216_v10 }
 0x91e   : > { %4222 = vst [vmem:[%s696_s16] sm:$0x77] %v4220_v11 }
 0x91f PF: > { %s6959_s26 = sld [smem:[#allocation25_spill]] }
 0x925   : > { %s31_s18 = sadd.s32 1, %s6959_s26  }
 0x926   : > { %p28_p2 = scmp.ge.s32.totalorder %s31_s18, 4  }
 0x928   :  { %30 = sbr.rel (!%p28_p2) target bundleno = 10 (0xa), region = 195 }
 0x92f   :  { %4244 = vsyncpa [#allocation4], 1 }
 0x930   :  { %4246 = vsyncpa [#allocation4 + $0x1], 1 }
 0x931   :  { %4247 = vsyncpa [#allocation6], 1 }
 0x932   :  { %4248 = vsyncpa [#allocation9], 1 }
 0x933   :  { %4249 = vsyncpa [#allocation12], 1 }
 0x934   :  { %4250 = vsyncpa [#allocation15], 1 }
 0x935   :  { %4251 = vsyncpa [#allocation18], 1 }

</bundles_post_ra>
